<compile_context>
chip_gen: v6e
topology: v6e:2x2x1
jax: 0.10.0
libtpu: 0.0.40
codegen_flags: <defaults>
</compile_context>

<pallas_src>
import functools
import math

import jax
import jax.numpy as jnp
from jax import lax
from jax.experimental import pallas as pl
from jax.experimental.pallas import tpu as pltpu

_BF16 = jnp.bfloat16


# --------------------------- in-kernel building blocks ---------------------------

def _ln(x, gamma, beta, eps):
    """LayerNorm over last dim (biased variance, PyTorch semantics). x: (M, E) f32."""
    mu = jnp.mean(x, axis=-1, keepdims=True)
    xc = x - mu
    var = jnp.mean(xc * xc, axis=-1, keepdims=True)
    return xc * lax.rsqrt(var + eps) * gamma + beta


def _mha(q, k, v, wo, bo, nhead, scale, mask):
    """Multi-head attention + output projection for a whole batch.

    q: (B, Lq, E) f32, k/v: (B, Lk, E) f32, wo: (E, E) bf16 in (in, out) layout,
    bo: (1, E) f32, mask: optional additive (Lq, Lk) f32.  Returns (B*Lq, E) f32.

    Heads are concatenated before a single full-depth output-projection matmul.
    """
    B, Lq, E = q.shape
    Dh = E // nhead
    qb = q.astype(_BF16)
    kb = k.astype(_BF16)
    vb = v.astype(_BF16)
    heads = []
    # TODO(synk): heads remain a static Python loop over lane slices (Dh < 128); a fully
    # head-batched (B*H, L, Dh) einsum needs an in-kernel relayout that only pays off for
    # E >= 128.
    for h in range(nhead):
        sl = slice(h * Dh, (h + 1) * Dh)
        # scores batched over B, contraction on Dh -> (B, Lq, Lk), f32 accumulation
        s = jnp.einsum('bqd,bkd->bqk', qb[..., sl], kb[..., sl],
                       preferred_element_type=jnp.float32) * scale
        if mask is not None:
            s = s + mask                                    # (Lq, Lk) broadcast over B
        m = jnp.max(s, axis=-1, keepdims=True)
        p = jnp.exp(s - m)
        p = p * pl.reciprocal(jnp.sum(p, axis=-1, keepdims=True), approx=True)
        heads.append(jnp.einsum('bqk,bkd->bqd', p.astype(_BF16), vb[..., sl],
                                preferred_element_type=jnp.float32))   # (B, Lq, Dh)
    o = jnp.concatenate(heads, axis=-1).reshape(B * Lq, E)  # concat heads -> (B*Lq, E)
    # single full-depth output projection (contraction K = E)
    return jnp.dot(o.astype(_BF16), wo, preferred_element_type=jnp.float32) + bo


# ------------------------------ fused layer kernels ------------------------------

def _encoder_layer_kernel(*refs, nhead, eps, scale, has_mask):
    it = iter(refs)
    x_ref = next(it)
    mask_ref = next(it) if has_mask else None
    wqkv = next(it); bqkv = next(it); wo = next(it); bo = next(it)
    n1g = next(it); n1b = next(it)
    w1 = next(it); b1 = next(it); w2 = next(it); b2 = next(it)
    n2g = next(it); n2b = next(it)
    o_ref = next(it)

    B, L, E = x_ref.shape
    x = x_ref[...].astype(jnp.float32).reshape(B * L, E)                 # M = B*L

    # fused QKV projection (bf16 operands, f32 accumulation)
    qkv = jnp.dot(x.astype(_BF16), wqkv[...],
                  preferred_element_type=jnp.float32) + bqkv[...]        # (B*L, 3E)
    q = qkv[:, :E].reshape(B, L, E)
    k = qkv[:, E:2 * E].reshape(B, L, E)
    v = qkv[:, 2 * E:].reshape(B, L, E)

    mask = mask_ref[...] if has_mask else None
    attn = _mha(q, k, v, wo[...], bo[...], nhead, scale, mask)           # (B*L, E)

    y1 = _ln(x + attn, n1g[...], n1b[...], eps)                          # residual fused

    # FFN: linear1 + ReLU + linear2, hidden stays in VMEM/vregs
    hid = jnp.maximum(jnp.dot(y1.astype(_BF16), w1[...],
                              preferred_element_type=jnp.float32) + b1[...], 0.0)
    ff = jnp.dot(hid.astype(_BF16), w2[...],
                 preferred_element_type=jnp.float32) + b2[...]

    y2 = _ln(y1 + ff, n2g[...], n2b[...], eps)
    o_ref[...] = y2.reshape(B, L, E).astype(o_ref.dtype)


def _decoder_layer_kernel(*refs, nhead, eps, scale, has_tgt_mask, has_mem_mask):
    it = iter(refs)
    x_ref = next(it); mem_ref = next(it)
    tmask_ref = next(it) if has_tgt_mask else None
    mmask_ref = next(it) if has_mem_mask else None
    sa_wqkv = next(it); sa_bqkv = next(it); sa_wo = next(it); sa_bo = next(it)
    n1g = next(it); n1b = next(it)
    ca_wq = next(it); ca_bq = next(it); ca_wkv = next(it); ca_bkv = next(it)
    ca_wo = next(it); ca_bo = next(it)
    n2g = next(it); n2b = next(it)
    w1 = next(it); b1 = next(it); w2 = next(it); b2 = next(it)
    n3g = next(it); n3b = next(it)
    o_ref = next(it)

    B, Lt, E = x_ref.shape
    Ls = mem_ref.shape[1]
    x = x_ref[...].astype(jnp.float32).reshape(B * Lt, E)
    mem = mem_ref[...].astype(jnp.float32).reshape(B * Ls, E)

    # --- self attention ---
    qkv = jnp.dot(x.astype(_BF16), sa_wqkv[...],
                  preferred_element_type=jnp.float32) + sa_bqkv[...]
    q = qkv[:, :E].reshape(B, Lt, E)
    k = qkv[:, E:2 * E].reshape(B, Lt, E)
    v = qkv[:, 2 * E:].reshape(B, Lt, E)
    tmask = tmask_ref[...] if has_tgt_mask else None
    sa = _mha(q, k, v, sa_wo[...], sa_bo[...], nhead, scale, tmask)
    y1 = _ln(x + sa, n1g[...], n1b[...], eps)

    # --- cross attention (q from decoder stream, k/v from encoder memory) ---
    qc = (jnp.dot(y1.astype(_BF16), ca_wq[...],
                  preferred_element_type=jnp.float32) + ca_bq[...]).reshape(B, Lt, E)
    kv = jnp.dot(mem.astype(_BF16), ca_wkv[...],
                 preferred_element_type=jnp.float32) + ca_bkv[...]       # (B*Ls, 2E)
    kc = kv[:, :E].reshape(B, Ls, E)
    vc = kv[:, E:].reshape(B, Ls, E)
    mmask = mmask_ref[...] if has_mem_mask else None
    ca = _mha(qc, kc, vc, ca_wo[...], ca_bo[...], nhead, scale, mmask)
    y2 = _ln(y1 + ca, n2g[...], n2b[...], eps)

    # --- FFN ---
    hid = jnp.maximum(jnp.dot(y2.astype(_BF16), w1[...],
                              preferred_element_type=jnp.float32) + b1[...], 0.0)
    ff = jnp.dot(hid.astype(_BF16), w2[...],
                 preferred_element_type=jnp.float32) + b2[...]
    y3 = _ln(y2 + ff, n3g[...], n3b[...], eps)
    o_ref[...] = y3.reshape(B, Lt, E).astype(o_ref.dtype)


# -------------------------------- layer wrappers ---------------------------------

def _full_spec(shape):
    """Whole-array block (grid=(1,)); block index is always the origin."""
    return pl.BlockSpec(shape, lambda i, _n=len(shape): (0,) * _n)


def _vmem_limit(args, out_bytes):
    """Scoped VMEM budget from the actual resident I/O footprint + headroom."""
    io = sum(int(a.size) * a.dtype.itemsize for a in args) + out_bytes
    return int(min(100 * 1024 * 1024, max(32 * 1024 * 1024, 2 * io + 8 * 1024 * 1024)))


def encoder_layer(x, p, nhead, src_mask=None, eps=1e-5):
    """x: (B, L, E) -> (B, L, E). One fused pallas_call over the whole batch."""
    B, L, E = x.shape
    scale = 1.0 / math.sqrt(E // nhead)
    has_mask = src_mask is not None

    in_specs = [_full_spec((B, L, E))]
    args = [x]
    if has_mask:
        in_specs.append(_full_spec(src_mask.shape))
        args.append(src_mask)
    weights = [p["wqkv"], p["bqkv"], p["wo"], p["bo"],
               p["norm1_w"], p["norm1_b"],
               p["w1"], p["b1"], p["w2"], p["b2"],
               p["norm2_w"], p["norm2_b"]]
    in_specs += [_full_spec(w.shape) for w in weights]
    args += weights
    out_bytes = B * L * E * x.dtype.itemsize

    return pl.pallas_call(
        functools.partial(_encoder_layer_kernel, nhead=nhead, eps=eps,
                          scale=scale, has_mask=has_mask),
        out_shape=jax.ShapeDtypeStruct((B, L, E), x.dtype),
        grid=(1,),
        in_specs=in_specs,
        out_specs=_full_spec((B, L, E)),
        compiler_params=pltpu.CompilerParams(
            dimension_semantics=("arbitrary",),
            vmem_limit_bytes=_vmem_limit(args, out_bytes)),
    )(*args)


def decoder_layer(x, memory, p, nhead, tgt_mask=None, memory_mask=None, eps=1e-5):
    """x: (B, Lt, E), memory: (B, Ls, E) -> (B, Lt, E). One fused pallas_call."""
    B, Lt, E = x.shape
    Ls = memory.shape[1]
    scale = 1.0 / math.sqrt(E // nhead)
    has_t = tgt_mask is not None
    has_m = memory_mask is not None

    in_specs = [_full_spec((B, Lt, E)), _full_spec((B, Ls, E))]
    args = [x, memory]
    if has_t:
        in_specs.append(_full_spec(tgt_mask.shape))
        args.append(tgt_mask)
    if has_m:
        in_specs.append(_full_spec(memory_mask.shape))
        args.append(memory_mask)
    weights = [p["sa_wqkv"], p["sa_bqkv"], p["sa_wo"], p["sa_bo"],
               p["norm1_w"], p["norm1_b"],
               p["ca_wq"], p["ca_bq"], p["ca_wkv"], p["ca_bkv"],
               p["ca_wo"], p["ca_bo"],
               p["norm2_w"], p["norm2_b"],
               p["w1"], p["b1"], p["w2"], p["b2"],
               p["norm3_w"], p["norm3_b"]]
    in_specs += [_full_spec(w.shape) for w in weights]
    args += weights
    out_bytes = B * Lt * E * x.dtype.itemsize

    return pl.pallas_call(
        functools.partial(_decoder_layer_kernel, nhead=nhead, eps=eps, scale=scale,
                          has_tgt_mask=has_t, has_mem_mask=has_m),
        out_shape=jax.ShapeDtypeStruct((B, Lt, E), x.dtype),
        grid=(1,),
        in_specs=in_specs,
        out_specs=_full_spec((B, Lt, E)),
        compiler_params=pltpu.CompilerParams(
            dimension_semantics=("arbitrary",),
            vmem_limit_bytes=_vmem_limit(args, out_bytes)),
    )(*args)


# ----------------------------------- top level -----------------------------------

def _prep_mask(m):
    """Convert a PyTorch-style mask to an additive f32 mask, once per forward."""
    if m is None:
        return None
    if m.dtype == jnp.bool_:
        # True = disallowed. Large finite negative instead of -inf so a fully masked
        # row degrades to uniform attention instead of NaN.
        return jnp.where(m, jnp.float32(-1e9), jnp.float32(0.0))
    return m.astype(jnp.float32)


def my_transformer(src, tgt, params, nhead,
                   src_mask=None, tgt_mask=None, memory_mask=None):
    """src: (S, B, E), tgt: (T, B, E) (seq-major, PyTorch batch_first=False)."""
    src_mask = _prep_mask(src_mask)
    tgt_mask = _prep_mask(tgt_mask)
    memory_mask = _prep_mask(memory_mask)

    x = jnp.transpose(src, (1, 0, 2))          # (B, S, E) once
    for lp in params["encoder_layers"]:
        x = encoder_layer(x, lp, nhead, src_mask)
    memory = x

    y = jnp.transpose(tgt, (1, 0, 2))          # (B, T, E) once
    for lp in params["decoder_layers"]:
        y = decoder_layer(y, memory, lp, nhead, tgt_mask, memory_mask)
    return jnp.transpose(y, (1, 0, 2))         # back to (T, B, E)


# ------------------------------- parameter init ----------------------------------
# Matmul weights are stored pre-transposed in (in, out) layout and in bf16 (MXU-native on
# v6e/v7x, ~2x matmul throughput on v5e, half the weight DMA/VMEM bytes). Biases and
# LayerNorm params stay f32 (added/used on the f32 VALU path). qkv columns are ordered
# [q | k | v] (matching a row-split of PyTorch's in_proj_weight).

def _winit(key, shape):
    return (jax.random.normal(key, shape, jnp.float32) * 0.02).astype(_BF16)


def _encoder_layer_params(key, E, F):
    k = jax.random.split(key, 4)
    return {
        "wqkv": _winit(k[0], (E, 3 * E)),
        "bqkv": jnp.zeros((1, 3 * E), jnp.float32),
        "wo":   _winit(k[1], (E, E)),
        "bo":   jnp.zeros((1, E), jnp.float32),
        "norm1_w": jnp.ones((1, E), jnp.float32),
        "norm1_b": jnp.zeros((1, E), jnp.float32),
        "w1": _winit(k[2], (E, F)),
        "b1": jnp.zeros((1, F), jnp.float32),
        "w2": _winit(k[3], (F, E)),
        "b2": jnp.zeros((1, E), jnp.float32),
        "norm2_w": jnp.ones((1, E), jnp.float32),
        "norm2_b": jnp.zeros((1, E), jnp.float32),
    }


def _decoder_layer_params(key, E, F):
    k = jax.random.split(key, 7)
    return {
        "sa_wqkv": _winit(k[0], (E, 3 * E)),
        "sa_bqkv": jnp.zeros((1, 3 * E), jnp.float32),
        "sa_wo":   _winit(k[1], (E, E)),
        "sa_bo":   jnp.zeros((1, E), jnp.float32),
        "norm1_w": jnp.ones((1, E), jnp.float32),
        "norm1_b": jnp.zeros((1, E), jnp.float32),
        "ca_wq":  _winit(k[2], (E, E)),
        "ca_bq":  jnp.zeros((1, E), jnp.float32),
        "ca_wkv": _winit(k[3], (E, 2 * E)),
        "ca_bkv": jnp.zeros((1, 2 * E), jnp.float32),
        "ca_wo":  _winit(k[4], (E, E)),
        "ca_bo":  jnp.zeros((1, E), jnp.float32),
        "norm2_w": jnp.ones((1, E), jnp.float32),
        "norm2_b": jnp.zeros((1, E), jnp.float32),
        "w1": _winit(k[5], (E, F)),
        "b1": jnp.zeros((1, F), jnp.float32),
        "w2": _winit(k[6], (F, E)),
        "b2": jnp.zeros((1, E), jnp.float32),
        "norm3_w": jnp.ones((1, E), jnp.float32),
        "norm3_b": jnp.zeros((1, E), jnp.float32),
    }


def make_params(key, d_model, dim_feedforward, num_encoder_layers, num_decoder_layers):
    params = {"encoder_layers": [], "decoder_layers": []}
    keys = jax.random.split(key, num_encoder_layers + num_decoder_layers)
    for i in range(num_encoder_layers):
        params["encoder_layers"].append(
            _encoder_layer_params(keys[i], d_model, dim_feedforward))
    for j in range(num_decoder_layers):
        params["decoder_layers"].append(
            _decoder_layer_params(keys[num_encoder_layers + j], d_model, dim_feedforward))
    return params


# ------------------------------------- main --------------------------------------

if __name__ == "__main__":
    d_model, nhead = 32, 4
    num_encoder_layers, num_decoder_layers = 2, 2
    dim_feedforward = 64
    S, T, B = 8, 8, 2   # src seq, tgt seq, batch

    key = jax.random.PRNGKey(0)
    kp, ks, kt = jax.random.split(key, 3)
    params = make_params(kp, d_model, dim_feedforward,
                         num_encoder_layers, num_decoder_layers)
    src = jax.random.normal(ks, (S, B, d_model), jnp.float32)
    tgt = jax.random.normal(kt, (T, B, d_model), jnp.float32)
    # causal target mask (PyTorch bool convention: True = position not allowed)
    tgt_mask = jnp.triu(jnp.ones((T, T), dtype=jnp.bool_), k=1)

    # TODO(synk): dropout is identity (eval semantics); LN/softmax stay f32, matmul
    # operands are bf16 (so tight f32 allclose vs. the PyTorch reference is not expected).
    fwd = jax.jit(functools.partial(my_transformer, nhead=nhead))
    out = fwd(src, tgt, params, tgt_mask=tgt_mask)
    out = jax.block_until_ready(out)
    assert out.shape == (T, B, d_model)
    assert bool(jnp.all(jnp.isfinite(out)))
    print("KERNEL_OK")
</pallas_src>

<mosaic_0001>
module attributes {stable_mosaic.version = 11 : i64} {
  func.func @_encoder_layer_kernel(%arg0: i32, %arg1: memref<2x8x32xf32, #tpu.memory_space<vmem>>, %arg2: memref<32x96xbf16, #tpu.memory_space<vmem>>, %arg3: memref<1x96xf32, #tpu.memory_space<vmem>>, %arg4: memref<32x32xbf16, #tpu.memory_space<vmem>>, %arg5: memref<1x32xf32, #tpu.memory_space<vmem>>, %arg6: memref<1x32xf32, #tpu.memory_space<vmem>>, %arg7: memref<1x32xf32, #tpu.memory_space<vmem>>, %arg8: memref<32x64xbf16, #tpu.memory_space<vmem>>, %arg9: memref<1x64xf32, #tpu.memory_space<vmem>>, %arg10: memref<64x32xbf16, #tpu.memory_space<vmem>>, %arg11: memref<1x32xf32, #tpu.memory_space<vmem>>, %arg12: memref<1x32xf32, #tpu.memory_space<vmem>>, %arg13: memref<1x32xf32, #tpu.memory_space<vmem>>, %arg14: memref<2x8x32xf32, #tpu.memory_space<vmem>>) attributes {dimension_semantics = [#tpu.dimension_semantics<arbitrary>], iteration_bounds = array<i64: 1>, scalar_prefetch = 0 : i64, scratch_operands = 0 : i64, tpu.core_type = #tpu.core_type<tc>, window_params = [{pipeline_mode = #tpu.pipeline_mode<synchronous>, transform_indices = @transform_0, window_bounds = array<i64: 2, 8, 32>}, {pipeline_mode = #tpu.pipeline_mode<synchronous>, transform_indices = @transform_1, window_bounds = array<i64: 32, 96>}, {pipeline_mode = #tpu.pipeline_mode<synchronous>, transform_indices = @transform_2, window_bounds = array<i64: 1, 96>}, {pipeline_mode = #tpu.pipeline_mode<synchronous>, transform_indices = @transform_3, window_bounds = array<i64: 32, 32>}, {pipeline_mode = #tpu.pipeline_mode<synchronous>, transform_indices = @transform_4, window_bounds = array<i64: 1, 32>}, {pipeline_mode = #tpu.pipeline_mode<synchronous>, transform_indices = @transform_5, window_bounds = array<i64: 1, 32>}, {pipeline_mode = #tpu.pipeline_mode<synchronous>, transform_indices = @transform_6, window_bounds = array<i64: 1, 32>}, {pipeline_mode = #tpu.pipeline_mode<synchronous>, transform_indices = @transform_7, window_bounds = array<i64: 32, 64>}, {pipeline_mode = #tpu.pipeline_mode<synchronous>, transform_indices = @transform_8, window_bounds = array<i64: 1, 64>}, {pipeline_mode = #tpu.pipeline_mode<synchronous>, transform_indices = @transform_9, window_bounds = array<i64: 64, 32>}, {pipeline_mode = #tpu.pipeline_mode<synchronous>, transform_indices = @transform_10, window_bounds = array<i64: 1, 32>}, {pipeline_mode = #tpu.pipeline_mode<synchronous>, transform_indices = @transform_11, window_bounds = array<i64: 1, 32>}, {pipeline_mode = #tpu.pipeline_mode<synchronous>, transform_indices = @transform_12, window_bounds = array<i64: 1, 32>}, {pipeline_mode = #tpu.pipeline_mode<synchronous>, transform_indices = @transform_13, window_bounds = array<i64: 2, 8, 32>}]} {
    %c0 = arith.constant 0 : index
    %c0_0 = arith.constant 0 : index
    %c0_1 = arith.constant 0 : index
    %0 = vector.load %arg1[%c0, %c0_0, %c0_1] : memref<2x8x32xf32, #tpu.memory_space<vmem>>, vector<2x8x32xf32>
    %1 = vector.shape_cast %0 : vector<2x8x32xf32> to vector<16x32xf32>
    %2 = arith.truncf %1 : vector<16x32xf32> to vector<16x32xbf16>
    %c0_2 = arith.constant 0 : index
    %c0_3 = arith.constant 0 : index
    %3 = vector.load %arg2[%c0_2, %c0_3] : memref<32x96xbf16, #tpu.memory_space<vmem>>, vector<32x96xbf16>
    %cst = arith.constant dense<0.000000e+00> : vector<16x96xf32>
    %4 = tpu.matmul %2, %3, %cst {dimension_numbers = #tpu.dot_dimension_numbers<[1], [0], [0], [1], [0, 0, 1, 1], [], []>} : vector<16x32xbf16>, vector<32x96xbf16>, vector<16x96xf32> -> vector<16x96xf32>
    %c0_4 = arith.constant 0 : index
    %c0_5 = arith.constant 0 : index
    %5 = vector.load %arg3[%c0_4, %c0_5] : memref<1x96xf32, #tpu.memory_space<vmem>>, vector<1x96xf32>
    %6 = vector.broadcast %5 : vector<1x96xf32> to vector<16x96xf32>
    %7 = arith.addf %4, %6 : vector<16x96xf32>
    %8 = vector.extract_strided_slice %7 {offsets = [0, 0], sizes = [16, 32], strides = [1, 1]} : vector<16x96xf32> to vector<16x32xf32>
    %9 = vector.shape_cast %8 : vector<16x32xf32> to vector<2x8x32xf32>
    %10 = vector.extract_strided_slice %7 {offsets = [0, 32], sizes = [16, 32], strides = [1, 1]} : vector<16x96xf32> to vector<16x32xf32>
    %11 = vector.shape_cast %10 : vector<16x32xf32> to vector<2x8x32xf32>
    %12 = vector.extract_strided_slice %7 {offsets = [0, 64], sizes = [16, 32], strides = [1, 1]} : vector<16x96xf32> to vector<16x32xf32>
    %13 = vector.shape_cast %12 : vector<16x32xf32> to vector<2x8x32xf32>
    %c0_6 = arith.constant 0 : index
    %c0_7 = arith.constant 0 : index
    %14 = vector.load %arg4[%c0_6, %c0_7] : memref<32x32xbf16, #tpu.memory_space<vmem>>, vector<32x32xbf16>
    %c0_8 = arith.constant 0 : index
    %c0_9 = arith.constant 0 : index
    %15 = vector.load %arg5[%c0_8, %c0_9] : memref<1x32xf32, #tpu.memory_space<vmem>>, vector<1x32xf32>
    %16 = arith.truncf %9 : vector<2x8x32xf32> to vector<2x8x32xbf16>
    %17 = arith.truncf %11 : vector<2x8x32xf32> to vector<2x8x32xbf16>
    %18 = arith.truncf %13 : vector<2x8x32xf32> to vector<2x8x32xbf16>
    %19 = vector.extract_strided_slice %16 {offsets = [0, 0, 0], sizes = [2, 8, 8], strides = [1, 1, 1]} : vector<2x8x32xbf16> to vector<2x8x8xbf16>
    %20 = vector.extract_strided_slice %17 {offsets = [0, 0, 0], sizes = [2, 8, 8], strides = [1, 1, 1]} : vector<2x8x32xbf16> to vector<2x8x8xbf16>
    "tpu.trace_start"() <{level = 10 : i32, message = "bqd,bkd->bqk"}> : () -> ()
    %cst_10 = arith.constant dense<0.000000e+00> : vector<2x8x8xf32>
    %21 = tpu.matmul %19, %20, %cst_10 {dimension_numbers = #tpu.dot_dimension_numbers<[2], [2], [1], [1], [0, 0, 0, 1, 1, 1], [0], [0]>} : vector<2x8x8xbf16>, vector<2x8x8xbf16>, vector<2x8x8xf32> -> vector<2x8x8xf32>
    "tpu.trace_stop"() : () -> ()
    %cst_11 = arith.constant 0.353553385 : f32
    %22 = vector.broadcast %cst_11 : f32 to vector<2x8x8xf32>
    %23 = arith.mulf %21, %22 : vector<2x8x8xf32>
    %cst_12 = arith.constant dense<0xFF800000> : vector<2x8xf32>
    %24 = vector.multi_reduction <maximumf>, %23, %cst_12 [2] : vector<2x8x8xf32> to vector<2x8xf32>
    %25 = vector.shape_cast %24 : vector<2x8xf32> to vector<2x8x1xf32>
    %26 = vector.broadcast %25 : vector<2x8x1xf32> to vector<2x8x8xf32>
    %27 = arith.subf %23, %26 : vector<2x8x8xf32>
    %28 = math.exp %27 : vector<2x8x8xf32>
    %cst_13 = arith.constant dense<0.000000e+00> : vector<2x8xf32>
    %29 = vector.multi_reduction <add>, %28, %cst_13 [2] : vector<2x8x8xf32> to vector<2x8xf32>
    %30 = vector.shape_cast %29 : vector<2x8xf32> to vector<2x8x1xf32>
    %31 = tpu.reciprocal %30 {approx = true} : vector<2x8x1xf32> -> vector<2x8x1xf32>
    %32 = vector.broadcast %31 : vector<2x8x1xf32> to vector<2x8x8xf32>
    %33 = arith.mulf %28, %32 : vector<2x8x8xf32>
    %34 = arith.truncf %33 : vector<2x8x8xf32> to vector<2x8x8xbf16>
    %35 = vector.extract_strided_slice %18 {offsets = [0, 0, 0], sizes = [2, 8, 8], strides = [1, 1, 1]} : vector<2x8x32xbf16> to vector<2x8x8xbf16>
    "tpu.trace_start"() <{level = 10 : i32, message = "bqk,bkd->bqd"}> : () -> ()
    %cst_14 = arith.constant dense<0.000000e+00> : vector<2x8x8xf32>
    %36 = tpu.matmul %34, %35, %cst_14 {dimension_numbers = #tpu.dot_dimension_numbers<[2], [1], [1], [2], [0, 0, 0, 1, 1, 2], [0], [0]>} : vector<2x8x8xbf16>, vector<2x8x8xbf16>, vector<2x8x8xf32> -> vector<2x8x8xf32>
    "tpu.trace_stop"() : () -> ()
    %37 = vector.extract_strided_slice %16 {offsets = [0, 0, 8], sizes = [2, 8, 8], strides = [1, 1, 1]} : vector<2x8x32xbf16> to vector<2x8x8xbf16>
    %38 = vector.extract_strided_slice %17 {offsets = [0, 0, 8], sizes = [2, 8, 8], strides = [1, 1, 1]} : vector<2x8x32xbf16> to vector<2x8x8xbf16>
    "tpu.trace_start"() <{level = 10 : i32, message = "bqd,bkd->bqk"}> : () -> ()
    %cst_15 = arith.constant dense<0.000000e+00> : vector<2x8x8xf32>
    %39 = tpu.matmul %37, %38, %cst_15 {dimension_numbers = #tpu.dot_dimension_numbers<[2], [2], [1], [1], [0, 0, 0, 1, 1, 1], [0], [0]>} : vector<2x8x8xbf16>, vector<2x8x8xbf16>, vector<2x8x8xf32> -> vector<2x8x8xf32>
    "tpu.trace_stop"() : () -> ()
    %cst_16 = arith.constant 0.353553385 : f32
    %40 = vector.broadcast %cst_16 : f32 to vector<2x8x8xf32>
    %41 = arith.mulf %39, %40 : vector<2x8x8xf32>
    %cst_17 = arith.constant dense<0xFF800000> : vector<2x8xf32>
    %42 = vector.multi_reduction <maximumf>, %41, %cst_17 [2] : vector<2x8x8xf32> to vector<2x8xf32>
    %43 = vector.shape_cast %42 : vector<2x8xf32> to vector<2x8x1xf32>
    %44 = vector.broadcast %43 : vector<2x8x1xf32> to vector<2x8x8xf32>
    %45 = arith.subf %41, %44 : vector<2x8x8xf32>
    %46 = math.exp %45 : vector<2x8x8xf32>
    %cst_18 = arith.constant dense<0.000000e+00> : vector<2x8xf32>
    %47 = vector.multi_reduction <add>, %46, %cst_18 [2] : vector<2x8x8xf32> to vector<2x8xf32>
    %48 = vector.shape_cast %47 : vector<2x8xf32> to vector<2x8x1xf32>
    %49 = tpu.reciprocal %48 {approx = true} : vector<2x8x1xf32> -> vector<2x8x1xf32>
    %50 = vector.broadcast %49 : vector<2x8x1xf32> to vector<2x8x8xf32>
    %51 = arith.mulf %46, %50 : vector<2x8x8xf32>
    %52 = arith.truncf %51 : vector<2x8x8xf32> to vector<2x8x8xbf16>
    %53 = vector.extract_strided_slice %18 {offsets = [0, 0, 8], sizes = [2, 8, 8], strides = [1, 1, 1]} : vector<2x8x32xbf16> to vector<2x8x8xbf16>
    "tpu.trace_start"() <{level = 10 : i32, message = "bqk,bkd->bqd"}> : () -> ()
    %cst_19 = arith.constant dense<0.000000e+00> : vector<2x8x8xf32>
    %54 = tpu.matmul %52, %53, %cst_19 {dimension_numbers = #tpu.dot_dimension_numbers<[2], [1], [1], [2], [0, 0, 0, 1, 1, 2], [0], [0]>} : vector<2x8x8xbf16>, vector<2x8x8xbf16>, vector<2x8x8xf32> -> vector<2x8x8xf32>
    "tpu.trace_stop"() : () -> ()
    %55 = vector.extract_strided_slice %16 {offsets = [0, 0, 16], sizes = [2, 8, 8], strides = [1, 1, 1]} : vector<2x8x32xbf16> to vector<2x8x8xbf16>
    %56 = vector.extract_strided_slice %17 {offsets = [0, 0, 16], sizes = [2, 8, 8], strides = [1, 1, 1]} : vector<2x8x32xbf16> to vector<2x8x8xbf16>
    "tpu.trace_start"() <{level = 10 : i32, message = "bqd,bkd->bqk"}> : () -> ()
    %cst_20 = arith.constant dense<0.000000e+00> : vector<2x8x8xf32>
    %57 = tpu.matmul %55, %56, %cst_20 {dimension_numbers = #tpu.dot_dimension_numbers<[2], [2], [1], [1], [0, 0, 0, 1, 1, 1], [0], [0]>} : vector<2x8x8xbf16>, vector<2x8x8xbf16>, vector<2x8x8xf32> -> vector<2x8x8xf32>
    "tpu.trace_stop"() : () -> ()
    %cst_21 = arith.constant 0.353553385 : f32
    %58 = vector.broadcast %cst_21 : f32 to vector<2x8x8xf32>
    %59 = arith.mulf %57, %58 : vector<2x8x8xf32>
    %cst_22 = arith.constant dense<0xFF800000> : vector<2x8xf32>
    %60 = vector.multi_reduction <maximumf>, %59, %cst_22 [2] : vector<2x8x8xf32> to vector<2x8xf32>
    %61 = vector.shape_cast %60 : vector<2x8xf32> to vector<2x8x1xf32>
    %62 = vector.broadcast %61 : vector<2x8x1xf32> to vector<2x8x8xf32>
    %63 = arith.subf %59, %62 : vector<2x8x8xf32>
    %64 = math.exp %63 : vector<2x8x8xf32>
    %cst_23 = arith.constant dense<0.000000e+00> : vector<2x8xf32>
    %65 = vector.multi_reduction <add>, %64, %cst_23 [2] : vector<2x8x8xf32> to vector<2x8xf32>
    %66 = vector.shape_cast %65 : vector<2x8xf32> to vector<2x8x1xf32>
    %67 = tpu.reciprocal %66 {approx = true} : vector<2x8x1xf32> -> vector<2x8x1xf32>
    %68 = vector.broadcast %67 : vector<2x8x1xf32> to vector<2x8x8xf32>
    %69 = arith.mulf %64, %68 : vector<2x8x8xf32>
    %70 = arith.truncf %69 : vector<2x8x8xf32> to vector<2x8x8xbf16>
    %71 = vector.extract_strided_slice %18 {offsets = [0, 0, 16], sizes = [2, 8, 8], strides = [1, 1, 1]} : vector<2x8x32xbf16> to vector<2x8x8xbf16>
    "tpu.trace_start"() <{level = 10 : i32, message = "bqk,bkd->bqd"}> : () -> ()
    %cst_24 = arith.constant dense<0.000000e+00> : vector<2x8x8xf32>
    %72 = tpu.matmul %70, %71, %cst_24 {dimension_numbers = #tpu.dot_dimension_numbers<[2], [1], [1], [2], [0, 0, 0, 1, 1, 2], [0], [0]>} : vector<2x8x8xbf16>, vector<2x8x8xbf16>, vector<2x8x8xf32> -> vector<2x8x8xf32>
    "tpu.trace_stop"() : () -> ()
    %73 = vector.extract_strided_slice %16 {offsets = [0, 0, 24], sizes = [2, 8, 8], strides = [1, 1, 1]} : vector<2x8x32xbf16> to vector<2x8x8xbf16>
    %74 = vector.extract_strided_slice %17 {offsets = [0, 0, 24], sizes = [2, 8, 8], strides = [1, 1, 1]} : vector<2x8x32xbf16> to vector<2x8x8xbf16>
    "tpu.trace_start"() <{level = 10 : i32, message = "bqd,bkd->bqk"}> : () -> ()
    %cst_25 = arith.constant dense<0.000000e+00> : vector<2x8x8xf32>
    %75 = tpu.matmul %73, %74, %cst_25 {dimension_numbers = #tpu.dot_dimension_numbers<[2], [2], [1], [1], [0, 0, 0, 1, 1, 1], [0], [0]>} : vector<2x8x8xbf16>, vector<2x8x8xbf16>, vector<2x8x8xf32> -> vector<2x8x8xf32>
    "tpu.trace_stop"() : () -> ()
    %cst_26 = arith.constant 0.353553385 : f32
    %76 = vector.broadcast %cst_26 : f32 to vector<2x8x8xf32>
    %77 = arith.mulf %75, %76 : vector<2x8x8xf32>
    %cst_27 = arith.constant dense<0xFF800000> : vector<2x8xf32>
    %78 = vector.multi_reduction <maximumf>, %77, %cst_27 [2] : vector<2x8x8xf32> to vector<2x8xf32>
    %79 = vector.shape_cast %78 : vector<2x8xf32> to vector<2x8x1xf32>
    %80 = vector.broadcast %79 : vector<2x8x1xf32> to vector<2x8x8xf32>
    %81 = arith.subf %77, %80 : vector<2x8x8xf32>
    %82 = math.exp %81 : vector<2x8x8xf32>
    %cst_28 = arith.constant dense<0.000000e+00> : vector<2x8xf32>
    %83 = vector.multi_reduction <add>, %82, %cst_28 [2] : vector<2x8x8xf32> to vector<2x8xf32>
    %84 = vector.shape_cast %83 : vector<2x8xf32> to vector<2x8x1xf32>
    %85 = tpu.reciprocal %84 {approx = true} : vector<2x8x1xf32> -> vector<2x8x1xf32>
    %86 = vector.broadcast %85 : vector<2x8x1xf32> to vector<2x8x8xf32>
    %87 = arith.mulf %82, %86 : vector<2x8x8xf32>
    %88 = arith.truncf %87 : vector<2x8x8xf32> to vector<2x8x8xbf16>
    %89 = vector.extract_strided_slice %18 {offsets = [0, 0, 24], sizes = [2, 8, 8], strides = [1, 1, 1]} : vector<2x8x32xbf16> to vector<2x8x8xbf16>
    "tpu.trace_start"() <{level = 10 : i32, message = "bqk,bkd->bqd"}> : () -> ()
    %cst_29 = arith.constant dense<0.000000e+00> : vector<2x8x8xf32>
    %90 = tpu.matmul %88, %89, %cst_29 {dimension_numbers = #tpu.dot_dimension_numbers<[2], [1], [1], [2], [0, 0, 0, 1, 1, 2], [0], [0]>} : vector<2x8x8xbf16>, vector<2x8x8xbf16>, vector<2x8x8xf32> -> vector<2x8x8xf32>
    "tpu.trace_stop"() : () -> ()
    %91 = tpu.concatenate %36, %54, %72, %90 in 2 : vector<2x8x8xf32>, vector<2x8x8xf32>, vector<2x8x8xf32>, vector<2x8x8xf32> -> vector<2x8x32xf32>
    %92 = vector.shape_cast %91 : vector<2x8x32xf32> to vector<16x32xf32>
    %93 = arith.truncf %92 : vector<16x32xf32> to vector<16x32xbf16>
    %cst_30 = arith.constant dense<0.000000e+00> : vector<16x32xf32>
    %94 = tpu.matmul %93, %14, %cst_30 {dimension_numbers = #tpu.dot_dimension_numbers<[1], [0], [0], [1], [0, 0, 1, 1], [], []>} : vector<16x32xbf16>, vector<32x32xbf16>, vector<16x32xf32> -> vector<16x32xf32>
    %95 = vector.broadcast %15 : vector<1x32xf32> to vector<16x32xf32>
    %96 = arith.addf %94, %95 : vector<16x32xf32>
    %97 = arith.addf %1, %96 : vector<16x32xf32>
    %c0_31 = arith.constant 0 : index
    %c0_32 = arith.constant 0 : index
    %98 = vector.load %arg6[%c0_31, %c0_32] : memref<1x32xf32, #tpu.memory_space<vmem>>, vector<1x32xf32>
    %c0_33 = arith.constant 0 : index
    %c0_34 = arith.constant 0 : index
    %99 = vector.load %arg7[%c0_33, %c0_34] : memref<1x32xf32, #tpu.memory_space<vmem>>, vector<1x32xf32>
    %cst_35 = arith.constant dense<0.000000e+00> : vector<16xf32>
    %100 = vector.multi_reduction <add>, %97, %cst_35 [1] : vector<16x32xf32> to vector<16xf32>
    %101 = vector.shape_cast %100 : vector<16xf32> to vector<16x1xf32>
    %cst_36 = arith.constant 3.200000e+01 : f32
    %102 = vector.broadcast %cst_36 : f32 to vector<16x1xf32>
    %103 = arith.divf %101, %102 : vector<16x1xf32>
    %104 = vector.broadcast %103 : vector<16x1xf32> to vector<16x32xf32>
    %105 = arith.subf %97, %104 : vector<16x32xf32>
    %106 = arith.mulf %105, %105 : vector<16x32xf32>
    %cst_37 = arith.constant dense<0.000000e+00> : vector<16xf32>
    %107 = vector.multi_reduction <add>, %106, %cst_37 [1] : vector<16x32xf32> to vector<16xf32>
    %108 = vector.shape_cast %107 : vector<16xf32> to vector<16x1xf32>
    %cst_38 = arith.constant 3.200000e+01 : f32
    %109 = vector.broadcast %cst_38 : f32 to vector<16x1xf32>
    %110 = arith.divf %108, %109 : vector<16x1xf32>
    %cst_39 = arith.constant 9.99999974E-6 : f32
    %111 = vector.broadcast %cst_39 : f32 to vector<16x1xf32>
    %112 = arith.addf %110, %111 : vector<16x1xf32>
    %113 = math.rsqrt %112 : vector<16x1xf32>
    %114 = vector.broadcast %113 : vector<16x1xf32> to vector<16x32xf32>
    %115 = arith.mulf %105, %114 : vector<16x32xf32>
    %116 = vector.broadcast %98 : vector<1x32xf32> to vector<16x32xf32>
    %117 = arith.mulf %115, %116 : vector<16x32xf32>
    %118 = vector.broadcast %99 : vector<1x32xf32> to vector<16x32xf32>
    %119 = arith.addf %117, %118 : vector<16x32xf32>
    %120 = arith.truncf %119 : vector<16x32xf32> to vector<16x32xbf16>
    %c0_40 = arith.constant 0 : index
    %c0_41 = arith.constant 0 : index
    %121 = vector.load %arg8[%c0_40, %c0_41] : memref<32x64xbf16, #tpu.memory_space<vmem>>, vector<32x64xbf16>
    %cst_42 = arith.constant dense<0.000000e+00> : vector<16x64xf32>
    %122 = tpu.matmul %120, %121, %cst_42 {dimension_numbers = #tpu.dot_dimension_numbers<[1], [0], [0], [1], [0, 0, 1, 1], [], []>} : vector<16x32xbf16>, vector<32x64xbf16>, vector<16x64xf32> -> vector<16x64xf32>
    %c0_43 = arith.constant 0 : index
    %c0_44 = arith.constant 0 : index
    %123 = vector.load %arg9[%c0_43, %c0_44] : memref<1x64xf32, #tpu.memory_space<vmem>>, vector<1x64xf32>
    %124 = vector.broadcast %123 : vector<1x64xf32> to vector<16x64xf32>
    %125 = arith.addf %122, %124 : vector<16x64xf32>
    %cst_45 = arith.constant 0.000000e+00 : f32
    %126 = vector.broadcast %cst_45 : f32 to vector<16x64xf32>
    %127 = arith.maximumf %125, %126 : vector<16x64xf32>
    %128 = arith.truncf %127 : vector<16x64xf32> to vector<16x64xbf16>
    %c0_46 = arith.constant 0 : index
    %c0_47 = arith.constant 0 : index
    %129 = vector.load %arg10[%c0_46, %c0_47] : memref<64x32xbf16, #tpu.memory_space<vmem>>, vector<64x32xbf16>
    %cst_48 = arith.constant dense<0.000000e+00> : vector<16x32xf32>
    %130 = tpu.matmul %128, %129, %cst_48 {dimension_numbers = #tpu.dot_dimension_numbers<[1], [0], [0], [1], [0, 0, 1, 1], [], []>} : vector<16x64xbf16>, vector<64x32xbf16>, vector<16x32xf32> -> vector<16x32xf32>
    %c0_49 = arith.constant 0 : index
    %c0_50 = arith.constant 0 : index
    %131 = vector.load %arg11[%c0_49, %c0_50] : memref<1x32xf32, #tpu.memory_space<vmem>>, vector<1x32xf32>
    %132 = vector.broadcast %131 : vector<1x32xf32> to vector<16x32xf32>
    %133 = arith.addf %130, %132 : vector<16x32xf32>
    %134 = arith.addf %119, %133 : vector<16x32xf32>
    %c0_51 = arith.constant 0 : index
    %c0_52 = arith.constant 0 : index
    %135 = vector.load %arg12[%c0_51, %c0_52] : memref<1x32xf32, #tpu.memory_space<vmem>>, vector<1x32xf32>
    %c0_53 = arith.constant 0 : index
    %c0_54 = arith.constant 0 : index
    %136 = vector.load %arg13[%c0_53, %c0_54] : memref<1x32xf32, #tpu.memory_space<vmem>>, vector<1x32xf32>
    %cst_55 = arith.constant dense<0.000000e+00> : vector<16xf32>
    %137 = vector.multi_reduction <add>, %134, %cst_55 [1] : vector<16x32xf32> to vector<16xf32>
    %138 = vector.shape_cast %137 : vector<16xf32> to vector<16x1xf32>
    %cst_56 = arith.constant 3.200000e+01 : f32
    %139 = vector.broadcast %cst_56 : f32 to vector<16x1xf32>
    %140 = arith.divf %138, %139 : vector<16x1xf32>
    %141 = vector.broadcast %140 : vector<16x1xf32> to vector<16x32xf32>
    %142 = arith.subf %134, %141 : vector<16x32xf32>
    %143 = arith.mulf %142, %142 : vector<16x32xf32>
    %cst_57 = arith.constant dense<0.000000e+00> : vector<16xf32>
    %144 = vector.multi_reduction <add>, %143, %cst_57 [1] : vector<16x32xf32> to vector<16xf32>
    %145 = vector.shape_cast %144 : vector<16xf32> to vector<16x1xf32>
    %cst_58 = arith.constant 3.200000e+01 : f32
    %146 = vector.broadcast %cst_58 : f32 to vector<16x1xf32>
    %147 = arith.divf %145, %146 : vector<16x1xf32>
    %cst_59 = arith.constant 9.99999974E-6 : f32
    %148 = vector.broadcast %cst_59 : f32 to vector<16x1xf32>
    %149 = arith.addf %147, %148 : vector<16x1xf32>
    %150 = math.rsqrt %149 : vector<16x1xf32>
    %151 = vector.broadcast %150 : vector<16x1xf32> to vector<16x32xf32>
    %152 = arith.mulf %142, %151 : vector<16x32xf32>
    %153 = vector.broadcast %135 : vector<1x32xf32> to vector<16x32xf32>
    %154 = arith.mulf %152, %153 : vector<16x32xf32>
    %155 = vector.broadcast %136 : vector<1x32xf32> to vector<16x32xf32>
    %156 = arith.addf %154, %155 : vector<16x32xf32>
    %157 = vector.shape_cast %156 : vector<16x32xf32> to vector<2x8x32xf32>
    %c0_60 = arith.constant 0 : index
    %c0_61 = arith.constant 0 : index
    %c0_62 = arith.constant 0 : index
    %158 = vector.load %arg14[%c0_60, %c0_61, %c0_62] : memref<2x8x32xf32, #tpu.memory_space<vmem>>, vector<2x8x32xf32>
    tpu.vector_store %arg14[%c0_60, %c0_61, %c0_62], %157 {strides = array<i32>} : memref<2x8x32xf32, #tpu.memory_space<vmem>>, vector<2x8x32xf32>,
    return
  }
  func.func @transform_0(%arg0: i32) -> (i32, i32, i32) {
    %c0_i32 = arith.constant 0 : i32
    %c0_i32_0 = arith.constant 0 : i32
    %c0_i32_1 = arith.constant 0 : i32
    %c0_i32_2 = arith.constant 0 : i32
    return %c0_i32, %c0_i32_0, %c0_i32_1 : i32, i32, i32
  }
  func.func @transform_1(%arg0: i32) -> (i32, i32) {
    %c0_i32 = arith.constant 0 : i32
    %c0_i32_0 = arith.constant 0 : i32
    %c0_i32_1 = arith.constant 0 : i32
    return %c0_i32, %c0_i32_0 : i32, i32
  }
  func.func @transform_2(%arg0: i32) -> (i32, i32) {
    %c0_i32 = arith.constant 0 : i32
    %c0_i32_0 = arith.constant 0 : i32
    %c0_i32_1 = arith.constant 0 : i32
    return %c0_i32, %c0_i32_0 : i32, i32
  }
  func.func @transform_3(%arg0: i32) -> (i32, i32) {
    %c0_i32 = arith.constant 0 : i32
    %c0_i32_0 = arith.constant 0 : i32
    %c0_i32_1 = arith.constant 0 : i32
    return %c0_i32, %c0_i32_0 : i32, i32
  }
  func.func @transform_4(%arg0: i32) -> (i32, i32) {
    %c0_i32 = arith.constant 0 : i32
    %c0_i32_0 = arith.constant 0 : i32
    %c0_i32_1 = arith.constant 0 : i32
    return %c0_i32, %c0_i32_0 : i32, i32
  }
  func.func @transform_5(%arg0: i32) -> (i32, i32) {
    %c0_i32 = arith.constant 0 : i32
    %c0_i32_0 = arith.constant 0 : i32
    %c0_i32_1 = arith.constant 0 : i32
    return %c0_i32, %c0_i32_0 : i32, i32
  }
  func.func @transform_6(%arg0: i32) -> (i32, i32) {
    %c0_i32 = arith.constant 0 : i32
    %c0_i32_0 = arith.constant 0 : i32
    %c0_i32_1 = arith.constant 0 : i32
    return %c0_i32, %c0_i32_0 : i32, i32
  }
  func.func @transform_7(%arg0: i32) -> (i32, i32) {
    %c0_i32 = arith.constant 0 : i32
    %c0_i32_0 = arith.constant 0 : i32
    %c0_i32_1 = arith.constant 0 : i32
    return %c0_i32, %c0_i32_0 : i32, i32
  }
  func.func @transform_8(%arg0: i32) -> (i32, i32) {
    %c0_i32 = arith.constant 0 : i32
    %c0_i32_0 = arith.constant 0 : i32
    %c0_i32_1 = arith.constant 0 : i32
    return %c0_i32, %c0_i32_0 : i32, i32
  }
  func.func @transform_9(%arg0: i32) -> (i32, i32) {
    %c0_i32 = arith.constant 0 : i32
    %c0_i32_0 = arith.constant 0 : i32
    %c0_i32_1 = arith.constant 0 : i32
    return %c0_i32, %c0_i32_0 : i32, i32
  }
  func.func @transform_10(%arg0: i32) -> (i32, i32) {
    %c0_i32 = arith.constant 0 : i32
    %c0_i32_0 = arith.constant 0 : i32
    %c0_i32_1 = arith.constant 0 : i32
    return %c0_i32, %c0_i32_0 : i32, i32
  }
  func.func @transform_11(%arg0: i32) -> (i32, i32) {
    %c0_i32 = arith.constant 0 : i32
    %c0_i32_0 = arith.constant 0 : i32
    %c0_i32_1 = arith.constant 0 : i32
    return %c0_i32, %c0_i32_0 : i32, i32
  }
  func.func @transform_12(%arg0: i32) -> (i32, i32) {
    %c0_i32 = arith.constant 0 : i32
    %c0_i32_0 = arith.constant 0 : i32
    %c0_i32_1 = arith.constant 0 : i32
    return %c0_i32, %c0_i32_0 : i32, i32
  }
  func.func @transform_13(%arg0: i32) -> (i32, i32, i32) {
    %c0_i32 = arith.constant 0 : i32
    %c0_i32_0 = arith.constant 0 : i32
    %c0_i32_1 = arith.constant 0 : i32
    %c0_i32_2 = arith.constant 0 : i32
    return %c0_i32, %c0_i32_0, %c0_i32_1 : i32, i32, i32
  }
}

module attributes {stable_mosaic.version = 11 : i64} {
  func.func @_decoder_layer_kernel(%arg0: i32, %arg1: memref<2x8x32xf32, #tpu.memory_space<vmem>>, %arg2: memref<2x8x32xf32, #tpu.memory_space<vmem>>, %arg3: memref<8x8xf32, #tpu.memory_space<vmem>>, %arg4: memref<32x96xbf16, #tpu.memory_space<vmem>>, %arg5: memref<1x96xf32, #tpu.memory_space<vmem>>, %arg6: memref<32x32xbf16, #tpu.memory_space<vmem>>, %arg7: memref<1x32xf32, #tpu.memory_space<vmem>>, %arg8: memref<1x32xf32, #tpu.memory_space<vmem>>, %arg9: memref<1x32xf32, #tpu.memory_space<vmem>>, %arg10: memref<32x32xbf16, #tpu.memory_space<vmem>>, %arg11: memref<1x32xf32, #tpu.memory_space<vmem>>, %arg12: memref<32x64xbf16, #tpu.memory_space<vmem>>, %arg13: memref<1x64xf32, #tpu.memory_space<vmem>>, %arg14: memref<32x32xbf16, #tpu.memory_space<vmem>>, %arg15: memref<1x32xf32, #tpu.memory_space<vmem>>, %arg16: memref<1x32xf32, #tpu.memory_space<vmem>>, %arg17: memref<1x32xf32, #tpu.memory_space<vmem>>, %arg18: memref<32x64xbf16, #tpu.memory_space<vmem>>, %arg19: memref<1x64xf32, #tpu.memory_space<vmem>>, %arg20: memref<64x32xbf16, #tpu.memory_space<vmem>>, %arg21: memref<1x32xf32, #tpu.memory_space<vmem>>, %arg22: memref<1x32xf32, #tpu.memory_space<vmem>>, %arg23: memref<1x32xf32, #tpu.memory_space<vmem>>, %arg24: memref<2x8x32xf32, #tpu.memory_space<vmem>>) attributes {dimension_semantics = [#tpu.dimension_semantics<arbitrary>], iteration_bounds = array<i64: 1>, scalar_prefetch = 0 : i64, scratch_operands = 0 : i64, tpu.core_type = #tpu.core_type<tc>, window_params = [{pipeline_mode = #tpu.pipeline_mode<synchronous>, transform_indices = @transform_0, window_bounds = array<i64: 2, 8, 32>}, {pipeline_mode = #tpu.pipeline_mode<synchronous>, transform_indices = @transform_1, window_bounds = array<i64: 2, 8, 32>}, {pipeline_mode = #tpu.pipeline_mode<synchronous>, transform_indices = @transform_2, window_bounds = array<i64: 8, 8>}, {pipeline_mode = #tpu.pipeline_mode<synchronous>, transform_indices = @transform_3, window_bounds = array<i64: 32, 96>}, {pipeline_mode = #tpu.pipeline_mode<synchronous>, transform_indices = @transform_4, window_bounds = array<i64: 1, 96>}, {pipeline_mode = #tpu.pipeline_mode<synchronous>, transform_indices = @transform_5, window_bounds = array<i64: 32, 32>}, {pipeline_mode = #tpu.pipeline_mode<synchronous>, transform_indices = @transform_6, window_bounds = array<i64: 1, 32>}, {pipeline_mode = #tpu.pipeline_mode<synchronous>, transform_indices = @transform_7, window_bounds = array<i64: 1, 32>}, {pipeline_mode = #tpu.pipeline_mode<synchronous>, transform_indices = @transform_8, window_bounds = array<i64: 1, 32>}, {pipeline_mode = #tpu.pipeline_mode<synchronous>, transform_indices = @transform_9, window_bounds = array<i64: 32, 32>}, {pipeline_mode = #tpu.pipeline_mode<synchronous>, transform_indices = @transform_10, window_bounds = array<i64: 1, 32>}, {pipeline_mode = #tpu.pipeline_mode<synchronous>, transform_indices = @transform_11, window_bounds = array<i64: 32, 64>}, {pipeline_mode = #tpu.pipeline_mode<synchronous>, transform_indices = @transform_12, window_bounds = array<i64: 1, 64>}, {pipeline_mode = #tpu.pipeline_mode<synchronous>, transform_indices = @transform_13, window_bounds = array<i64: 32, 32>}, {pipeline_mode = #tpu.pipeline_mode<synchronous>, transform_indices = @transform_14, window_bounds = array<i64: 1, 32>}, {pipeline_mode = #tpu.pipeline_mode<synchronous>, transform_indices = @transform_15, window_bounds = array<i64: 1, 32>}, {pipeline_mode = #tpu.pipeline_mode<synchronous>, transform_indices = @transform_16, window_bounds = array<i64: 1, 32>}, {pipeline_mode = #tpu.pipeline_mode<synchronous>, transform_indices = @transform_17, window_bounds = array<i64: 32, 64>}, {pipeline_mode = #tpu.pipeline_mode<synchronous>, transform_indices = @transform_18, window_bounds = array<i64: 1, 64>}, {pipeline_mode = #tpu.pipeline_mode<synchronous>, transform_indices = @transform_19, window_bounds = array<i64: 64, 32>}, {pipeline_mode = #tpu.pipeline_mode<synchronous>, transform_indices = @transform_20, window_bounds = array<i64: 1, 32>}, {pipeline_mode = #tpu.pipeline_mode<synchronous>, transform_indices = @transform_21, window_bounds = array<i64: 1, 32>}, {pipeline_mode = #tpu.pipeline_mode<synchronous>, transform_indices = @transform_22, window_bounds = array<i64: 1, 32>}, {pipeline_mode = #tpu.pipeline_mode<synchronous>, transform_indices = @transform_23, window_bounds = array<i64: 2, 8, 32>}]} {
    %c0 = arith.constant 0 : index
    %c0_0 = arith.constant 0 : index
    %c0_1 = arith.constant 0 : index
    %0 = vector.load %arg1[%c0, %c0_0, %c0_1] : memref<2x8x32xf32, #tpu.memory_space<vmem>>, vector<2x8x32xf32>
    %1 = vector.shape_cast %0 : vector<2x8x32xf32> to vector<16x32xf32>
    %c0_2 = arith.constant 0 : index
    %c0_3 = arith.constant 0 : index
    %c0_4 = arith.constant 0 : index
    %2 = vector.load %arg2[%c0_2, %c0_3, %c0_4] : memref<2x8x32xf32, #tpu.memory_space<vmem>>, vector<2x8x32xf32>
    %3 = vector.shape_cast %2 : vector<2x8x32xf32> to vector<16x32xf32>
    %4 = arith.truncf %1 : vector<16x32xf32> to vector<16x32xbf16>
    %c0_5 = arith.constant 0 : index
    %c0_6 = arith.constant 0 : index
    %5 = vector.load %arg4[%c0_5, %c0_6] : memref<32x96xbf16, #tpu.memory_space<vmem>>, vector<32x96xbf16>
    %cst = arith.constant dense<0.000000e+00> : vector<16x96xf32>
    %6 = tpu.matmul %4, %5, %cst {dimension_numbers = #tpu.dot_dimension_numbers<[1], [0], [0], [1], [0, 0, 1, 1], [], []>} : vector<16x32xbf16>, vector<32x96xbf16>, vector<16x96xf32> -> vector<16x96xf32>
    %c0_7 = arith.constant 0 : index
    %c0_8 = arith.constant 0 : index
    %7 = vector.load %arg5[%c0_7, %c0_8] : memref<1x96xf32, #tpu.memory_space<vmem>>, vector<1x96xf32>
    %8 = vector.broadcast %7 : vector<1x96xf32> to vector<16x96xf32>
    %9 = arith.addf %6, %8 : vector<16x96xf32>
    %10 = vector.extract_strided_slice %9 {offsets = [0, 0], sizes = [16, 32], strides = [1, 1]} : vector<16x96xf32> to vector<16x32xf32>
    %11 = vector.shape_cast %10 : vector<16x32xf32> to vector<2x8x32xf32>
    %12 = vector.extract_strided_slice %9 {offsets = [0, 32], sizes = [16, 32], strides = [1, 1]} : vector<16x96xf32> to vector<16x32xf32>
    %13 = vector.shape_cast %12 : vector<16x32xf32> to vector<2x8x32xf32>
    %14 = vector.extract_strided_slice %9 {offsets = [0, 64], sizes = [16, 32], strides = [1, 1]} : vector<16x96xf32> to vector<16x32xf32>
    %15 = vector.shape_cast %14 : vector<16x32xf32> to vector<2x8x32xf32>
    %c0_9 = arith.constant 0 : index
    %c0_10 = arith.constant 0 : index
    %16 = vector.load %arg3[%c0_9, %c0_10] : memref<8x8xf32, #tpu.memory_space<vmem>>, vector<8x8xf32>
    %c0_11 = arith.constant 0 : index
    %c0_12 = arith.constant 0 : index
    %17 = vector.load %arg6[%c0_11, %c0_12] : memref<32x32xbf16, #tpu.memory_space<vmem>>, vector<32x32xbf16>
    %c0_13 = arith.constant 0 : index
    %c0_14 = arith.constant 0 : index
    %18 = vector.load %arg7[%c0_13, %c0_14] : memref<1x32xf32, #tpu.memory_space<vmem>>, vector<1x32xf32>
    %19 = arith.truncf %11 : vector<2x8x32xf32> to vector<2x8x32xbf16>
    %20 = arith.truncf %13 : vector<2x8x32xf32> to vector<2x8x32xbf16>
    %21 = arith.truncf %15 : vector<2x8x32xf32> to vector<2x8x32xbf16>
    %22 = vector.extract_strided_slice %19 {offsets = [0, 0, 0], sizes = [2, 8, 8], strides = [1, 1, 1]} : vector<2x8x32xbf16> to vector<2x8x8xbf16>
    %23 = vector.extract_strided_slice %20 {offsets = [0, 0, 0], sizes = [2, 8, 8], strides = [1, 1, 1]} : vector<2x8x32xbf16> to vector<2x8x8xbf16>
    "tpu.trace_start"() <{level = 10 : i32, message = "bqd,bkd->bqk"}> : () -> ()
    %cst_15 = arith.constant dense<0.000000e+00> : vector<2x8x8xf32>
    %24 = tpu.matmul %22, %23, %cst_15 {dimension_numbers = #tpu.dot_dimension_numbers<[2], [2], [1], [1], [0, 0, 0, 1, 1, 1], [0], [0]>} : vector<2x8x8xbf16>, vector<2x8x8xbf16>, vector<2x8x8xf32> -> vector<2x8x8xf32>
    "tpu.trace_stop"() : () -> ()
    %cst_16 = arith.constant 0.353553385 : f32
    %25 = vector.broadcast %cst_16 : f32 to vector<2x8x8xf32>
    %26 = arith.mulf %24, %25 : vector<2x8x8xf32>
    %27 = vector.shape_cast %16 : vector<8x8xf32> to vector<1x8x8xf32>
    %28 = vector.broadcast %27 : vector<1x8x8xf32> to vector<2x8x8xf32>
    %29 = arith.addf %26, %28 : vector<2x8x8xf32>
    %cst_17 = arith.constant dense<0xFF800000> : vector<2x8xf32>
    %30 = vector.multi_reduction <maximumf>, %29, %cst_17 [2] : vector<2x8x8xf32> to vector<2x8xf32>
    %31 = vector.shape_cast %30 : vector<2x8xf32> to vector<2x8x1xf32>
    %32 = vector.broadcast %31 : vector<2x8x1xf32> to vector<2x8x8xf32>
    %33 = arith.subf %29, %32 : vector<2x8x8xf32>
    %34 = math.exp %33 : vector<2x8x8xf32>
    %cst_18 = arith.constant dense<0.000000e+00> : vector<2x8xf32>
    %35 = vector.multi_reduction <add>, %34, %cst_18 [2] : vector<2x8x8xf32> to vector<2x8xf32>
    %36 = vector.shape_cast %35 : vector<2x8xf32> to vector<2x8x1xf32>
    %37 = tpu.reciprocal %36 {approx = true} : vector<2x8x1xf32> -> vector<2x8x1xf32>
    %38 = vector.broadcast %37 : vector<2x8x1xf32> to vector<2x8x8xf32>
    %39 = arith.mulf %34, %38 : vector<2x8x8xf32>
    %40 = arith.truncf %39 : vector<2x8x8xf32> to vector<2x8x8xbf16>
    %41 = vector.extract_strided_slice %21 {offsets = [0, 0, 0], sizes = [2, 8, 8], strides = [1, 1, 1]} : vector<2x8x32xbf16> to vector<2x8x8xbf16>
    "tpu.trace_start"() <{level = 10 : i32, message = "bqk,bkd->bqd"}> : () -> ()
    %cst_19 = arith.constant dense<0.000000e+00> : vector<2x8x8xf32>
    %42 = tpu.matmul %40, %41, %cst_19 {dimension_numbers = #tpu.dot_dimension_numbers<[2], [1], [1], [2], [0, 0, 0, 1, 1, 2], [0], [0]>} : vector<2x8x8xbf16>, vector<2x8x8xbf16>, vector<2x8x8xf32> -> vector<2x8x8xf32>
    "tpu.trace_stop"() : () -> ()
    %43 = vector.extract_strided_slice %19 {offsets = [0, 0, 8], sizes = [2, 8, 8], strides = [1, 1, 1]} : vector<2x8x32xbf16> to vector<2x8x8xbf16>
    %44 = vector.extract_strided_slice %20 {offsets = [0, 0, 8], sizes = [2, 8, 8], strides = [1, 1, 1]} : vector<2x8x32xbf16> to vector<2x8x8xbf16>
    "tpu.trace_start"() <{level = 10 : i32, message = "bqd,bkd->bqk"}> : () -> ()
    %cst_20 = arith.constant dense<0.000000e+00> : vector<2x8x8xf32>
    %45 = tpu.matmul %43, %44, %cst_20 {dimension_numbers = #tpu.dot_dimension_numbers<[2], [2], [1], [1], [0, 0, 0, 1, 1, 1], [0], [0]>} : vector<2x8x8xbf16>, vector<2x8x8xbf16>, vector<2x8x8xf32> -> vector<2x8x8xf32>
    "tpu.trace_stop"() : () -> ()
    %cst_21 = arith.constant 0.353553385 : f32
    %46 = vector.broadcast %cst_21 : f32 to vector<2x8x8xf32>
    %47 = arith.mulf %45, %46 : vector<2x8x8xf32>
    %48 = vector.shape_cast %16 : vector<8x8xf32> to vector<1x8x8xf32>
    %49 = vector.broadcast %48 : vector<1x8x8xf32> to vector<2x8x8xf32>
    %50 = arith.addf %47, %49 : vector<2x8x8xf32>
    %cst_22 = arith.constant dense<0xFF800000> : vector<2x8xf32>
    %51 = vector.multi_reduction <maximumf>, %50, %cst_22 [2] : vector<2x8x8xf32> to vector<2x8xf32>
    %52 = vector.shape_cast %51 : vector<2x8xf32> to vector<2x8x1xf32>
    %53 = vector.broadcast %52 : vector<2x8x1xf32> to vector<2x8x8xf32>
    %54 = arith.subf %50, %53 : vector<2x8x8xf32>
    %55 = math.exp %54 : vector<2x8x8xf32>
    %cst_23 = arith.constant dense<0.000000e+00> : vector<2x8xf32>
    %56 = vector.multi_reduction <add>, %55, %cst_23 [2] : vector<2x8x8xf32> to vector<2x8xf32>
    %57 = vector.shape_cast %56 : vector<2x8xf32> to vector<2x8x1xf32>
    %58 = tpu.reciprocal %57 {approx = true} : vector<2x8x1xf32> -> vector<2x8x1xf32>
    %59 = vector.broadcast %58 : vector<2x8x1xf32> to vector<2x8x8xf32>
    %60 = arith.mulf %55, %59 : vector<2x8x8xf32>
    %61 = arith.truncf %60 : vector<2x8x8xf32> to vector<2x8x8xbf16>
    %62 = vector.extract_strided_slice %21 {offsets = [0, 0, 8], sizes = [2, 8, 8], strides = [1, 1, 1]} : vector<2x8x32xbf16> to vector<2x8x8xbf16>
    "tpu.trace_start"() <{level = 10 : i32, message = "bqk,bkd->bqd"}> : () -> ()
    %cst_24 = arith.constant dense<0.000000e+00> : vector<2x8x8xf32>
    %63 = tpu.matmul %61, %62, %cst_24 {dimension_numbers = #tpu.dot_dimension_numbers<[2], [1], [1], [2], [0, 0, 0, 1, 1, 2], [0], [0]>} : vector<2x8x8xbf16>, vector<2x8x8xbf16>, vector<2x8x8xf32> -> vector<2x8x8xf32>
    "tpu.trace_stop"() : () -> ()
    %64 = vector.extract_strided_slice %19 {offsets = [0, 0, 16], sizes = [2, 8, 8], strides = [1, 1, 1]} : vector<2x8x32xbf16> to vector<2x8x8xbf16>
    %65 = vector.extract_strided_slice %20 {offsets = [0, 0, 16], sizes = [2, 8, 8], strides = [1, 1, 1]} : vector<2x8x32xbf16> to vector<2x8x8xbf16>
    "tpu.trace_start"() <{level = 10 : i32, message = "bqd,bkd->bqk"}> : () -> ()
    %cst_25 = arith.constant dense<0.000000e+00> : vector<2x8x8xf32>
    %66 = tpu.matmul %64, %65, %cst_25 {dimension_numbers = #tpu.dot_dimension_numbers<[2], [2], [1], [1], [0, 0, 0, 1, 1, 1], [0], [0]>} : vector<2x8x8xbf16>, vector<2x8x8xbf16>, vector<2x8x8xf32> -> vector<2x8x8xf32>
    "tpu.trace_stop"() : () -> ()
    %cst_26 = arith.constant 0.353553385 : f32
    %67 = vector.broadcast %cst_26 : f32 to vector<2x8x8xf32>
    %68 = arith.mulf %66, %67 : vector<2x8x8xf32>
    %69 = vector.shape_cast %16 : vector<8x8xf32> to vector<1x8x8xf32>
    %70 = vector.broadcast %69 : vector<1x8x8xf32> to vector<2x8x8xf32>
    %71 = arith.addf %68, %70 : vector<2x8x8xf32>
    %cst_27 = arith.constant dense<0xFF800000> : vector<2x8xf32>
    %72 = vector.multi_reduction <maximumf>, %71, %cst_27 [2] : vector<2x8x8xf32> to vector<2x8xf32>
    %73 = vector.shape_cast %72 : vector<2x8xf32> to vector<2x8x1xf32>
    %74 = vector.broadcast %73 : vector<2x8x1xf32> to vector<2x8x8xf32>
    %75 = arith.subf %71, %74 : vector<2x8x8xf32>
    %76 = math.exp %75 : vector<2x8x8xf32>
    %cst_28 = arith.constant dense<0.000000e+00> : vector<2x8xf32>
    %77 = vector.multi_reduction <add>, %76, %cst_28 [2] : vector<2x8x8xf32> to vector<2x8xf32>
    %78 = vector.shape_cast %77 : vector<2x8xf32> to vector<2x8x1xf32>
    %79 = tpu.reciprocal %78 {approx = true} : vector<2x8x1xf32> -> vector<2x8x1xf32>
    %80 = vector.broadcast %79 : vector<2x8x1xf32> to vector<2x8x8xf32>
    %81 = arith.mulf %76, %80 : vector<2x8x8xf32>
    %82 = arith.truncf %81 : vector<2x8x8xf32> to vector<2x8x8xbf16>
    %83 = vector.extract_strided_slice %21 {offsets = [0, 0, 16], sizes = [2, 8, 8], strides = [1, 1, 1]} : vector<2x8x32xbf16> to vector<2x8x8xbf16>
    "tpu.trace_start"() <{level = 10 : i32, message = "bqk,bkd->bqd"}> : () -> ()
    %cst_29 = arith.constant dense<0.000000e+00> : vector<2x8x8xf32>
    %84 = tpu.matmul %82, %83, %cst_29 {dimension_numbers = #tpu.dot_dimension_numbers<[2], [1], [1], [2], [0, 0, 0, 1, 1, 2], [0], [0]>} : vector<2x8x8xbf16>, vector<2x8x8xbf16>, vector<2x8x8xf32> -> vector<2x8x8xf32>
    "tpu.trace_stop"() : () -> ()
    %85 = vector.extract_strided_slice %19 {offsets = [0, 0, 24], sizes = [2, 8, 8], strides = [1, 1, 1]} : vector<2x8x32xbf16> to vector<2x8x8xbf16>
    %86 = vector.extract_strided_slice %20 {offsets = [0, 0, 24], sizes = [2, 8, 8], strides = [1, 1, 1]} : vector<2x8x32xbf16> to vector<2x8x8xbf16>
    "tpu.trace_start"() <{level = 10 : i32, message = "bqd,bkd->bqk"}> : () -> ()
    %cst_30 = arith.constant dense<0.000000e+00> : vector<2x8x8xf32>
    %87 = tpu.matmul %85, %86, %cst_30 {dimension_numbers = #tpu.dot_dimension_numbers<[2], [2], [1], [1], [0, 0, 0, 1, 1, 1], [0], [0]>} : vector<2x8x8xbf16>, vector<2x8x8xbf16>, vector<2x8x8xf32> -> vector<2x8x8xf32>
    "tpu.trace_stop"() : () -> ()
    %cst_31 = arith.constant 0.353553385 : f32
    %88 = vector.broadcast %cst_31 : f32 to vector<2x8x8xf32>
    %89 = arith.mulf %87, %88 : vector<2x8x8xf32>
    %90 = vector.shape_cast %16 : vector<8x8xf32> to vector<1x8x8xf32>
    %91 = vector.broadcast %90 : vector<1x8x8xf32> to vector<2x8x8xf32>
    %92 = arith.addf %89, %91 : vector<2x8x8xf32>
    %cst_32 = arith.constant dense<0xFF800000> : vector<2x8xf32>
    %93 = vector.multi_reduction <maximumf>, %92, %cst_32 [2] : vector<2x8x8xf32> to vector<2x8xf32>
    %94 = vector.shape_cast %93 : vector<2x8xf32> to vector<2x8x1xf32>
    %95 = vector.broadcast %94 : vector<2x8x1xf32> to vector<2x8x8xf32>
    %96 = arith.subf %92, %95 : vector<2x8x8xf32>
    %97 = math.exp %96 : vector<2x8x8xf32>
    %cst_33 = arith.constant dense<0.000000e+00> : vector<2x8xf32>
    %98 = vector.multi_reduction <add>, %97, %cst_33 [2] : vector<2x8x8xf32> to vector<2x8xf32>
    %99 = vector.shape_cast %98 : vector<2x8xf32> to vector<2x8x1xf32>
    %100 = tpu.reciprocal %99 {approx = true} : vector<2x8x1xf32> -> vector<2x8x1xf32>
    %101 = vector.broadcast %100 : vector<2x8x1xf32> to vector<2x8x8xf32>
    %102 = arith.mulf %97, %101 : vector<2x8x8xf32>
    %103 = arith.truncf %102 : vector<2x8x8xf32> to vector<2x8x8xbf16>
    %104 = vector.extract_strided_slice %21 {offsets = [0, 0, 24], sizes = [2, 8, 8], strides = [1, 1, 1]} : vector<2x8x32xbf16> to vector<2x8x8xbf16>
    "tpu.trace_start"() <{level = 10 : i32, message = "bqk,bkd->bqd"}> : () -> ()
    %cst_34 = arith.constant dense<0.000000e+00> : vector<2x8x8xf32>
    %105 = tpu.matmul %103, %104, %cst_34 {dimension_numbers = #tpu.dot_dimension_numbers<[2], [1], [1], [2], [0, 0, 0, 1, 1, 2], [0], [0]>} : vector<2x8x8xbf16>, vector<2x8x8xbf16>, vector<2x8x8xf32> -> vector<2x8x8xf32>
    "tpu.trace_stop"() : () -> ()
    %106 = tpu.concatenate %42, %63, %84, %105 in 2 : vector<2x8x8xf32>, vector<2x8x8xf32>, vector<2x8x8xf32>, vector<2x8x8xf32> -> vector<2x8x32xf32>
    %107 = vector.shape_cast %106 : vector<2x8x32xf32> to vector<16x32xf32>
    %108 = arith.truncf %107 : vector<16x32xf32> to vector<16x32xbf16>
    %cst_35 = arith.constant dense<0.000000e+00> : vector<16x32xf32>
    %109 = tpu.matmul %108, %17, %cst_35 {dimension_numbers = #tpu.dot_dimension_numbers<[1], [0], [0], [1], [0, 0, 1, 1], [], []>} : vector<16x32xbf16>, vector<32x32xbf16>, vector<16x32xf32> -> vector<16x32xf32>
    %110 = vector.broadcast %18 : vector<1x32xf32> to vector<16x32xf32>
    %111 = arith.addf %109, %110 : vector<16x32xf32>
    %112 = arith.addf %1, %111 : vector<16x32xf32>
    %c0_36 = arith.constant 0 : index
    %c0_37 = arith.constant 0 : index
    %113 = vector.load %arg8[%c0_36, %c0_37] : memref<1x32xf32, #tpu.memory_space<vmem>>, vector<1x32xf32>
    %c0_38 = arith.constant 0 : index
    %c0_39 = arith.constant 0 : index
    %114 = vector.load %arg9[%c0_38, %c0_39] : memref<1x32xf32, #tpu.memory_space<vmem>>, vector<1x32xf32>
    %cst_40 = arith.constant dense<0.000000e+00> : vector<16xf32>
    %115 = vector.multi_reduction <add>, %112, %cst_40 [1] : vector<16x32xf32> to vector<16xf32>
    %116 = vector.shape_cast %115 : vector<16xf32> to vector<16x1xf32>
    %cst_41 = arith.constant 3.200000e+01 : f32
    %117 = vector.broadcast %cst_41 : f32 to vector<16x1xf32>
    %118 = arith.divf %116, %117 : vector<16x1xf32>
    %119 = vector.broadcast %118 : vector<16x1xf32> to vector<16x32xf32>
    %120 = arith.subf %112, %119 : vector<16x32xf32>
    %121 = arith.mulf %120, %120 : vector<16x32xf32>
    %cst_42 = arith.constant dense<0.000000e+00> : vector<16xf32>
    %122 = vector.multi_reduction <add>, %121, %cst_42 [1] : vector<16x32xf32> to vector<16xf32>
    %123 = vector.shape_cast %122 : vector<16xf32> to vector<16x1xf32>
    %cst_43 = arith.constant 3.200000e+01 : f32
    %124 = vector.broadcast %cst_43 : f32 to vector<16x1xf32>
    %125 = arith.divf %123, %124 : vector<16x1xf32>
    %cst_44 = arith.constant 9.99999974E-6 : f32
    %126 = vector.broadcast %cst_44 : f32 to vector<16x1xf32>
    %127 = arith.addf %125, %126 : vector<16x1xf32>
    %128 = math.rsqrt %127 : vector<16x1xf32>
    %129 = vector.broadcast %128 : vector<16x1xf32> to vector<16x32xf32>
    %130 = arith.mulf %120, %129 : vector<16x32xf32>
    %131 = vector.broadcast %113 : vector<1x32xf32> to vector<16x32xf32>
    %132 = arith.mulf %130, %131 : vector<16x32xf32>
    %133 = vector.broadcast %114 : vector<1x32xf32> to vector<16x32xf32>
    %134 = arith.addf %132, %133 : vector<16x32xf32>
    %135 = arith.truncf %134 : vector<16x32xf32> to vector<16x32xbf16>
    %c0_45 = arith.constant 0 : index
    %c0_46 = arith.constant 0 : index
    %136 = vector.load %arg10[%c0_45, %c0_46] : memref<32x32xbf16, #tpu.memory_space<vmem>>, vector<32x32xbf16>
    %cst_47 = arith.constant dense<0.000000e+00> : vector<16x32xf32>
    %137 = tpu.matmul %135, %136, %cst_47 {dimension_numbers = #tpu.dot_dimension_numbers<[1], [0], [0], [1], [0, 0, 1, 1], [], []>} : vector<16x32xbf16>, vector<32x32xbf16>, vector<16x32xf32> -> vector<16x32xf32>
    %c0_48 = arith.constant 0 : index
    %c0_49 = arith.constant 0 : index
    %138 = vector.load %arg11[%c0_48, %c0_49] : memref<1x32xf32, #tpu.memory_space<vmem>>, vector<1x32xf32>
    %139 = vector.broadcast %138 : vector<1x32xf32> to vector<16x32xf32>
    %140 = arith.addf %137, %139 : vector<16x32xf32>
    %141 = vector.shape_cast %140 : vector<16x32xf32> to vector<2x8x32xf32>
    %142 = arith.truncf %3 : vector<16x32xf32> to vector<16x32xbf16>
    %c0_50 = arith.constant 0 : index
    %c0_51 = arith.constant 0 : index
    %143 = vector.load %arg12[%c0_50, %c0_51] : memref<32x64xbf16, #tpu.memory_space<vmem>>, vector<32x64xbf16>
    %cst_52 = arith.constant dense<0.000000e+00> : vector<16x64xf32>
    %144 = tpu.matmul %142, %143, %cst_52 {dimension_numbers = #tpu.dot_dimension_numbers<[1], [0], [0], [1], [0, 0, 1, 1], [], []>} : vector<16x32xbf16>, vector<32x64xbf16>, vector<16x64xf32> -> vector<16x64xf32>
    %c0_53 = arith.constant 0 : index
    %c0_54 = arith.constant 0 : index
    %145 = vector.load %arg13[%c0_53, %c0_54] : memref<1x64xf32, #tpu.memory_space<vmem>>, vector<1x64xf32>
    %146 = vector.broadcast %145 : vector<1x64xf32> to vector<16x64xf32>
    %147 = arith.addf %144, %146 : vector<16x64xf32>
    %148 = vector.extract_strided_slice %147 {offsets = [0, 0], sizes = [16, 32], strides = [1, 1]} : vector<16x64xf32> to vector<16x32xf32>
    %149 = vector.shape_cast %148 : vector<16x32xf32> to vector<2x8x32xf32>
    %150 = vector.extract_strided_slice %147 {offsets = [0, 32], sizes = [16, 32], strides = [1, 1]} : vector<16x64xf32> to vector<16x32xf32>
    %151 = vector.shape_cast %150 : vector<16x32xf32> to vector<2x8x32xf32>
    %c0_55 = arith.constant 0 : index
    %c0_56 = arith.constant 0 : index
    %152 = vector.load %arg14[%c0_55, %c0_56] : memref<32x32xbf16, #tpu.memory_space<vmem>>, vector<32x32xbf16>
    %c0_57 = arith.constant 0 : index
    %c0_58 = arith.constant 0 : index
    %153 = vector.load %arg15[%c0_57, %c0_58] : memref<1x32xf32, #tpu.memory_space<vmem>>, vector<1x32xf32>
    %154 = arith.truncf %141 : vector<2x8x32xf32> to vector<2x8x32xbf16>
    %155 = arith.truncf %149 : vector<2x8x32xf32> to vector<2x8x32xbf16>
    %156 = arith.truncf %151 : vector<2x8x32xf32> to vector<2x8x32xbf16>
    %157 = vector.extract_strided_slice %154 {offsets = [0, 0, 0], sizes = [2, 8, 8], strides = [1, 1, 1]} : vector<2x8x32xbf16> to vector<2x8x8xbf16>
    %158 = vector.extract_strided_slice %155 {offsets = [0, 0, 0], sizes = [2, 8, 8], strides = [1, 1, 1]} : vector<2x8x32xbf16> to vector<2x8x8xbf16>
    "tpu.trace_start"() <{level = 10 : i32, message = "bqd,bkd->bqk"}> : () -> ()
    %cst_59 = arith.constant dense<0.000000e+00> : vector<2x8x8xf32>
    %159 = tpu.matmul %157, %158, %cst_59 {dimension_numbers = #tpu.dot_dimension_numbers<[2], [2], [1], [1], [0, 0, 0, 1, 1, 1], [0], [0]>} : vector<2x8x8xbf16>, vector<2x8x8xbf16>, vector<2x8x8xf32> -> vector<2x8x8xf32>
    "tpu.trace_stop"() : () -> ()
    %cst_60 = arith.constant 0.353553385 : f32
    %160 = vector.broadcast %cst_60 : f32 to vector<2x8x8xf32>
    %161 = arith.mulf %159, %160 : vector<2x8x8xf32>
    %cst_61 = arith.constant dense<0xFF800000> : vector<2x8xf32>
    %162 = vector.multi_reduction <maximumf>, %161, %cst_61 [2] : vector<2x8x8xf32> to vector<2x8xf32>
    %163 = vector.shape_cast %162 : vector<2x8xf32> to vector<2x8x1xf32>
    %164 = vector.broadcast %163 : vector<2x8x1xf32> to vector<2x8x8xf32>
    %165 = arith.subf %161, %164 : vector<2x8x8xf32>
    %166 = math.exp %165 : vector<2x8x8xf32>
    %cst_62 = arith.constant dense<0.000000e+00> : vector<2x8xf32>
    %167 = vector.multi_reduction <add>, %166, %cst_62 [2] : vector<2x8x8xf32> to vector<2x8xf32>
    %168 = vector.shape_cast %167 : vector<2x8xf32> to vector<2x8x1xf32>
    %169 = tpu.reciprocal %168 {approx = true} : vector<2x8x1xf32> -> vector<2x8x1xf32>
    %170 = vector.broadcast %169 : vector<2x8x1xf32> to vector<2x8x8xf32>
    %171 = arith.mulf %166, %170 : vector<2x8x8xf32>
    %172 = arith.truncf %171 : vector<2x8x8xf32> to vector<2x8x8xbf16>
    %173 = vector.extract_strided_slice %156 {offsets = [0, 0, 0], sizes = [2, 8, 8], strides = [1, 1, 1]} : vector<2x8x32xbf16> to vector<2x8x8xbf16>
    "tpu.trace_start"() <{level = 10 : i32, message = "bqk,bkd->bqd"}> : () -> ()
    %cst_63 = arith.constant dense<0.000000e+00> : vector<2x8x8xf32>
    %174 = tpu.matmul %172, %173, %cst_63 {dimension_numbers = #tpu.dot_dimension_numbers<[2], [1], [1], [2], [0, 0, 0, 1, 1, 2], [0], [0]>} : vector<2x8x8xbf16>, vector<2x8x8xbf16>, vector<2x8x8xf32> -> vector<2x8x8xf32>
    "tpu.trace_stop"() : () -> ()
    %175 = vector.extract_strided_slice %154 {offsets = [0, 0, 8], sizes = [2, 8, 8], strides = [1, 1, 1]} : vector<2x8x32xbf16> to vector<2x8x8xbf16>
    %176 = vector.extract_strided_slice %155 {offsets = [0, 0, 8], sizes = [2, 8, 8], strides = [1, 1, 1]} : vector<2x8x32xbf16> to vector<2x8x8xbf16>
    "tpu.trace_start"() <{level = 10 : i32, message = "bqd,bkd->bqk"}> : () -> ()
    %cst_64 = arith.constant dense<0.000000e+00> : vector<2x8x8xf32>
    %177 = tpu.matmul %175, %176, %cst_64 {dimension_numbers = #tpu.dot_dimension_numbers<[2], [2], [1], [1], [0, 0, 0, 1, 1, 1], [0], [0]>} : vector<2x8x8xbf16>, vector<2x8x8xbf16>, vector<2x8x8xf32> -> vector<2x8x8xf32>
    "tpu.trace_stop"() : () -> ()
    %cst_65 = arith.constant 0.353553385 : f32
    %178 = vector.broadcast %cst_65 : f32 to vector<2x8x8xf32>
    %179 = arith.mulf %177, %178 : vector<2x8x8xf32>
    %cst_66 = arith.constant dense<0xFF800000> : vector<2x8xf32>
    %180 = vector.multi_reduction <maximumf>, %179, %cst_66 [2] : vector<2x8x8xf32> to vector<2x8xf32>
    %181 = vector.shape_cast %180 : vector<2x8xf32> to vector<2x8x1xf32>
    %182 = vector.broadcast %181 : vector<2x8x1xf32> to vector<2x8x8xf32>
    %183 = arith.subf %179, %182 : vector<2x8x8xf32>
    %184 = math.exp %183 : vector<2x8x8xf32>
    %cst_67 = arith.constant dense<0.000000e+00> : vector<2x8xf32>
    %185 = vector.multi_reduction <add>, %184, %cst_67 [2] : vector<2x8x8xf32> to vector<2x8xf32>
    %186 = vector.shape_cast %185 : vector<2x8xf32> to vector<2x8x1xf32>
    %187 = tpu.reciprocal %186 {approx = true} : vector<2x8x1xf32> -> vector<2x8x1xf32>
    %188 = vector.broadcast %187 : vector<2x8x1xf32> to vector<2x8x8xf32>
    %189 = arith.mulf %184, %188 : vector<2x8x8xf32>
    %190 = arith.truncf %189 : vector<2x8x8xf32> to vector<2x8x8xbf16>
    %191 = vector.extract_strided_slice %156 {offsets = [0, 0, 8], sizes = [2, 8, 8], strides = [1, 1, 1]} : vector<2x8x32xbf16> to vector<2x8x8xbf16>
    "tpu.trace_start"() <{level = 10 : i32, message = "bqk,bkd->bqd"}> : () -> ()
    %cst_68 = arith.constant dense<0.000000e+00> : vector<2x8x8xf32>
    %192 = tpu.matmul %190, %191, %cst_68 {dimension_numbers = #tpu.dot_dimension_numbers<[2], [1], [1], [2], [0, 0, 0, 1, 1, 2], [0], [0]>} : vector<2x8x8xbf16>, vector<2x8x8xbf16>, vector<2x8x8xf32> -> vector<2x8x8xf32>
    "tpu.trace_stop"() : () -> ()
    %193 = vector.extract_strided_slice %154 {offsets = [0, 0, 16], sizes = [2, 8, 8], strides = [1, 1, 1]} : vector<2x8x32xbf16> to vector<2x8x8xbf16>
    %194 = vector.extract_strided_slice %155 {offsets = [0, 0, 16], sizes = [2, 8, 8], strides = [1, 1, 1]} : vector<2x8x32xbf16> to vector<2x8x8xbf16>
    "tpu.trace_start"() <{level = 10 : i32, message = "bqd,bkd->bqk"}> : () -> ()
    %cst_69 = arith.constant dense<0.000000e+00> : vector<2x8x8xf32>
    %195 = tpu.matmul %193, %194, %cst_69 {dimension_numbers = #tpu.dot_dimension_numbers<[2], [2], [1], [1], [0, 0, 0, 1, 1, 1], [0], [0]>} : vector<2x8x8xbf16>, vector<2x8x8xbf16>, vector<2x8x8xf32> -> vector<2x8x8xf32>
    "tpu.trace_stop"() : () -> ()
    %cst_70 = arith.constant 0.353553385 : f32
    %196 = vector.broadcast %cst_70 : f32 to vector<2x8x8xf32>
    %197 = arith.mulf %195, %196 : vector<2x8x8xf32>
    %cst_71 = arith.constant dense<0xFF800000> : vector<2x8xf32>
    %198 = vector.multi_reduction <maximumf>, %197, %cst_71 [2] : vector<2x8x8xf32> to vector<2x8xf32>
    %199 = vector.shape_cast %198 : vector<2x8xf32> to vector<2x8x1xf32>
    %200 = vector.broadcast %199 : vector<2x8x1xf32> to vector<2x8x8xf32>
    %201 = arith.subf %197, %200 : vector<2x8x8xf32>
    %202 = math.exp %201 : vector<2x8x8xf32>
    %cst_72 = arith.constant dense<0.000000e+00> : vector<2x8xf32>
    %203 = vector.multi_reduction <add>, %202, %cst_72 [2] : vector<2x8x8xf32> to vector<2x8xf32>
    %204 = vector.shape_cast %203 : vector<2x8xf32> to vector<2x8x1xf32>
    %205 = tpu.reciprocal %204 {approx = true} : vector<2x8x1xf32> -> vector<2x8x1xf32>
    %206 = vector.broadcast %205 : vector<2x8x1xf32> to vector<2x8x8xf32>
    %207 = arith.mulf %202, %206 : vector<2x8x8xf32>
    %208 = arith.truncf %207 : vector<2x8x8xf32> to vector<2x8x8xbf16>
    %209 = vector.extract_strided_slice %156 {offsets = [0, 0, 16], sizes = [2, 8, 8], strides = [1, 1, 1]} : vector<2x8x32xbf16> to vector<2x8x8xbf16>
    "tpu.trace_start"() <{level = 10 : i32, message = "bqk,bkd->bqd"}> : () -> ()
    %cst_73 = arith.constant dense<0.000000e+00> : vector<2x8x8xf32>
    %210 = tpu.matmul %208, %209, %cst_73 {dimension_numbers = #tpu.dot_dimension_numbers<[2], [1], [1], [2], [0, 0, 0, 1, 1, 2], [0], [0]>} : vector<2x8x8xbf16>, vector<2x8x8xbf16>, vector<2x8x8xf32> -> vector<2x8x8xf32>
    "tpu.trace_stop"() : () -> ()
    %211 = vector.extract_strided_slice %154 {offsets = [0, 0, 24], sizes = [2, 8, 8], strides = [1, 1, 1]} : vector<2x8x32xbf16> to vector<2x8x8xbf16>
    %212 = vector.extract_strided_slice %155 {offsets = [0, 0, 24], sizes = [2, 8, 8], strides = [1, 1, 1]} : vector<2x8x32xbf16> to vector<2x8x8xbf16>
    "tpu.trace_start"() <{level = 10 : i32, message = "bqd,bkd->bqk"}> : () -> ()
    %cst_74 = arith.constant dense<0.000000e+00> : vector<2x8x8xf32>
    %213 = tpu.matmul %211, %212, %cst_74 {dimension_numbers = #tpu.dot_dimension_numbers<[2], [2], [1], [1], [0, 0, 0, 1, 1, 1], [0], [0]>} : vector<2x8x8xbf16>, vector<2x8x8xbf16>, vector<2x8x8xf32> -> vector<2x8x8xf32>
    "tpu.trace_stop"() : () -> ()
    %cst_75 = arith.constant 0.353553385 : f32
    %214 = vector.broadcast %cst_75 : f32 to vector<2x8x8xf32>
    %215 = arith.mulf %213, %214 : vector<2x8x8xf32>
    %cst_76 = arith.constant dense<0xFF800000> : vector<2x8xf32>
    %216 = vector.multi_reduction <maximumf>, %215, %cst_76 [2] : vector<2x8x8xf32> to vector<2x8xf32>
    %217 = vector.shape_cast %216 : vector<2x8xf32> to vector<2x8x1xf32>
    %218 = vector.broadcast %217 : vector<2x8x1xf32> to vector<2x8x8xf32>
    %219 = arith.subf %215, %218 : vector<2x8x8xf32>
    %220 = math.exp %219 : vector<2x8x8xf32>
    %cst_77 = arith.constant dense<0.000000e+00> : vector<2x8xf32>
    %221 = vector.multi_reduction <add>, %220, %cst_77 [2] : vector<2x8x8xf32> to vector<2x8xf32>
    %222 = vector.shape_cast %221 : vector<2x8xf32> to vector<2x8x1xf32>
    %223 = tpu.reciprocal %222 {approx = true} : vector<2x8x1xf32> -> vector<2x8x1xf32>
    %224 = vector.broadcast %223 : vector<2x8x1xf32> to vector<2x8x8xf32>
    %225 = arith.mulf %220, %224 : vector<2x8x8xf32>
    %226 = arith.truncf %225 : vector<2x8x8xf32> to vector<2x8x8xbf16>
    %227 = vector.extract_strided_slice %156 {offsets = [0, 0, 24], sizes = [2, 8, 8], strides = [1, 1, 1]} : vector<2x8x32xbf16> to vector<2x8x8xbf16>
    "tpu.trace_start"() <{level = 10 : i32, message = "bqk,bkd->bqd"}> : () -> ()
    %cst_78 = arith.constant dense<0.000000e+00> : vector<2x8x8xf32>
    %228 = tpu.matmul %226, %227, %cst_78 {dimension_numbers = #tpu.dot_dimension_numbers<[2], [1], [1], [2], [0, 0, 0, 1, 1, 2], [0], [0]>} : vector<2x8x8xbf16>, vector<2x8x8xbf16>, vector<2x8x8xf32> -> vector<2x8x8xf32>
    "tpu.trace_stop"() : () -> ()
    %229 = tpu.concatenate %174, %192, %210, %228 in 2 : vector<2x8x8xf32>, vector<2x8x8xf32>, vector<2x8x8xf32>, vector<2x8x8xf32> -> vector<2x8x32xf32>
    %230 = vector.shape_cast %229 : vector<2x8x32xf32> to vector<16x32xf32>
    %231 = arith.truncf %230 : vector<16x32xf32> to vector<16x32xbf16>
    %cst_79 = arith.constant dense<0.000000e+00> : vector<16x32xf32>
    %232 = tpu.matmul %231, %152, %cst_79 {dimension_numbers = #tpu.dot_dimension_numbers<[1], [0], [0], [1], [0, 0, 1, 1], [], []>} : vector<16x32xbf16>, vector<32x32xbf16>, vector<16x32xf32> -> vector<16x32xf32>
    %233 = vector.broadcast %153 : vector<1x32xf32> to vector<16x32xf32>
    %234 = arith.addf %232, %233 : vector<16x32xf32>
    %235 = arith.addf %134, %234 : vector<16x32xf32>
    %c0_80 = arith.constant 0 : index
    %c0_81 = arith.constant 0 : index
    %236 = vector.load %arg16[%c0_80, %c0_81] : memref<1x32xf32, #tpu.memory_space<vmem>>, vector<1x32xf32>
    %c0_82 = arith.constant 0 : index
    %c0_83 = arith.constant 0 : index
    %237 = vector.load %arg17[%c0_82, %c0_83] : memref<1x32xf32, #tpu.memory_space<vmem>>, vector<1x32xf32>
    %cst_84 = arith.constant dense<0.000000e+00> : vector<16xf32>
    %238 = vector.multi_reduction <add>, %235, %cst_84 [1] : vector<16x32xf32> to vector<16xf32>
    %239 = vector.shape_cast %238 : vector<16xf32> to vector<16x1xf32>
    %cst_85 = arith.constant 3.200000e+01 : f32
    %240 = vector.broadcast %cst_85 : f32 to vector<16x1xf32>
    %241 = arith.divf %239, %240 : vector<16x1xf32>
    %242 = vector.broadcast %241 : vector<16x1xf32> to vector<16x32xf32>
    %243 = arith.subf %235, %242 : vector<16x32xf32>
    %244 = arith.mulf %243, %243 : vector<16x32xf32>
    %cst_86 = arith.constant dense<0.000000e+00> : vector<16xf32>
    %245 = vector.multi_reduction <add>, %244, %cst_86 [1] : vector<16x32xf32> to vector<16xf32>
    %246 = vector.shape_cast %245 : vector<16xf32> to vector<16x1xf32>
    %cst_87 = arith.constant 3.200000e+01 : f32
    %247 = vector.broadcast %cst_87 : f32 to vector<16x1xf32>
    %248 = arith.divf %246, %247 : vector<16x1xf32>
    %cst_88 = arith.constant 9.99999974E-6 : f32
    %249 = vector.broadcast %cst_88 : f32 to vector<16x1xf32>
    %250 = arith.addf %248, %249 : vector<16x1xf32>
    %251 = math.rsqrt %250 : vector<16x1xf32>
    %252 = vector.broadcast %251 : vector<16x1xf32> to vector<16x32xf32>
    %253 = arith.mulf %243, %252 : vector<16x32xf32>
    %254 = vector.broadcast %236 : vector<1x32xf32> to vector<16x32xf32>
    %255 = arith.mulf %253, %254 : vector<16x32xf32>
    %256 = vector.broadcast %237 : vector<1x32xf32> to vector<16x32xf32>
    %257 = arith.addf %255, %256 : vector<16x32xf32>
    %258 = arith.truncf %257 : vector<16x32xf32> to vector<16x32xbf16>
    %c0_89 = arith.constant 0 : index
    %c0_90 = arith.constant 0 : index
    %259 = vector.load %arg18[%c0_89, %c0_90] : memref<32x64xbf16, #tpu.memory_space<vmem>>, vector<32x64xbf16>
    %cst_91 = arith.constant dense<0.000000e+00> : vector<16x64xf32>
    %260 = tpu.matmul %258, %259, %cst_91 {dimension_numbers = #tpu.dot_dimension_numbers<[1], [0], [0], [1], [0, 0, 1, 1], [], []>} : vector<16x32xbf16>, vector<32x64xbf16>, vector<16x64xf32> -> vector<16x64xf32>
    %c0_92 = arith.constant 0 : index
    %c0_93 = arith.constant 0 : index
    %261 = vector.load %arg19[%c0_92, %c0_93] : memref<1x64xf32, #tpu.memory_space<vmem>>, vector<1x64xf32>
    %262 = vector.broadcast %261 : vector<1x64xf32> to vector<16x64xf32>
    %263 = arith.addf %260, %262 : vector<16x64xf32>
    %cst_94 = arith.constant 0.000000e+00 : f32
    %264 = vector.broadcast %cst_94 : f32 to vector<16x64xf32>
    %265 = arith.maximumf %263, %264 : vector<16x64xf32>
    %266 = arith.truncf %265 : vector<16x64xf32> to vector<16x64xbf16>
    %c0_95 = arith.constant 0 : index
    %c0_96 = arith.constant 0 : index
    %267 = vector.load %arg20[%c0_95, %c0_96] : memref<64x32xbf16, #tpu.memory_space<vmem>>, vector<64x32xbf16>
    %cst_97 = arith.constant dense<0.000000e+00> : vector<16x32xf32>
    %268 = tpu.matmul %266, %267, %cst_97 {dimension_numbers = #tpu.dot_dimension_numbers<[1], [0], [0], [1], [0, 0, 1, 1], [], []>} : vector<16x64xbf16>, vector<64x32xbf16>, vector<16x32xf32> -> vector<16x32xf32>
    %c0_98 = arith.constant 0 : index
    %c0_99 = arith.constant 0 : index
    %269 = vector.load %arg21[%c0_98, %c0_99] : memref<1x32xf32, #tpu.memory_space<vmem>>, vector<1x32xf32>
    %270 = vector.broadcast %269 : vector<1x32xf32> to vector<16x32xf32>
    %271 = arith.addf %268, %270 : vector<16x32xf32>
    %272 = arith.addf %257, %271 : vector<16x32xf32>
    %c0_100 = arith.constant 0 : index
    %c0_101 = arith.constant 0 : index
    %273 = vector.load %arg22[%c0_100, %c0_101] : memref<1x32xf32, #tpu.memory_space<vmem>>, vector<1x32xf32>
    %c0_102 = arith.constant 0 : index
    %c0_103 = arith.constant 0 : index
    %274 = vector.load %arg23[%c0_102, %c0_103] : memref<1x32xf32, #tpu.memory_space<vmem>>, vector<1x32xf32>
    %cst_104 = arith.constant dense<0.000000e+00> : vector<16xf32>
    %275 = vector.multi_reduction <add>, %272, %cst_104 [1] : vector<16x32xf32> to vector<16xf32>
    %276 = vector.shape_cast %275 : vector<16xf32> to vector<16x1xf32>
    %cst_105 = arith.constant 3.200000e+01 : f32
    %277 = vector.broadcast %cst_105 : f32 to vector<16x1xf32>
    %278 = arith.divf %276, %277 : vector<16x1xf32>
    %279 = vector.broadcast %278 : vector<16x1xf32> to vector<16x32xf32>
    %280 = arith.subf %272, %279 : vector<16x32xf32>
    %281 = arith.mulf %280, %280 : vector<16x32xf32>
    %cst_106 = arith.constant dense<0.000000e+00> : vector<16xf32>
    %282 = vector.multi_reduction <add>, %281, %cst_106 [1] : vector<16x32xf32> to vector<16xf32>
    %283 = vector.shape_cast %282 : vector<16xf32> to vector<16x1xf32>
    %cst_107 = arith.constant 3.200000e+01 : f32
    %284 = vector.broadcast %cst_107 : f32 to vector<16x1xf32>
    %285 = arith.divf %283, %284 : vector<16x1xf32>
    %cst_108 = arith.constant 9.99999974E-6 : f32
    %286 = vector.broadcast %cst_108 : f32 to vector<16x1xf32>
    %287 = arith.addf %285, %286 : vector<16x1xf32>
    %288 = math.rsqrt %287 : vector<16x1xf32>
    %289 = vector.broadcast %288 : vector<16x1xf32> to vector<16x32xf32>
    %290 = arith.mulf %280, %289 : vector<16x32xf32>
    %291 = vector.broadcast %273 : vector<1x32xf32> to vector<16x32xf32>
    %292 = arith.mulf %290, %291 : vector<16x32xf32>
    %293 = vector.broadcast %274 : vector<1x32xf32> to vector<16x32xf32>
    %294 = arith.addf %292, %293 : vector<16x32xf32>
    %295 = vector.shape_cast %294 : vector<16x32xf32> to vector<2x8x32xf32>
    %c0_109 = arith.constant 0 : index
    %c0_110 = arith.constant 0 : index
    %c0_111 = arith.constant 0 : index
    %296 = vector.load %arg24[%c0_109, %c0_110, %c0_111] : memref<2x8x32xf32, #tpu.memory_space<vmem>>, vector<2x8x32xf32>
    tpu.vector_store %arg24[%c0_109, %c0_110, %c0_111], %295 {strides = array<i32>} : memref<2x8x32xf32, #tpu.memory_space<vmem>>, vector<2x8x32xf32>,
    return
  }
  func.func @transform_0(%arg0: i32) -> (i32, i32, i32) {
    %c0_i32 = arith.constant 0 : i32
    %c0_i32_0 = arith.constant 0 : i32
    %c0_i32_1 = arith.constant 0 : i32
    %c0_i32_2 = arith.constant 0 : i32
    return %c0_i32, %c0_i32_0, %c0_i32_1 : i32, i32, i32
  }
  func.func @transform_1(%arg0: i32) -> (i32, i32, i32) {
    %c0_i32 = arith.constant 0 : i32
    %c0_i32_0 = arith.constant 0 : i32
    %c0_i32_1 = arith.constant 0 : i32
    %c0_i32_2 = arith.constant 0 : i32
    return %c0_i32, %c0_i32_0, %c0_i32_1 : i32, i32, i32
  }
  func.func @transform_2(%arg0: i32) -> (i32, i32) {
    %c0_i32 = arith.constant 0 : i32
    %c0_i32_0 = arith.constant 0 : i32
    %c0_i32_1 = arith.constant 0 : i32
    return %c0_i32, %c0_i32_0 : i32, i32
  }
  func.func @transform_3(%arg0: i32) -> (i32, i32) {
    %c0_i32 = arith.constant 0 : i32
    %c0_i32_0 = arith.constant 0 : i32
    %c0_i32_1 = arith.constant 0 : i32
    return %c0_i32, %c0_i32_0 : i32, i32
  }
  func.func @transform_4(%arg0: i32) -> (i32, i32) {
    %c0_i32 = arith.constant 0 : i32
    %c0_i32_0 = arith.constant 0 : i32
    %c0_i32_1 = arith.constant 0 : i32
    return %c0_i32, %c0_i32_0 : i32, i32
  }
  func.func @transform_5(%arg0: i32) -> (i32, i32) {
    %c0_i32 = arith.constant 0 : i32
    %c0_i32_0 = arith.constant 0 : i32
    %c0_i32_1 = arith.constant 0 : i32
    return %c0_i32, %c0_i32_0 : i32, i32
  }
  func.func @transform_6(%arg0: i32) -> (i32, i32) {
    %c0_i32 = arith.constant 0 : i32
    %c0_i32_0 = arith.constant 0 : i32
    %c0_i32_1 = arith.constant 0 : i32
    return %c0_i32, %c0_i32_0 : i32, i32
  }
  func.func @transform_7(%arg0: i32) -> (i32, i32) {
    %c0_i32 = arith.constant 0 : i32
    %c0_i32_0 = arith.constant 0 : i32
    %c0_i32_1 = arith.constant 0 : i32
    return %c0_i32, %c0_i32_0 : i32, i32
  }
  func.func @transform_8(%arg0: i32) -> (i32, i32) {
    %c0_i32 = arith.constant 0 : i32
    %c0_i32_0 = arith.constant 0 : i32
    %c0_i32_1 = arith.constant 0 : i32
    return %c0_i32, %c0_i32_0 : i32, i32
  }
  func.func @transform_9(%arg0: i32) -> (i32, i32) {
    %c0_i32 = arith.constant 0 : i32
    %c0_i32_0 = arith.constant 0 : i32
    %c0_i32_1 = arith.constant 0 : i32
    return %c0_i32, %c0_i32_0 : i32, i32
  }
  func.func @transform_10(%arg0: i32) -> (i32, i32) {
    %c0_i32 = arith.constant 0 : i32
    %c0_i32_0 = arith.constant 0 : i32
    %c0_i32_1 = arith.constant 0 : i32
    return %c0_i32, %c0_i32_0 : i32, i32
  }
  func.func @transform_11(%arg0: i32) -> (i32, i32) {
    %c0_i32 = arith.constant 0 : i32
    %c0_i32_0 = arith.constant 0 : i32
    %c0_i32_1 = arith.constant 0 : i32
    return %c0_i32, %c0_i32_0 : i32, i32
  }
  func.func @transform_12(%arg0: i32) -> (i32, i32) {
    %c0_i32 = arith.constant 0 : i32
    %c0_i32_0 = arith.constant 0 : i32
    %c0_i32_1 = arith.constant 0 : i32
    return %c0_i32, %c0_i32_0 : i32, i32
  }
  func.func @transform_13(%arg0: i32) -> (i32, i32) {
    %c0_i32 = arith.constant 0 : i32
    %c0_i32_0 = arith.constant 0 : i32
    %c0_i32_1 = arith.constant 0 : i32
    return %c0_i32, %c0_i32_0 : i32, i32
  }
  func.func @transform_14(%arg0: i32) -> (i32, i32) {
    %c0_i32 = arith.constant 0 : i32
    %c0_i32_0 = arith.constant 0 : i32
    %c0_i32_1 = arith.constant 0 : i32
    return %c0_i32, %c0_i32_0 : i32, i32
  }
  func.func @transform_15(%arg0: i32) -> (i32, i32) {
    %c0_i32 = arith.constant 0 : i32
    %c0_i32_0 = arith.constant 0 : i32
    %c0_i32_1 = arith.constant 0 : i32
    return %c0_i32, %c0_i32_0 : i32, i32
  }
  func.func @transform_16(%arg0: i32) -> (i32, i32) {
    %c0_i32 = arith.constant 0 : i32
    %c0_i32_0 = arith.constant 0 : i32
    %c0_i32_1 = arith.constant 0 : i32
    return %c0_i32, %c0_i32_0 : i32, i32
  }
  func.func @transform_17(%arg0: i32) -> (i32, i32) {
    %c0_i32 = arith.constant 0 : i32
    %c0_i32_0 = arith.constant 0 : i32
    %c0_i32_1 = arith.constant 0 : i32
    return %c0_i32, %c0_i32_0 : i32, i32
  }
  func.func @transform_18(%arg0: i32) -> (i32, i32) {
    %c0_i32 = arith.constant 0 : i32
    %c0_i32_0 = arith.constant 0 : i32
    %c0_i32_1 = arith.constant 0 : i32
    return %c0_i32, %c0_i32_0 : i32, i32
  }
  func.func @transform_19(%arg0: i32) -> (i32, i32) {
    %c0_i32 = arith.constant 0 : i32
    %c0_i32_0 = arith.constant 0 : i32
    %c0_i32_1 = arith.constant 0 : i32
    return %c0_i32, %c0_i32_0 : i32, i32
  }
  func.func @transform_20(%arg0: i32) -> (i32, i32) {
    %c0_i32 = arith.constant 0 : i32
    %c0_i32_0 = arith.constant 0 : i32
    %c0_i32_1 = arith.constant 0 : i32
    return %c0_i32, %c0_i32_0 : i32, i32
  }
  func.func @transform_21(%arg0: i32) -> (i32, i32) {
    %c0_i32 = arith.constant 0 : i32
    %c0_i32_0 = arith.constant 0 : i32
    %c0_i32_1 = arith.constant 0 : i32
    return %c0_i32, %c0_i32_0 : i32, i32
  }
  func.func @transform_22(%arg0: i32) -> (i32, i32) {
    %c0_i32 = arith.constant 0 : i32
    %c0_i32_0 = arith.constant 0 : i32
    %c0_i32_1 = arith.constant 0 : i32
    return %c0_i32, %c0_i32_0 : i32, i32
  }
  func.func @transform_23(%arg0: i32) -> (i32, i32, i32) {
    %c0_i32 = arith.constant 0 : i32
    %c0_i32_0 = arith.constant 0 : i32
    %c0_i32_1 = arith.constant 0 : i32
    %c0_i32_2 = arith.constant 0 : i32
    return %c0_i32, %c0_i32_0, %c0_i32_1 : i32, i32, i32
  }
}

</mosaic_0001>

<bundles_post_ra>
// kernel: my_transformer.4
= control target key start
LH: loop header
LB: loop body
LE: loop exit
PB: predicated region body
PF: predicated region fallthrough
CT: control target
= control target key end

     0   :  { %v1657_v0 = vmov 0.0   ;;  %vm1658_vm0 = vmmov 0   ;;  %vm71_vm1 = vcmask 261120   ;;  %vm126_vm2 = vcmask 64512   ;;  %s1661_s17 = smov 88   ;;  %s1662_s18 = smov 120   ;;  %s1989_s1 = inlined_call_operand.vmem [shape: bf16[32,96], index: 1, kind: input, shape index: {}]   ;;  %s1990_s0 = inlined_call_operand.vmem [shape: f32[2,8,32], index: 0, kind: input, shape index: {}]   ;;  %s1991_s2 = inlined_call_operand.vmem [shape: f32[1,96], index: 2, kind: input, shape index: {}]   ;;  %s1992_s3 = inlined_call_operand.vmem [shape: bf16[32,32], index: 3, kind: input, shape index: {}]   ;;  %s1993_s4 = inlined_call_operand.vmem [shape: f32[1,32], index: 4, kind: input, shape index: {}]   ;;  %s1994_s7 = inlined_call_operand.vmem [shape: bf16[32,64], index: 7, kind: input, shape index: {}]   ;;  %s1995_s9 = inlined_call_operand.vmem [shape: bf16[64,32], index: 9, kind: input, shape index: {}]   ;;  %s1996_s5 = inlined_call_operand.vmem [shape: f32[1,32], index: 5, kind: input, shape index: {}]   ;;  %s1997_s6 = inlined_call_operand.vmem [shape: f32[1,32], index: 6, kind: input, shape index: {}]   ;;  %s1998_s8 = inlined_call_operand.vmem [shape: f32[1,64], index: 8, kind: input, shape index: {}]   ;;  %s1999_s10 = inlined_call_operand.vmem [shape: f32[1,32], index: 10, kind: input, shape index: {}]   ;;  %s2000_s11 = inlined_call_operand.vmem [shape: f32[1,32], index: 11, kind: input, shape index: {}]   ;;  %s2001_s12 = inlined_call_operand.vmem [shape: f32[1,32], index: 12, kind: input, shape index: {}]   ;;  %s2002_s13 = inlined_call_operand.vmem [shape: f32[2,8,32], index: 13, kind: output, shape index: {}]  }
   0x1   :  { %1444 = vmatprep.subr.bf16.mxu0 %v1657_v0  ;;  %v1607_v1 = vld [vmem:[%s1989_s1 + $0x8] sm:$0xff]   ;;  %1448 = vmatprep.mubr.msk.bf16.mxu0 %vm1658_vm0, %v1657_v0  ;;  %v1608_v2 = vld [vmem:[%s1989_s1] sm:$0xff]   ;;  %vm253_vm3 = vcmask 1043456   ;;  %s1663_s19 = smov 56   ;;  %s1664_s20 = smov 80   ;;  %vm1037_vm4 = vcmask 130048  }
   0x2   :  { %1452 = vmatprep.subr.bf16.mxu1 %v1657_v0  ;;  %1454 = vmatprep.mubr.msk.bf16.mxu1 %vm1658_vm0, %v1657_v0  ;;  %v1758_v3 = vld [vmem:[%s1990_s0] sm:$0xff]  ;;  %v1763_v4 = vld [vmem:[%s1990_s0 + $0x8] sm:$0xff]  ;;  %s1659_s0 = smov 96   ;;  %s1665_s21 = smov 112   ;;  %vm1040_vm5 = vcmask 195584   ;;  %vm1263_vm6 = vcmask 523264  }
   0x3   :  { %1445 = vmatpush3.bf16.msra.mxu0 %v1607_v1  ;;  %v47_v5 = vpack.c.bf16 %v1763_v4, %v1758_v3  ;;  %v1360_v6 = vld [vmem:[%s1991_s2] ss:$0 sm:$0xff]  ;;  %s1660_s2 = smov 64   ;;  %s1666_s22 = smov 48  }
   0x4   :  { %1446 = vmatprep.subr.bf16.mxu0 %v1657_v0  ;;  %s1667_s23 = smov 72   ;;  %s1668_s24 = smov 104  }
   0x5   :  { %s1669_s25 = smov 40   ;;  %s1670_s26 = smov 8  }
   0x6   :  { %s1671_s27 = smov 16   ;;  %s1672_s15 = smov 24  }
   0x7   :  { %1447 = vmatpush3.bf16.msra.mxu0 %v1608_v2 }
   0x8   :  { %1458 = vmatprep.subr.bf16.mxu0 %v1657_v0 }
   0xa   :  { %1449 = vmatmul.mubr.msk.bf16.vlgmr.msra.gmra.mxu0 %vm71_vm1, %v47_v5 }
   0xb   :  { %1460 = vmatprep.mubr.msk.bf16.mxu0 %vm1658_vm0, %v1657_v0 }
  0xca   :  { %v109_v7 = vpop.f32.mrf.mxu0 }
  0xcb   :  { %v110_v8 = vadd.f32 %v1360_v6, %v109_v7 }
  0xcc   :  { %v1450_v9 = vpop.f32.mrf.mxu0 }
  0xcd   :  { %v1775_v10 = vpack.c.bf16 %v110_v8, %v110_v8 }
  0xce   :  { %v112_v11 = vpop.f32.mrf.mxu0 }
  0xcf   :  { %v113_v12 = vadd.f32 %v1360_v6, %v112_v11  ;;  %124 = vrot.lane.b32.xlu0 %v1775_v10, %s1659_s0 }
  0xd0   :  { %v1451_v13 = vpop.f32.mrf.mxu0 }
  0xd1   :  { %v1778_v14 = vpack.c.bf16 %v113_v12, %v113_v12 }
  0xd3   :  { %174 = vrot.lane.b32.xlu0 %v1778_v14, %s1659_s0 }
 0x141   :  { %v125_v15 = vpop.permute.xlu0 %124 }
 0x142   :  { %v131_v16 = vsel %vm126_vm2, %v125_v15, 0 }
 0x143   :  { %1453 = vmatpush3.bf16.xpose.msra.mxu1 %v131_v16 }
 0x144   :  { %1464 = vmatprep.subr.bf16.mxu1 %v1657_v0 }
 0x145   :  { %v175_v17 = vpop.permute.xlu0 %174 }
 0x146   :  { %v180_v18 = vsel %vm126_vm2, %v175_v17, 0 }
 0x147   :  { %1459 = vmatpush3.bf16.xpose.msra.mxu0 %v180_v18 }
 0x148   :  { %1470 = vmatprep.subr.bf16.mxu0 %v1657_v0 }
 0x14a   :  { %1455 = vmatmul.mubr.msk.bf16.vlgmr.msra.gmra.mxu1 %vm126_vm2, %v1775_v10 }
 0x14b   :  { %1466 = vmatprep.mubr.msk.bf16.mxu1 %vm1658_vm0, %v1657_v0 }
 0x14e   :  { %1461 = vmatmul.mubr.msk.bf16.vlgmr.msra.gmra.mxu0 %vm126_vm2, %v1778_v14 }
 0x14f   :  { %1472 = vmatprep.mubr.msk.bf16.mxu0 %vm1658_vm0, %v1657_v0 }
 0x20a   :  { %v167_v19 = vpop.f32.mrf.mxu1 }
 0x20b   :  { %v222_v20 = vmul.f32 0.35355338, %v167_v19 }
 0x20c   :  { %v1456_v21 = vpop.f32.mrf.mxu1 }
 0x20d   :  { %v224_v22 = vsel %vm126_vm2, %v222_v20, -inf }
 0x20e   :  { %225 = vmax.xlane.f32.xlu1 %v224_v22  ;;  %v170_v23 = vpop.f32.mrf.mxu1  ;;  %v216_v24 = vpop.f32.mrf.mxu0 }
 0x20f   :  { %v223_v25 = vmul.f32 0.35355338, %v216_v24 }
 0x210   :  { %v1457_v26 = vpop.f32.mrf.mxu1  ;;  %v1462_v27 = vpop.f32.mrf.mxu0 }
 0x211   :  { %v227_v28 = vsel %vm126_vm2, %v223_v25, -inf }
 0x212   :  { %228 = vmax.xlane.f32.xlu1 %v227_v28  ;;  %v219_v29 = vpop.f32.mrf.mxu0 }
 0x214   :  { %v1463_v30 = vpop.f32.mrf.mxu0 }
 0x223   :  { %248 = vrot.lane.b32.xlu1 %v1775_v10, %s1660_s2 }
 0x227   :  { %297 = vrot.lane.b32.xlu1 %v1778_v14, %s1660_s2 }
 0x22b   :  { %347 = vrot.lane.b32.xlu1 %v1775_v10, %s1661_s17 }
 0x297   :  { %v226_v31 = vpop.xlane.xlu1 %225 }
 0x298   :  { %v230_v32 = vsub.f32 %v222_v20, %v226_v31 }
 0x29a   :  { %v232_v33 = vmul.f32 1.442695, %v230_v32 }
 0x29b   :  { %v229_v34 = vpop.xlane.xlu1 %228 }
 0x29c   :  { %1617 = vpow2.f32 %v232_v33  ;;  %v231_v35 = vsub.f32 %v223_v25, %v229_v34 }
 0x29e   :  { %v234_v36 = vmul.f32 1.442695, %v231_v35 }
 0x29f   :  { %v249_v37 = vpop.permute.xlu1 %248 }
 0x2a0   :  { %1619 = vpow2.f32 %v234_v36  ;;  %v255_v38 = vsel %vm253_vm3, %v249_v37, 0 }
 0x2a1   :  { %1465 = vmatpush3.bf16.msra.mxu1 %v255_v38 }
 0x2a2   :  { %1476 = vmatprep.subr.bf16.mxu1 %v1657_v0 }
 0x2a3   :  { %v298_v39 = vpop.permute.xlu1 %297 }
 0x2a4   :  { %v303_v40 = vsel %vm253_vm3, %v298_v39, 0 }
 0x2a5   :  { %1471 = vmatpush3.bf16.msra.mxu0 %v303_v40 }
 0x2a6   :  { %1482 = vmatprep.subr.bf16.mxu0 %v1657_v0 }
 0x2a7   :  { %v348_v45 = vpop.permute.xlu1 %347 }
 0x2a8   :  { %v353_v52 = vsel %vm126_vm2, %v348_v45, 0 }
 0x2a9   :  { %v1618_v41 = vpop.eup %1617 }
 0x2aa   :  { %v236_v42 = vsel %vm126_vm2, %v1618_v41, 0.0 }
 0x2ab   :  { %237 = vadd.xlane.f32.xlu0 %v236_v42 }
 0x2ad   :  { %v1620_v43 = vpop.eup %1619 }
 0x2ae   :  { %v239_v44 = vsel %vm126_vm2, %v1620_v43, 0.0 }
 0x2af   :  { %240 = vadd.xlane.f32.xlu1 %v239_v44 }
 0x2c0   :  { %397 = vrot.lane.b32.xlu1 %v1778_v14, %s1661_s17 }
 0x2c1   :  { %345 = vrot.lane.b32.xlu0 %v1775_v10, %s1662_s18 }
 0x2c4   :  { %395 = vrot.lane.b32.xlu1 %v1778_v14, %s1662_s18 }
 0x334   :  { %v238_v46 = vpop.xlane.xlu0 %237 }
 0x335   :  { %1621 = vrcp.f32 %v238_v46 }
 0x338   :  { %v241_v47 = vpop.xlane.xlu1 %240  ;;  %v346_v57 = vpop.permute.xlu0 %345 }
 0x339   :  { %1623 = vrcp.f32 %v241_v47 }
 0x33c   :  { %v398_v54 = vpop.permute.xlu1 %397 }
 0x33d   :  { %v403_v56 = vsel %vm126_vm2, %v398_v54, 0 }
 0x340   :  { %v396_v58 = vpop.permute.xlu1 %395 }
 0x342   :  { %v1622_v48 = vpop.eup %1621 }
 0x343   :  { %v244_v49 = vmul.f32 %v1622_v48, %v1618_v41 }
 0x345   :  { %v246_v50 = vpack.c.bf16 %v244_v49, %v244_v49 }
 0x346   :  { %v1624_v51 = vpop.eup %1623 }
 0x347   :  { %1467 = vmatmul.mubr.msk.bf16.vlgmr.msra.gmra.mxu1 %vm126_vm2, %v246_v50  ;;  %v245_v53 = vmul.f32 %v1624_v51, %v1620_v43 }
 0x348   :  { %1477 = vmatpush3.bf16.xpose.msra.mxu1 %v353_v52  ;;  %1478 = vmatprep.mubr.msk.bf16.mxu1 %vm1658_vm0, %v1657_v0 }
 0x349   :  { %v247_v55 = vpack.c.bf16 %v245_v53, %v245_v53  ;;  %1488 = vmatprep.subr.bf16.mxu1 %v1657_v0 }
 0x34b   :  { %1473 = vmatmul.mubr.msk.bf16.vlgmr.msra.gmra.mxu0 %vm126_vm2, %v247_v55 }
 0x34c   :  { %1483 = vmatpush3.bf16.xpose.msra.mxu0 %v403_v56  ;;  %1484 = vmatprep.mubr.msk.bf16.mxu0 %vm1658_vm0, %v1657_v0 }
 0x34d   :  { %1494 = vmatprep.subr.bf16.mxu0 %v1657_v0 }
 0x34f   :  { %1479 = vmatmul.mubr.msk.bf16.vlgmr.msra.gmra.mxu1 %vm126_vm2, %v346_v57 }
 0x350   :  { %1490 = vmatprep.mubr.msk.bf16.mxu1 %vm1658_vm0, %v1657_v0 }
 0x353   :  { %1485 = vmatmul.mubr.msk.bf16.vlgmr.msra.gmra.mxu0 %vm126_vm2, %v396_v58 }
 0x354   :  { %1496 = vmatprep.mubr.msk.bf16.mxu0 %vm1658_vm0, %v1657_v0 }
 0x407   :  { %v1823_v59 = vpop.f32.mrf.mxu1 }
 0x409   :  { %v1468_v60 = vpop.f32.mrf.mxu1 }
 0x40b   :  { %v294_v61 = vpop.f32.mrf.mxu1  ;;  %v1825_v62 = vpop.f32.mrf.mxu0 }
 0x40d   :  { %v1469_v63 = vpop.f32.mrf.mxu1  ;;  %v1474_v1 = vpop.f32.mrf.mxu0 }
 0x40f   :  { %v342_v2 = vpop.f32.mrf.mxu0  ;;  %v389_v5 = vpop.f32.mrf.mxu1 }
 0x410   :  { %v445_v6 = vmul.f32 0.35355338, %v389_v5 }
 0x411   :  { %v1475_v7 = vpop.f32.mrf.mxu0  ;;  %v1480_v8 = vpop.f32.mrf.mxu1 }
 0x412   :  { %v447_v9 = vsel %vm126_vm2, %v445_v6, -inf }
 0x413   :  { %448 = vmax.xlane.f32.xlu1 %v447_v9  ;;  %v392_v11 = vpop.f32.mrf.mxu1  ;;  %v439_v12 = vpop.f32.mrf.mxu0 }
 0x414   :  { %v446_v13 = vmul.f32 0.35355338, %v439_v12 }
 0x415   :  { %v1481_v15 = vpop.f32.mrf.mxu1  ;;  %v1486_v16 = vpop.f32.mrf.mxu0 }
 0x416   :  { %v450_v17 = vsel %vm126_vm2, %v446_v13, -inf }
 0x417   :  { %451 = vmax.xlane.f32.xlu0 %v450_v17  ;;  %v442_v18 = vpop.f32.mrf.mxu0 }
 0x419   :  { %v1487_v19 = vpop.f32.mrf.mxu0 }
 0x424   :  { %471 = vrot.lane.b32.xlu1 %v1775_v10, %s1663_s19 }
 0x428   :  { %569 = vrot.lane.b32.xlu1 %v1775_v10, %s1664_s20 }
 0x42d   :  { %519 = vrot.lane.b32.xlu0 %v1778_v14, %s1663_s19 }
 0x431   :  { %567 = vrot.lane.b32.xlu0 %v1775_v10, %s1665_s21 }
 0x49c   :  { %v449_v20 = vpop.xlane.xlu1 %448 }
 0x49d   :  { %v453_v21 = vsub.f32 %v445_v6, %v449_v20 }
 0x49f   :  { %v455_v22 = vmul.f32 1.442695, %v453_v21 }
 0x4a0   :  { %v472_v23 = vpop.permute.xlu1 %471  ;;  %v452_v24 = vpop.xlane.xlu0 %451 }
 0x4a1   :  { %1625 = vpow2.f32 %v455_v22  ;;  %v477_v25 = vsel %vm253_vm3, %v472_v23, 0  ;;  %v454_v26 = vsub.f32 %v446_v13, %v452_v24 }
 0x4a2   :  { %1489 = vmatpush3.bf16.msra.mxu1 %v477_v25 }
 0x4a3   :  { %v457_v27 = vmul.f32 1.442695, %v454_v26  ;;  %1500 = vmatprep.subr.bf16.mxu1 %v1657_v0 }
 0x4a4   :  { %v520_v28 = vpop.permute.xlu0 %519  ;;  %v570_v34 = vpop.permute.xlu1 %569 }
 0x4a5   :  { %1627 = vpow2.f32 %v457_v27  ;;  %v525_v29 = vsel %vm253_vm3, %v520_v28, 0  ;;  %v575_v41 = vsel %vm126_vm2, %v570_v34, 0 }
 0x4a6   :  { %1495 = vmatpush3.bf16.msra.mxu0 %v525_v29 }
 0x4a7   :  { %1506 = vmatprep.subr.bf16.mxu0 %v1657_v0 }
 0x4a8   :  { %v568_v46 = vpop.permute.xlu0 %567 }
 0x4ae   :  { %v1626_v30 = vpop.eup %1625 }
 0x4af   :  { %v459_v31 = vsel %vm126_vm2, %v1626_v30, 0.0 }
 0x4b0   :  { %460 = vadd.xlane.f32.xlu1 %v459_v31 }
 0x4b2   :  { %v1628_v32 = vpop.eup %1627 }
 0x4b3   :  { %v462_v33 = vsel %vm126_vm2, %v1628_v32, 0.0 }
 0x4b4   :  { %463 = vadd.xlane.f32.xlu1 %v462_v33 }
 0x4c5   :  { %619 = vrot.lane.b32.xlu1 %v1778_v14, %s1664_s20 }
 0x4c9   :  { %617 = vrot.lane.b32.xlu1 %v1778_v14, %s1665_s21 }
 0x539   :  { %v461_v35 = vpop.xlane.xlu1 %460 }
 0x53a   :  { %1629 = vrcp.f32 %v461_v35 }
 0x53d   :  { %v464_v36 = vpop.xlane.xlu1 %463 }
 0x53e   :  { %1631 = vrcp.f32 %v464_v36 }
 0x541   :  { %v620_v43 = vpop.permute.xlu1 %619 }
 0x542   :  { %v625_v45 = vsel %vm126_vm2, %v620_v43, 0 }
 0x545   :  { %v618_v47 = vpop.permute.xlu1 %617 }
 0x547   :  { %v1630_v37 = vpop.eup %1629 }
 0x548   :  { %v467_v38 = vmul.f32 %v1630_v37, %v1626_v30 }
 0x54a   :  { %v469_v39 = vpack.c.bf16 %v467_v38, %v467_v38 }
 0x54b   :  { %v1632_v40 = vpop.eup %1631 }
 0x54c   :  { %1491 = vmatmul.mubr.msk.bf16.vlgmr.msra.gmra.mxu1 %vm126_vm2, %v469_v39  ;;  %v468_v42 = vmul.f32 %v1632_v40, %v1628_v32 }
 0x54d   :  { %1501 = vmatpush3.bf16.xpose.msra.mxu1 %v575_v41  ;;  %1502 = vmatprep.mubr.msk.bf16.mxu1 %vm1658_vm0, %v1657_v0 }
 0x54e   :  { %v470_v44 = vpack.c.bf16 %v468_v42, %v468_v42  ;;  %1512 = vmatprep.subr.bf16.mxu1 %v1657_v0 }
 0x550   :  { %1497 = vmatmul.mubr.msk.bf16.vlgmr.msra.gmra.mxu0 %vm126_vm2, %v470_v44 }
 0x551   :  { %1507 = vmatpush3.bf16.xpose.msra.mxu0 %v625_v45  ;;  %1508 = vmatprep.mubr.msk.bf16.mxu0 %vm1658_vm0, %v1657_v0 }
 0x552   :  { %1518 = vmatprep.subr.bf16.mxu0 %v1657_v0 }
 0x554   :  { %1503 = vmatmul.mubr.msk.bf16.vlgmr.msra.gmra.mxu1 %vm126_vm2, %v568_v46 }
 0x555   :  { %1514 = vmatprep.mubr.msk.bf16.mxu1 %vm1658_vm0, %v1657_v0 }
 0x558   :  { %1509 = vmatmul.mubr.msk.bf16.vlgmr.msra.gmra.mxu0 %vm126_vm2, %v618_v47 }
 0x559   :  { %1520 = vmatprep.mubr.msk.bf16.mxu0 %vm1658_vm0, %v1657_v0 }
 0x60c   :  { %v1857_v48 = vpop.f32.mrf.mxu1 }
 0x60e   :  { %v1492_v49 = vpop.f32.mrf.mxu1 }
 0x610   :  { %v516_v50 = vpop.f32.mrf.mxu1  ;;  %v1859_v51 = vpop.f32.mrf.mxu0 }
 0x611   :  { %v1592_v52 = vpack.i.bf16 %v1859_v51, %v1857_v48 }
 0x612   :  { %v1493_v53 = vpop.f32.mrf.mxu1  ;;  %v1498_v54 = vpop.f32.mrf.mxu0 }
 0x614   :  { %v564_v55 = vpop.f32.mrf.mxu0  ;;  %v611_v56 = vpop.f32.mrf.mxu1 }
 0x615   :  { %v667_v57 = vmul.f32 0.35355338, %v611_v56 }
 0x616   :  { %v1499_v58 = vpop.f32.mrf.mxu0  ;;  %v1504_v60 = vpop.f32.mrf.mxu1 }
 0x617   :  { %v669_v61 = vsel %vm126_vm2, %v667_v57, -inf }
 0x618   :  { %670 = vmax.xlane.f32.xlu0 %v669_v61  ;;  %v614_v63 = vpop.f32.mrf.mxu1  ;;  %v661_v1 = vpop.f32.mrf.mxu0 }
 0x619   :  { %v668_v2 = vmul.f32 0.35355338, %v661_v1 }
 0x61a   :  { %v1505_v5 = vpop.f32.mrf.mxu1  ;;  %v1510_v6 = vpop.f32.mrf.mxu0 }
 0x61b   :  { %v672_v7 = vsel %vm126_vm2, %v668_v2, -inf }
 0x61c   :  { %673 = vmax.xlane.f32.xlu1 %v672_v7  ;;  %v664_v8 = vpop.f32.mrf.mxu0 }
 0x61e   :  { %v1511_v9 = vpop.f32.mrf.mxu0 }
 0x62d   :  { %693 = vrot.lane.b32.xlu1 %v1775_v10, %s1666_s22 }
 0x631   :  { %791 = vrot.lane.b32.xlu1 %v1775_v10, %s1667_s23 }
 0x635   :  { %841 = vrot.lane.b32.xlu1 %v1778_v14, %s1667_s23 }
 0x639   :  { %839 = vrot.lane.b32.xlu1 %v1778_v14, %s1668_s24 }
 0x6a1   :  { %v671_v11 = vpop.xlane.xlu0 %670 }
 0x6a2   :  { %v675_v12 = vsub.f32 %v667_v57, %v671_v11 }
 0x6a4   :  { %v677_v13 = vmul.f32 1.442695, %v675_v12 }
 0x6a5   :  { %v674_v15 = vpop.xlane.xlu1 %673 }
 0x6a6   :  { %1633 = vpow2.f32 %v677_v13  ;;  %v676_v16 = vsub.f32 %v668_v2, %v674_v15 }
 0x6a8   :  { %v679_v17 = vmul.f32 1.442695, %v676_v16 }
 0x6a9   :  { %v694_v18 = vpop.permute.xlu1 %693 }
 0x6aa   :  { %1635 = vpow2.f32 %v679_v17  ;;  %v699_v19 = vsel %vm253_vm3, %v694_v18, 0 }
 0x6ab   :  { %1513 = vmatpush3.bf16.msra.mxu1 %v699_v19 }
 0x6ac   :  { %1524 = vmatprep.subr.bf16.mxu1 %v1657_v0 }
 0x6ad   :  { %v792_v29 = vpop.permute.xlu1 %791 }
 0x6ae   :  { %v797_v33 = vsel %vm126_vm2, %v792_v29, 0 }
 0x6b1   :  { %v842_v35 = vpop.permute.xlu1 %841 }
 0x6b2   :  { %v847_v37 = vsel %vm126_vm2, %v842_v35, 0 }
 0x6b3   :  { %v1634_v20 = vpop.eup %1633 }
 0x6b4   :  { %v681_v21 = vsel %vm126_vm2, %v1634_v20, 0.0 }
 0x6b5   :  { %682 = vadd.xlane.f32.xlu0 %v681_v21  ;;  %v840_v39 = vpop.permute.xlu1 %839 }
 0x6b7   :  { %v1636_v22 = vpop.eup %1635 }
 0x6b8   :  { %v684_v23 = vsel %vm126_vm2, %v1636_v22, 0.0 }
 0x6b9   :  { %685 = vadd.xlane.f32.xlu0 %v684_v23 }
 0x6cf   :  { %741 = vrot.lane.b32.xlu0 %v1778_v14, %s1666_s22 }
 0x6d3   :  { %789 = vrot.lane.b32.xlu0 %v1775_v10, %s1668_s24 }
 0x73e   :  { %v683_v24 = vpop.xlane.xlu0 %682 }
 0x73f   :  { %1637 = vrcp.f32 %v683_v24  ;;  %v1609_v24 = vld [vmem:[%s1992_s3 + $0x8] sm:$0xff]  }
 0x742   :  { %v686_v25 = vpop.xlane.xlu0 %685 }
 0x743   :  { %1639 = vrcp.f32 %v686_v25  ;;  %v1610_v25 = vld [vmem:[%s1992_s3] sm:$0xff]  }
 0x746   :  { %v742_v26 = vpop.permute.xlu0 %741 }
 0x747   :  { %v747_v27 = vsel %vm253_vm3, %v742_v26, 0 }
 0x748   :  { %1519 = vmatpush3.bf16.msra.mxu0 %v747_v27 }
 0x749   :  { %1530 = vmatprep.subr.bf16.mxu0 %v1657_v0 }
 0x74a   :  { %v790_v38 = vpop.permute.xlu0 %789 }
 0x74c   :  { %v1638_v28 = vpop.eup %1637 }
 0x74d   :  { %v689_v30 = vmul.f32 %v1638_v28, %v1634_v20 }
 0x74f   :  { %v691_v31 = vpack.c.bf16 %v689_v30, %v689_v30 }
 0x750   :  { %v1640_v32 = vpop.eup %1639 }
 0x751   :  { %1515 = vmatmul.mubr.msk.bf16.vlgmr.msra.gmra.mxu1 %vm126_vm2, %v691_v31  ;;  %v690_v34 = vmul.f32 %v1640_v32, %v1636_v22 }
 0x752   :  { %1525 = vmatpush3.bf16.xpose.msra.mxu1 %v797_v33  ;;  %1526 = vmatprep.mubr.msk.bf16.mxu1 %vm1658_vm0, %v1657_v0 }
 0x753   :  { %v692_v36 = vpack.c.bf16 %v690_v34, %v690_v34  ;;  %1536 = vmatprep.subr.bf16.mxu1 %v1657_v0 }
 0x755   :  { %1521 = vmatmul.mubr.msk.bf16.vlgmr.msra.gmra.mxu0 %vm126_vm2, %v692_v36 }
 0x756   :  { %1531 = vmatpush3.bf16.xpose.msra.mxu0 %v847_v37  ;;  %1532 = vmatprep.mubr.msk.bf16.mxu0 %vm1658_vm0, %v1657_v0 }
 0x757   :  { %1542 = vmatprep.subr.bf16.mxu0 %v1657_v0 }
 0x759   :  { %1527 = vmatmul.mubr.msk.bf16.vlgmr.msra.gmra.mxu1 %vm126_vm2, %v790_v38 }
 0x75a   :  { %1538 = vmatprep.mubr.msk.bf16.mxu1 %vm1658_vm0, %v1657_v0 }
 0x75d   :  { %1533 = vmatmul.mubr.msk.bf16.vlgmr.msra.gmra.mxu0 %vm126_vm2, %v840_v39 }
 0x75e   :  { %1544 = vmatprep.mubr.msk.bf16.mxu0 %vm1658_vm0, %v1657_v0 }
 0x811   :  { %v735_v40 = vpop.f32.mrf.mxu1 }
 0x813   :  { %v1516_v41 = vpop.f32.mrf.mxu1 }
 0x815   :  { %v738_v42 = vpop.f32.mrf.mxu1  ;;  %v783_v43 = vpop.f32.mrf.mxu0 }
 0x816   :  { %v1597_v2 = vpack.i.bf16 %v783_v43, %v735_v40 }
 0x817   :  { %v1517_v44 = vpop.f32.mrf.mxu1  ;;  %v1522_v45 = vpop.f32.mrf.mxu0 }
 0x819   :  { %v786_v46 = vpop.f32.mrf.mxu0  ;;  %v833_v47 = vpop.f32.mrf.mxu1 }
 0x81a   :  { %v889_v49 = vmul.f32 0.35355338, %v833_v47 }
 0x81b   :  { %v1523_v50 = vpop.f32.mrf.mxu0  ;;  %v1528_v53 = vpop.f32.mrf.mxu1 }
 0x81c   :  { %v891_v54 = vsel %vm126_vm2, %v889_v49, -inf }
 0x81d   :  { %892 = vmax.xlane.f32.xlu0 %v891_v54  ;;  %v836_v55 = vpop.f32.mrf.mxu1  ;;  %v883_v56 = vpop.f32.mrf.mxu0  ;;  %v1380_v54 = vld [vmem:[%s1993_s4] ss:$0 sm:$0xff] }
 0x81e   :  { %v890_v57 = vmul.f32 0.35355338, %v883_v56 }
 0x81f   :  { %v1529_v58 = vpop.f32.mrf.mxu1  ;;  %v1534_v60 = vpop.f32.mrf.mxu0 }
 0x820   :  { %v894_v61 = vsel %vm126_vm2, %v890_v57, -inf }
 0x821   :  { %895 = vmax.xlane.f32.xlu1 %v894_v61  ;;  %v886_v63 = vpop.f32.mrf.mxu0 }
 0x823   :  { %v1535_v1 = vpop.f32.mrf.mxu0 }
 0x832   :  { %915 = vrot.lane.b32.xlu1 %v1775_v10, %s1669_s25 }
 0x836   :  { %1593 = vrot.lane.b32.xlu1 %v1592_v52, %s1670_s26 }
 0x83a   :  { %1598 = vrot.lane.b32.xlu1 %v1597_v2, %s1671_s27 }
 0x8a6   :  { %v893_v5 = vpop.xlane.xlu0 %892 }
 0x8a7   :  { %v897_v6 = vsub.f32 %v889_v49, %v893_v5 }
 0x8a9   :  { %v899_v7 = vmul.f32 1.442695, %v897_v6 }
 0x8aa   :  { %v896_v8 = vpop.xlane.xlu1 %895 }
 0x8ab   :  { %1641 = vpow2.f32 %v899_v7  ;;  %v898_v9 = vsub.f32 %v890_v57, %v896_v8 }
 0x8ad   :  { %v901_v11 = vmul.f32 1.442695, %v898_v9 }
 0x8ae   :  { %v916_v12 = vpop.permute.xlu1 %915 }
 0x8af   :  { %1643 = vpow2.f32 %v901_v11  ;;  %v921_v13 = vsel %vm253_vm3, %v916_v12, 0 }
 0x8b0   :  { %1537 = vmatpush3.bf16.msra.mxu1 %v921_v13 }
 0x8b1   :  { %1548 = vmatprep.subr.bf16.mxu1 %v1657_v0 }
 0x8b2   :  { %v1594_v35 = vpop.permute.xlu1 %1593 }
 0x8b3   :  { %v1596_v37 = vunpack.i.h.bf16 %v1594_v35  ;;  %v1595_v38 = vunpack.i.l.bf16 %v1594_v35 }
 0x8b5   :  { %v1036_v42 = vsel %vm126_vm2, %v1825_v62, %v1596_v37  ;;  %v1035_v43 = vsel %vm126_vm2, %v1823_v59, %v1595_v38 }
 0x8b6   :  { %v1599_v36 = vpop.permute.xlu1 %1598 }
 0x8b7   :  { %v1601_v39 = vunpack.i.h.bf16 %v1599_v36  ;;  %v1600_v40 = vunpack.i.l.bf16 %v1599_v36 }
 0x8b8   :  { %v1642_v10 = vpop.eup %1641 }
 0x8b9   :  { %v903_v48 = vsel %vm126_vm2, %v1642_v10, 0.0  ;;  %v1038_v46 = vsel %vm1037_vm4, %v1035_v43, %v1600_v40  ;;  %v1039_v47 = vsel %vm1037_vm4, %v1036_v42, %v1601_v39 }
 0x8ba   :  { %904 = vadd.xlane.f32.xlu0 %v903_v48  ;;  %v1613_v48 = vld [vmem:[%s1995_s9 + $0x18] sm:$0xff]  }
 0x8bc   :  { %v1644_v51 = vpop.eup %1643 }
 0x8bd   :  { %v906_v52 = vsel %vm126_vm2, %v1644_v51, 0.0 }
 0x8be   :  { %907 = vadd.xlane.f32.xlu0 %v906_v52 }
 0x8d4   :  { %963 = vrot.lane.b32.xlu0 %v1778_v14, %s1669_s25 }
 0x943   :  { %v905_v15 = vpop.xlane.xlu0 %904 }
 0x944   :  { %1645 = vrcp.f32 %v905_v15 }
 0x947   :  { %v908_v16 = vpop.xlane.xlu0 %907 }
 0x948   :  { %1647 = vrcp.f32 %v908_v16 }
 0x94b   :  { %v964_v17 = vpop.permute.xlu0 %963 }
 0x94c   :  { %v969_v18 = vsel %vm253_vm3, %v964_v17, 0 }
 0x94d   :  { %1543 = vmatpush3.bf16.msra.mxu0 %v969_v18 }
 0x94e   :  { %1556 = vmatprep.subr.bf16.mxu0 %v1657_v0 }
 0x951   :  { %v1646_v19 = vpop.eup %1645 }
 0x952   :  { %v911_v20 = vmul.f32 %v1646_v19, %v1642_v10  ;;  %v1612_v10 = vld [vmem:[%s1994_s7] sm:$0xff]  }
 0x954   :  { %v913_v21 = vpack.c.bf16 %v911_v20, %v911_v20 }
 0x955   :  { %v1648_v22 = vpop.eup %1647 }
 0x956   :  { %1539 = vmatmul.mubr.msk.bf16.vlgmr.msra.gmra.mxu1 %vm126_vm2, %v913_v21  ;;  %v912_v23 = vmul.f32 %v1648_v22, %v1644_v51  ;;  %v1384_v21 = vld [vmem:[%s1996_s5] ss:$0 sm:$0xff] }
 0x957   :  { %1552 = vmatprep.mubr.msk.bf16.mxu1 %vm1658_vm0, %v1657_v0  ;;  %1549 = vmatpush3.bf16.msra.mxu1 %v1609_v24  ;;  %v1385_v24 = vld [vmem:[%s1997_s6] ss:$0 sm:$0xff] }
 0x958   :  { %v914_v14 = vpack.c.bf16 %v912_v23, %v912_v23  ;;  %1550 = vmatprep.subr.bf16.mxu1 %v1657_v0 }
 0x95a   :  { %1545 = vmatmul.mubr.msk.bf16.vlgmr.msra.gmra.mxu0 %vm126_vm2, %v914_v14 }
 0x95b   :  { %1560 = vmatprep.mubr.msk.bf16.mxu0 %vm1658_vm0, %v1657_v0  ;;  %1551 = vmatpush3.bf16.msra.mxu1 %v1610_v25 }
 0x95c   :  { %1564 = vmatprep.subr.bf16.mxu1 %v1657_v0 }
 0xa16   :  { %v957_v26 = vpop.f32.mrf.mxu1 }
 0xa18   :  { %v1540_v27 = vpop.f32.mrf.mxu1 }
 0xa1a   :  { %v960_v28 = vpop.f32.mrf.mxu1  ;;  %v1005_v29 = vpop.f32.mrf.mxu0 }
 0xa1b   :  { %v1602_v30 = vpack.i.bf16 %v1005_v29, %v957_v26  ;;  %v1614_v29 = vld [vmem:[%s1995_s9 + $0x10] sm:$0xff]  }
 0xa1c   :  { %v1541_v31 = vpop.f32.mrf.mxu1  ;;  %v1546_v32 = vpop.f32.mrf.mxu0 }
 0xa1d   :  { %1603 = vrot.lane.b32.xlu0 %v1602_v30, %s1672_s15  ;;  %v1615_v30 = vld [vmem:[%s1995_s9 + $0x8] sm:$0xff]   ;;  %v1616_v31 = vld [vmem:[%s1995_s9] sm:$0xff]  }
 0xa1e   :  { %v1008_v33 = vpop.f32.mrf.mxu0  ;;  %v1386_v32 = vld [vmem:[%s1998_s8] ss:$0 sm:$0xff] }
 0xa20   :  { %v1547_v34 = vpop.f32.mrf.mxu0 }
 0xa8f   :  { %v1604_v41 = vpop.permute.xlu0 %1603 }
 0xa90   :  { %v1606_v44 = vunpack.i.h.bf16 %v1604_v41  ;;  %v1605_v45 = vunpack.i.l.bf16 %v1604_v41 }
 0xa92   :  { %v1042_v49 = vsel %vm1040_vm5, %v1039_v47, %v1606_v44  ;;  %v1041_v50 = vsel %vm1040_vm5, %v1038_v46, %v1605_v45 }
 0xa93   :  { %v1043_v53 = vpack.c.bf16 %v1042_v49, %v1041_v50 }
 0xa95   :  { %1553 = vmatmul.mubr.msk.bf16.vlgmr.msra.gmra.mxu1 %vm71_vm1, %v1043_v53 }
 0xa96   :  { %1572 = vmatprep.mubr.msk.bf16.mxu1 %vm1658_vm0, %v1657_v0  ;;  %1565 = vmatpush3.bf16.msra.mxu1 %v1613_v48 }
 0xa97   :  { %1566 = vmatprep.subr.bf16.mxu1 %v1657_v0 }
 0xa9a   :  { %1567 = vmatpush3.bf16.msra.mxu1 %v1614_v29 }
 0xa9b   :  { %1568 = vmatprep.subr.bf16.mxu1 %v1657_v0 }
 0xa9e   :  { %1569 = vmatpush3.bf16.msra.mxu1 %v1615_v30 }
 0xa9f   :  { %1570 = vmatprep.subr.bf16.mxu1 %v1657_v0 }
 0xaa2   :  { %1571 = vmatpush3.bf16.msra.mxu1 %v1616_v31 }
 0xb55   :  { %v1099_v62 = vpop.f32.mrf.mxu1 }
 0xb56   :  { %v1100_v55 = vadd.f32 %v1380_v54, %v1099_v62 }
 0xb57   :  { %v1554_v56 = vpop.f32.mrf.mxu1 }
 0xb58   :  { %v1106_v59 = vadd.f32 %v1100_v55, %v1758_v3 }
 0xb59   :  { %v1102_v57 = vpop.f32.mrf.mxu1 }
 0xb5a   :  { %v1103_v58 = vadd.f32 %v1380_v54, %v1102_v57  ;;  %v1110_v60 = vsel %vm71_vm1, %v1106_v59, 0.0 }
 0xb5b   :  { %1111 = vadd.xlane.f32.xlu1 %v1110_v60  ;;  %v1555_v61 = vpop.f32.mrf.mxu1 }
 0xb5c   :  { %v1107_v63 = vadd.f32 %v1103_v58, %v1763_v4  ;;  %v1611_v4 = vld [vmem:[%s1994_s7 + $0x8] sm:$0xff]  }
 0xb5d   :  { %1557 = vmatpush3.bf16.msra.mxu0 %v1611_v4 }
 0xb5e   :  { %v1113_v1 = vsel %vm71_vm1, %v1107_v63, 0.0  ;;  %1558 = vmatprep.subr.bf16.mxu0 %v1657_v0  ;;  %v1390_v0 = vld [vmem:[%s1999_s10] ss:$0 sm:$0xff] }
 0xb5f   :  { %1114 = vadd.xlane.f32.xlu0 %v1113_v1 }
 0xb61   :  { %1559 = vmatpush3.bf16.msra.mxu0 %v1612_v10 }
 0xbe4   :  { %v1112_v2 = vpop.xlane.xlu1 %1111 }
 0xbe5   :  { %v1117_v5 = vmul.f32 0.03125, %v1112_v2 }
 0xbe7   :  { %v1119_v6 = vsub.f32 %v1106_v59, %v1117_v5 }
 0xbe8   :  { %v1115_v7 = vpop.xlane.xlu0 %1114 }
 0xbe9   :  { %v1118_v8 = vmul.f32 0.03125, %v1115_v7  ;;  %v1121_v9 = vmul.f32 %v1119_v6, %v1119_v6 }
 0xbeb   :  { %v1120_v11 = vsub.f32 %v1107_v63, %v1118_v8  ;;  %v1123_v3 = vsel %vm71_vm1, %v1121_v9, 0.0 }
 0xbec   :  { %1124 = vadd.xlane.f32.xlu0 %v1123_v3  ;;  %v1396_v3 = vld [vmem:[%s2000_s11] ss:$0 sm:$0xff] }
 0xbed   :  { %v1122_v12 = vmul.f32 %v1120_v11, %v1120_v11 }
 0xbef   :  { %v1126_v13 = vsel %vm71_vm1, %v1122_v12, 0.0 }
 0xbf0   :  { %1127 = vadd.xlane.f32.xlu1 %v1126_v13  ;;  %v1397_v13 = vld [vmem:[%s2001_s12] ss:$0 sm:$0xff] }
 0xc75   :  { %v1125_v51 = vpop.xlane.xlu0 %1124 }
 0xc76   :  { %v1129_v52 = vmul.f32 0.03125, %v1125_v51 }
 0xc78   :  { %v1131_v15 = vadd.f32 1e-05, %v1129_v52 }
 0xc79   :  { %v1128_v16 = vpop.xlane.xlu1 %1127 }
 0xc7a   :  { %1649 = vrsqrt.f32 %v1131_v15  ;;  %v1130_v17 = vmul.f32 0.03125, %v1128_v16 }
 0xc7c   :  { %v1132_v18 = vadd.f32 1e-05, %v1130_v17 }
 0xc7e   :  { %1651 = vrsqrt.f32 %v1132_v18 }
 0xc87   :  { %v1650_v19 = vpop.eup %1649 }
 0xc88   :  { %v1135_v20 = vmul.f32 %v1650_v19, %v1119_v6 }
 0xc8a   :  { %v1143_v14 = vmul.f32 %v1384_v21, %v1135_v20 }
 0xc8b   :  { %v1652_v22 = vpop.eup %1651 }
 0xc8c   :  { %v1136_v23 = vmul.f32 %v1652_v22, %v1120_v11  ;;  %v1151_v26 = vadd.f32 %v1385_v24, %v1143_v14 }
 0xc8e   :  { %v1144_v25 = vmul.f32 %v1384_v21, %v1136_v23 }
 0xc90   :  { %v1152_v27 = vadd.f32 %v1385_v24, %v1144_v25 }
 0xc92   :  { %v1153_v28 = vpack.c.bf16 %v1152_v27, %v1151_v26 }
 0xc94   :  { %1561 = vmatmul.mubr.msk.bf16.vlgmr.msra.gmra.mxu0 %vm71_vm1, %v1153_v28 }
 0xd54   :  { %v1214_v33 = vpop.f32.mrf.mxu0 }
 0xd55   :  { %v1215_v35 = vadd.f32 %v1386_v32, %v1214_v33 }
 0xd56   :  { %v1562_v34 = vpop.f32.mrf.mxu0 }
 0xd57   :  { %v1221_v39 = vmax.f32 %v1215_v35, 0.0 }
 0xd58   :  { %v1217_v36 = vpop.f32.mrf.mxu0 }
 0xd59   :  { %v1218_v37 = vadd.f32 %v1386_v32, %v1217_v36 }
 0xd5a   :  { %v1563_v38 = vpop.f32.mrf.mxu0 }
 0xd5b   :  { %v1222_v40 = vmax.f32 %v1218_v37, 0.0 }
 0xd5d   :  { %v1223_v41 = vpack.c.bf16 %v1222_v40, %v1221_v39 }
 0xd5f   :  { %1573 = vmatmul.mubr.msk.bf16.vlgmr.msra.gmra.mxu1 %vm1263_vm6, %v1223_v41 }
 0xe1f   :  { %v1301_v42 = vpop.f32.mrf.mxu1 }
 0xe20   :  { %v1302_v43 = vadd.f32 %v1390_v0, %v1301_v42 }
 0xe21   :  { %v1574_v44 = vpop.f32.mrf.mxu1 }
 0xe22   :  { %v1308_v45 = vadd.f32 %v1302_v43, %v1151_v26 }
 0xe23   :  { %v1304_v46 = vpop.f32.mrf.mxu1 }
 0xe24   :  { %v1305_v47 = vadd.f32 %v1390_v0, %v1304_v46  ;;  %v1312_v49 = vsel %vm71_vm1, %v1308_v45, 0.0 }
 0xe25   :  { %1313 = vadd.xlane.f32.xlu0 %v1312_v49  ;;  %v1575_v50 = vpop.f32.mrf.mxu1 }
 0xe26   :  { %v1309_v53 = vadd.f32 %v1305_v47, %v1152_v27 }
 0xe28   :  { %v1315_v54 = vsel %vm71_vm1, %v1309_v53, 0.0 }
 0xe29   :  { %1316 = vadd.xlane.f32.xlu1 %v1315_v54 }
 0xeae   :  { %v1314_v62 = vpop.xlane.xlu0 %1313 }
 0xeaf   :  { %v1318_v55 = vmul.f32 0.03125, %v1314_v62 }
 0xeb1   :  { %v1320_v56 = vsub.f32 %v1308_v45, %v1318_v55 }
 0xeb2   :  { %v1317_v59 = vpop.xlane.xlu1 %1316 }
 0xeb3   :  { %v1319_v57 = vmul.f32 0.03125, %v1317_v59  ;;  %v1322_v58 = vmul.f32 %v1320_v56, %v1320_v56 }
 0xeb5   :  { %v1321_v60 = vsub.f32 %v1309_v53, %v1319_v57  ;;  %v1324_v61 = vsel %vm71_vm1, %v1322_v58, 0.0 }
 0xeb6   :  { %1325 = vadd.xlane.f32.xlu0 %v1324_v61 }
 0xeb7   :  { %v1323_v63 = vmul.f32 %v1321_v60, %v1321_v60 }
 0xeb9   :  { %v1327_v1 = vsel %vm71_vm1, %v1323_v63, 0.0 }
 0xeba   :  { %1328 = vadd.xlane.f32.xlu1 %v1327_v1 }
 0xf3f   :  { %v1326_v2 = vpop.xlane.xlu0 %1325 }
 0xf40   :  { %v1330_v5 = vmul.f32 0.03125, %v1326_v2 }
 0xf42   :  { %v1332_v6 = vadd.f32 1e-05, %v1330_v5 }
 0xf43   :  { %v1329_v7 = vpop.xlane.xlu1 %1328 }
 0xf44   :  { %1653 = vrsqrt.f32 %v1332_v6  ;;  %v1331_v8 = vmul.f32 0.03125, %v1329_v7 }
 0xf46   :  { %v1333_v9 = vadd.f32 1e-05, %v1331_v8 }
 0xf48   :  { %1655 = vrsqrt.f32 %v1333_v9 }
 0xf51   :  { %v1654_v11 = vpop.eup %1653 }
 0xf52   :  { %v1336_v12 = vmul.f32 %v1654_v11, %v1320_v56 }
 0xf54   :  { %v1344_v4 = vmul.f32 %v1396_v3, %v1336_v12 }
 0xf55   :  { %v1656_v10 = vpop.eup %1655 }
 0xf56   :  { %v1352_v48 = vadd.f32 %v1397_v13, %v1344_v4  ;;  %v1337_v51 = vmul.f32 %v1656_v10, %v1321_v60 }
 0xf58   :  { %1354 = vst.msk [vmem:[%s2002_s13] sm:$0xff] %vm71_vm1, %v1352_v48  ;;  %v1345_v52 = vmul.f32 %v1396_v3, %v1337_v51 }
 0xf5a   :  { %v1353_v15 = vadd.f32 %v1397_v13, %v1345_v52 }
 0xf5c   :  { %1355 = vst.msk [vmem:[%s2002_s13 + $0x8] sm:$0xff] %vm71_vm1, %v1353_v15 }

// kernel: my_transformer.6
= control target key start
LH: loop header
LB: loop body
LE: loop exit
PB: predicated region body
PF: predicated region fallthrough
CT: control target
= control target key end

     0   :  { %v3114_v0 = vmov 0.0   ;;  %vm3115_vm0 = vmmov 0   ;;  %vm103_vm1 = vcmask 261120   ;;  %vm159_vm2 = vcmask 64512   ;;  %s3118_s25 = smov 88   ;;  %s3121_s26 = smov 80   ;;  %s3768_s3 = inlined_call_operand.vmem [shape: bf16[32,96], index: 3, kind: input, shape index: {}]   ;;  %s3769_s0 = inlined_call_operand.vmem [shape: f32[2,8,32], index: 0, kind: input, shape index: {}]   ;;  %s3770_s4 = inlined_call_operand.vmem [shape: f32[1,96], index: 4, kind: input, shape index: {}]   ;;  %s3771_s2 = inlined_call_operand.vmem [shape: f32[8,8], index: 2, kind: input, shape index: {}]   ;;  %s3772_s5 = inlined_call_operand.vmem [shape: bf16[32,32], index: 5, kind: input, shape index: {}]   ;;  %s3773_s6 = inlined_call_operand.vmem [shape: f32[1,32], index: 6, kind: input, shape index: {}]   ;;  %s3774_s11 = inlined_call_operand.vmem [shape: bf16[32,64], index: 11, kind: input, shape index: {}]   ;;  %s3775_s1 = inlined_call_operand.vmem [shape: f32[2,8,32], index: 1, kind: input, shape index: {}]   ;;  %s3776_s9 = inlined_call_operand.vmem [shape: bf16[32,32], index: 9, kind: input, shape index: {}]   ;;  %s3777_s7 = inlined_call_operand.vmem [shape: f32[1,32], index: 7, kind: input, shape index: {}]   ;;  %s3778_s8 = inlined_call_operand.vmem [shape: f32[1,32], index: 8, kind: input, shape index: {}]   ;;  %s3779_s12 = inlined_call_operand.vmem [shape: f32[1,64], index: 12, kind: input, shape index: {}]   ;;  %s3780_s10 = inlined_call_operand.vmem [shape: f32[1,32], index: 10, kind: input, shape index: {}]   ;;  %s3781_s13 = inlined_call_operand.vmem [shape: bf16[32,32], index: 13, kind: input, shape index: {}]   ;;  %s3782_s14 = inlined_call_operand.vmem [shape: f32[1,32], index: 14, kind: input, shape index: {}]   ;;  %s3783_s17 = inlined_call_operand.vmem [shape: bf16[32,64], index: 17, kind: input, shape index: {}]   ;;  %s3784_s19 = inlined_call_operand.vmem [shape: bf16[64,32], index: 19, kind: input, shape index: {}]   ;;  %s3785_s15 = inlined_call_operand.vmem [shape: f32[1,32], index: 15, kind: input, shape index: {}]   ;;  %s3786_s16 = inlined_call_operand.vmem [shape: f32[1,32], index: 16, kind: input, shape index: {}]   ;;  %s3787_s18 = inlined_call_operand.vmem [shape: f32[1,64], index: 18, kind: input, shape index: {}]   ;;  %s3788_s20 = inlined_call_operand.vmem [shape: f32[1,32], index: 20, kind: input, shape index: {}]   ;;  %s3789_s21 = inlined_call_operand.vmem [shape: f32[1,32], index: 21, kind: input, shape index: {}]   ;;  %s3790_s22 = inlined_call_operand.vmem [shape: f32[1,32], index: 22, kind: input, shape index: {}]   ;;  %s3791_s23 = inlined_call_operand.vmem [shape: f32[2,8,32], index: 23, kind: output, shape index: {}]  }
   0x1   :  { %3804 = sst [smem:[#allocation2_spill]] %s3768_s3  ;;  %2724 = vmatprep.subr.bf16.mxu1 %v3114_v0  ;;  %2728 = vmatprep.mubr.msk.bf16.mxu1 %vm3115_vm0, %v3114_v0  ;;  %vm288_vm3 = vcmask 1043456   ;;  %s3800_s27 = smov 72   ;;  %vm1078_vm4 = vcmask 130048   ;;  %vm1081_vm5 = vcmask 195584   ;;  %vm2472_vm6 = vcmask 523264  }
   0x2   :  { %3805 = sst [smem:[#allocation3_spill]] %s3769_s0  ;;  %2738 = vmatprep.subr.bf16.mxu0 %v3114_v0  ;;  %2740 = vmatprep.mubr.msk.bf16.mxu0 %vm3115_vm0, %v3114_v0  ;;  %s3120_s0 = smov 56  }
   0x3   :  { %3806 = sst [smem:[#allocation4_spill]] %s3770_s4  ;;  %s3126_s28 = smov 40  }
   0x4   :  { %3807 = sst [smem:[#allocation5_spill]] %s3771_s2  ;;  %s3116_s2 = smov 96  }
   0x5   :  { %3808 = sst [smem:[#allocation6_spill]] %s3772_s5  ;;  %s3798_s3 = smov 16  }
   0x6   :  { %3809 = sst [smem:[#allocation7_spill]] %s3773_s6  ;;  %s3119_s6 = smov 120  }
   0x7   :  { %3810 = sst [smem:[#allocation8_spill]] %s3774_s11  ;;  %s3123_s11 = smov 48  }
   0x8   :  { %3811 = sst [smem:[#allocation9_spill]] %s3775_s1  ;;  %s3802_s1 = smov 104  }
   0x9   :  { %s3812_s24 = sld [smem:[#allocation2_spill]] }
   0xa   :  { %s3813_s4 = sld [smem:[#allocation3_spill]] }
   0xb   :  { %s3814_s29 = sld [smem:[#allocation4_spill]] }
   0xc   :  { %s3815_s30 = sld [smem:[#allocation5_spill]] }
   0xd   :  { %s3818_s5 = sld [smem:[#allocation8_spill]] }
   0xf   :  { %v3022_v1 = vld [vmem:[%s3812_s24 + $0x8] sm:$0xff]   ;;  %v3023_v2 = vld [vmem:[%s3812_s24] sm:$0xff]   ;;  %s3117_s24 = smov 64  }
  0x10   :  { %2725 = vmatpush3.bf16.msra.mxu1 %v3022_v1  ;;  %v3265_v3 = vld [vmem:[%s3813_s4] sm:$0xff]  ;;  %v3270_v4 = vld [vmem:[%s3813_s4 + $0x8] sm:$0xff]  ;;  %s3122_s4 = smov 112  }
  0x11   :  { %2726 = vmatprep.subr.bf16.mxu1 %v3114_v0  ;;  %v79_v5 = vpack.c.bf16 %v3270_v4, %v3265_v3  ;;  %v2569_v6 = vld [vmem:[%s3814_s29] ss:$0 sm:$0xff]  ;;  %s3799_s29 = smov 8  }
  0x12   :  { %v3305_v20 = vld [vmem:[%s3815_s30] sm:$0xff] }
  0x14   :  { %2727 = vmatpush3.bf16.msra.mxu1 %v3023_v2 }
  0x15   :  { %2732 = vmatprep.subr.bf16.mxu1 %v3114_v0 }
  0x17   :  { %2729 = vmatmul.mubr.msk.bf16.vlgmr.msra.gmra.mxu1 %vm103_vm1, %v79_v5 }
  0x18   :  { %2734 = vmatprep.mubr.msk.bf16.mxu1 %vm3115_vm0, %v3114_v0 }
  0xd7   :  { %v141_v7 = vpop.f32.mrf.mxu1 }
  0xd8   :  { %v142_v8 = vadd.f32 %v2569_v6, %v141_v7 }
  0xd9   :  { %v2730_v9 = vpop.f32.mrf.mxu1 }
  0xda   :  { %v3282_v10 = vpack.c.bf16 %v142_v8, %v142_v8 }
  0xdb   :  { %v144_v11 = vpop.f32.mrf.mxu1 }
  0xdc   :  { %v145_v12 = vadd.f32 %v2569_v6, %v144_v11  ;;  %157 = vrot.lane.b32.xlu0 %v3282_v10, %s3116_s2 }
  0xdd   :  { %v2731_v13 = vpop.f32.mrf.mxu1 }
  0xde   :  { %v3286_v14 = vpack.c.bf16 %v145_v12, %v145_v12 }
  0xe0   :  { %207 = vrot.lane.b32.xlu0 %v3286_v14, %s3116_s2 }
 0x14e   :  { %v158_v15 = vpop.permute.xlu0 %157 }
 0x14f   :  { %v164_v16 = vsel %vm159_vm2, %v158_v15, 0 }
 0x150   :  { %2733 = vmatpush3.bf16.xpose.msra.mxu1 %v164_v16 }
 0x151   :  { %2744 = vmatprep.subr.bf16.mxu1 %v3114_v0 }
 0x152   :  { %v208_v17 = vpop.permute.xlu0 %207 }
 0x153   :  { %v213_v18 = vsel %vm159_vm2, %v208_v17, 0 }
 0x154   :  { %2739 = vmatpush3.bf16.xpose.msra.mxu0 %v213_v18 }
 0x155   :  { %2750 = vmatprep.subr.bf16.mxu0 %v3114_v0 }
 0x157   :  { %2735 = vmatmul.mubr.msk.bf16.vlgmr.msra.gmra.mxu1 %vm159_vm2, %v3282_v10 }
 0x158   :  { %2746 = vmatprep.mubr.msk.bf16.mxu1 %vm3115_vm0, %v3114_v0 }
 0x15b   :  { %2741 = vmatmul.mubr.msk.bf16.vlgmr.msra.gmra.mxu0 %vm159_vm2, %v3286_v14 }
 0x15c   :  { %2752 = vmatprep.mubr.msk.bf16.mxu0 %vm3115_vm0, %v3114_v0 }
 0x217   :  { %v200_v19 = vpop.f32.mrf.mxu1 }
 0x218   :  { %v255_v21 = vmul.f32 0.35355338, %v200_v19 }
 0x219   :  { %v2736_v22 = vpop.f32.mrf.mxu1 }
 0x21a   :  { %v257_v23 = vadd.f32 %v255_v21, %v3305_v20 }
 0x21b   :  { %v203_v24 = vpop.f32.mrf.mxu1  ;;  %v249_v25 = vpop.f32.mrf.mxu0 }
 0x21c   :  { %v256_v26 = vmul.f32 0.35355338, %v249_v25  ;;  %v259_v27 = vsel %vm159_vm2, %v257_v23, -inf }
 0x21d   :  { %v2742_v28 = vpop.f32.mrf.mxu0  ;;  %260 = vmax.xlane.f32.xlu1 %v259_v27  ;;  %v2737_v29 = vpop.f32.mrf.mxu1 }
 0x21e   :  { %v258_v30 = vadd.f32 %v256_v26, %v3305_v20 }
 0x21f   :  { %v252_v31 = vpop.f32.mrf.mxu0 }
 0x220   :  { %v262_v32 = vsel %vm159_vm2, %v258_v30, -inf }
 0x221   :  { %v2743_v33 = vpop.f32.mrf.mxu0  ;;  %263 = vmax.xlane.f32.xlu1 %v262_v32 }
 0x232   :  { %283 = vrot.lane.b32.xlu1 %v3282_v10, %s3117_s24 }
 0x236   :  { %332 = vrot.lane.b32.xlu1 %v3286_v14, %s3117_s24  ;;  %s3816_s24 = sld [smem:[#allocation6_spill]] }
 0x23a   :  { %382 = vrot.lane.b32.xlu1 %v3282_v10, %s3118_s25 }
 0x2a6   :  { %v261_v34 = vpop.xlane.xlu1 %260 }
 0x2a7   :  { %v265_v35 = vsub.f32 %v257_v23, %v261_v34 }
 0x2a9   :  { %v267_v36 = vmul.f32 1.442695, %v265_v35 }
 0x2aa   :  { %v264_v37 = vpop.xlane.xlu1 %263 }
 0x2ab   :  { %3038 = vpow2.f32 %v267_v36  ;;  %v266_v38 = vsub.f32 %v258_v30, %v264_v37 }
 0x2ad   :  { %v269_v39 = vmul.f32 1.442695, %v266_v38 }
 0x2ae   :  { %v284_v40 = vpop.permute.xlu1 %283 }
 0x2af   :  { %3040 = vpow2.f32 %v269_v39  ;;  %v290_v41 = vsel %vm288_vm3, %v284_v40, 0 }
 0x2b0   :  { %2745 = vmatpush3.bf16.msra.mxu1 %v290_v41 }
 0x2b1   :  { %2756 = vmatprep.subr.bf16.mxu1 %v3114_v0 }
 0x2b2   :  { %v333_v42 = vpop.permute.xlu1 %332 }
 0x2b3   :  { %v338_v43 = vsel %vm288_vm3, %v333_v42, 0 }
 0x2b4   :  { %2751 = vmatpush3.bf16.msra.mxu0 %v338_v43 }
 0x2b5   :  { %2762 = vmatprep.subr.bf16.mxu0 %v3114_v0 }
 0x2b6   :  { %v383_v48 = vpop.permute.xlu1 %382 }
 0x2b7   :  { %v388_v55 = vsel %vm159_vm2, %v383_v48, 0 }
 0x2b8   :  { %v3039_v44 = vpop.eup %3038 }
 0x2b9   :  { %v271_v45 = vsel %vm159_vm2, %v3039_v44, 0.0 }
 0x2ba   :  { %272 = vadd.xlane.f32.xlu0 %v271_v45 }
 0x2bc   :  { %v3041_v46 = vpop.eup %3040 }
 0x2bd   :  { %v274_v47 = vsel %vm159_vm2, %v3041_v46, 0.0 }
 0x2be   :  { %275 = vadd.xlane.f32.xlu1 %v274_v47 }
 0x2cf   :  { %432 = vrot.lane.b32.xlu1 %v3286_v14, %s3118_s25 }
 0x2d0   :  { %380 = vrot.lane.b32.xlu0 %v3282_v10, %s3119_s6 }
 0x2d3   :  { %430 = vrot.lane.b32.xlu1 %v3286_v14, %s3119_s6 }
 0x343   :  { %v273_v49 = vpop.xlane.xlu0 %272 }
 0x344   :  { %3042 = vrcp.f32 %v273_v49 }
 0x347   :  { %v276_v50 = vpop.xlane.xlu1 %275  ;;  %v381_v60 = vpop.permute.xlu0 %380 }
 0x348   :  { %3044 = vrcp.f32 %v276_v50 }
 0x34b   :  { %v433_v57 = vpop.permute.xlu1 %432 }
 0x34c   :  { %v438_v59 = vsel %vm159_vm2, %v433_v57, 0 }
 0x34f   :  { %v431_v61 = vpop.permute.xlu1 %430 }
 0x351   :  { %v3043_v51 = vpop.eup %3042 }
 0x352   :  { %v279_v52 = vmul.f32 %v3043_v51, %v3039_v44 }
 0x354   :  { %v281_v53 = vpack.c.bf16 %v279_v52, %v279_v52 }
 0x355   :  { %v3045_v54 = vpop.eup %3044 }
 0x356   :  { %2747 = vmatmul.mubr.msk.bf16.vlgmr.msra.gmra.mxu1 %vm159_vm2, %v281_v53  ;;  %v280_v56 = vmul.f32 %v3045_v54, %v3041_v46 }
 0x357   :  { %2757 = vmatpush3.bf16.xpose.msra.mxu1 %v388_v55  ;;  %2758 = vmatprep.mubr.msk.bf16.mxu1 %vm3115_vm0, %v3114_v0 }
 0x358   :  { %v282_v58 = vpack.c.bf16 %v280_v56, %v280_v56  ;;  %2768 = vmatprep.subr.bf16.mxu1 %v3114_v0 }
 0x35a   :  { %2753 = vmatmul.mubr.msk.bf16.vlgmr.msra.gmra.mxu0 %vm159_vm2, %v282_v58 }
 0x35b   :  { %2763 = vmatpush3.bf16.xpose.msra.mxu0 %v438_v59  ;;  %2764 = vmatprep.mubr.msk.bf16.mxu0 %vm3115_vm0, %v3114_v0 }
 0x35c   :  { %2774 = vmatprep.subr.bf16.mxu0 %v3114_v0 }
 0x35e   :  { %2759 = vmatmul.mubr.msk.bf16.vlgmr.msra.gmra.mxu1 %vm159_vm2, %v381_v60 }
 0x35f   :  { %2770 = vmatprep.mubr.msk.bf16.mxu1 %vm3115_vm0, %v3114_v0 }
 0x362   :  { %2765 = vmatmul.mubr.msk.bf16.vlgmr.msra.gmra.mxu0 %vm159_vm2, %v431_v61 }
 0x363   :  { %2776 = vmatprep.mubr.msk.bf16.mxu0 %vm3115_vm0, %v3114_v0 }
 0x416   :  { %v3343_v62 = vpop.f32.mrf.mxu1 }
 0x418   :  { %v2748_v63 = vpop.f32.mrf.mxu1 }
 0x41a   :  { %v329_v1 = vpop.f32.mrf.mxu1  ;;  %v3345_v2 = vpop.f32.mrf.mxu0 }
 0x41c   :  { %v2749_v5 = vpop.f32.mrf.mxu1  ;;  %v2754_v6 = vpop.f32.mrf.mxu0 }
 0x41e   :  { %v377_v7 = vpop.f32.mrf.mxu0  ;;  %v424_v8 = vpop.f32.mrf.mxu1 }
 0x41f   :  { %v480_v9 = vmul.f32 0.35355338, %v424_v8 }
 0x420   :  { %v2755_v11 = vpop.f32.mrf.mxu0  ;;  %v2760_v12 = vpop.f32.mrf.mxu1 }
 0x421   :  { %v482_v13 = vadd.f32 %v480_v9, %v3305_v20 }
 0x422   :  { %v427_v15 = vpop.f32.mrf.mxu1  ;;  %v474_v16 = vpop.f32.mrf.mxu0 }
 0x423   :  { %v481_v17 = vmul.f32 0.35355338, %v474_v16  ;;  %v484_v18 = vsel %vm159_vm2, %v482_v13, -inf }
 0x424   :  { %v2766_v19 = vpop.f32.mrf.mxu0  ;;  %485 = vmax.xlane.f32.xlu1 %v484_v18  ;;  %v2761_v21 = vpop.f32.mrf.mxu1 }
 0x425   :  { %v483_v22 = vadd.f32 %v481_v17, %v3305_v20 }
 0x426   :  { %v477_v23 = vpop.f32.mrf.mxu0 }
 0x427   :  { %v487_v24 = vsel %vm159_vm2, %v483_v22, -inf }
 0x428   :  { %488 = vmax.xlane.f32.xlu0 %v487_v24  ;;  %v2767_v25 = vpop.f32.mrf.mxu0 }
 0x435   :  { %508 = vrot.lane.b32.xlu1 %v3282_v10, %s3120_s0 }
 0x439   :  { %606 = vrot.lane.b32.xlu1 %v3282_v10, %s3121_s26 }
 0x43e   :  { %556 = vrot.lane.b32.xlu0 %v3286_v14, %s3120_s0  ;;  %s3824_s0 = smov 24  }
 0x442   :  { %604 = vrot.lane.b32.xlu0 %v3282_v10, %s3122_s4 }
 0x4ad   :  { %v486_v26 = vpop.xlane.xlu1 %485 }
 0x4ae   :  { %v490_v27 = vsub.f32 %v482_v13, %v486_v26 }
 0x4b0   :  { %v492_v28 = vmul.f32 1.442695, %v490_v27 }
 0x4b1   :  { %v489_v29 = vpop.xlane.xlu0 %488  ;;  %v509_v30 = vpop.permute.xlu1 %508 }
 0x4b2   :  { %3046 = vpow2.f32 %v492_v28  ;;  %v491_v31 = vsub.f32 %v483_v22, %v489_v29  ;;  %v514_v32 = vsel %vm288_vm3, %v509_v30, 0 }
 0x4b3   :  { %2769 = vmatpush3.bf16.msra.mxu1 %v514_v32 }
 0x4b4   :  { %v494_v33 = vmul.f32 1.442695, %v491_v31  ;;  %2780 = vmatprep.subr.bf16.mxu1 %v3114_v0 }
 0x4b5   :  { %v557_v34 = vpop.permute.xlu0 %556  ;;  %v607_v40 = vpop.permute.xlu1 %606 }
 0x4b6   :  { %3048 = vpow2.f32 %v494_v33  ;;  %v562_v35 = vsel %vm288_vm3, %v557_v34, 0  ;;  %v612_v47 = vsel %vm159_vm2, %v607_v40, 0 }
 0x4b7   :  { %2775 = vmatpush3.bf16.msra.mxu0 %v562_v35 }
 0x4b8   :  { %2786 = vmatprep.subr.bf16.mxu0 %v3114_v0 }
 0x4b9   :  { %v605_v52 = vpop.permute.xlu0 %604 }
 0x4bf   :  { %v3047_v36 = vpop.eup %3046 }
 0x4c0   :  { %v496_v37 = vsel %vm159_vm2, %v3047_v36, 0.0 }
 0x4c1   :  { %497 = vadd.xlane.f32.xlu1 %v496_v37 }
 0x4c3   :  { %v3049_v38 = vpop.eup %3048 }
 0x4c4   :  { %v499_v39 = vsel %vm159_vm2, %v3049_v38, 0.0 }
 0x4c5   :  { %500 = vadd.xlane.f32.xlu1 %v499_v39 }
 0x4d6   :  { %656 = vrot.lane.b32.xlu1 %v3286_v14, %s3121_s26 }
 0x4da   :  { %654 = vrot.lane.b32.xlu1 %v3286_v14, %s3122_s4 }
 0x54a   :  { %v498_v41 = vpop.xlane.xlu1 %497 }
 0x54b   :  { %3050 = vrcp.f32 %v498_v41 }
 0x54e   :  { %v501_v42 = vpop.xlane.xlu1 %500 }
 0x54f   :  { %3052 = vrcp.f32 %v501_v42 }
 0x552   :  { %v657_v49 = vpop.permute.xlu1 %656 }
 0x553   :  { %v662_v51 = vsel %vm159_vm2, %v657_v49, 0 }
 0x556   :  { %v655_v53 = vpop.permute.xlu1 %654 }
 0x558   :  { %v3051_v43 = vpop.eup %3050 }
 0x559   :  { %v504_v44 = vmul.f32 %v3051_v43, %v3047_v36 }
 0x55b   :  { %v506_v45 = vpack.c.bf16 %v504_v44, %v504_v44 }
 0x55c   :  { %v3053_v46 = vpop.eup %3052 }
 0x55d   :  { %2771 = vmatmul.mubr.msk.bf16.vlgmr.msra.gmra.mxu1 %vm159_vm2, %v506_v45  ;;  %v505_v48 = vmul.f32 %v3053_v46, %v3049_v38 }
 0x55e   :  { %2781 = vmatpush3.bf16.xpose.msra.mxu1 %v612_v47  ;;  %2782 = vmatprep.mubr.msk.bf16.mxu1 %vm3115_vm0, %v3114_v0 }
 0x55f   :  { %v507_v50 = vpack.c.bf16 %v505_v48, %v505_v48  ;;  %2792 = vmatprep.subr.bf16.mxu1 %v3114_v0 }
 0x561   :  { %2777 = vmatmul.mubr.msk.bf16.vlgmr.msra.gmra.mxu0 %vm159_vm2, %v507_v50 }
 0x562   :  { %2787 = vmatpush3.bf16.xpose.msra.mxu0 %v662_v51  ;;  %2788 = vmatprep.mubr.msk.bf16.mxu0 %vm3115_vm0, %v3114_v0 }
 0x563   :  { %2798 = vmatprep.subr.bf16.mxu0 %v3114_v0 }
 0x565   :  { %2783 = vmatmul.mubr.msk.bf16.vlgmr.msra.gmra.mxu1 %vm159_vm2, %v605_v52 }
 0x566   :  { %2794 = vmatprep.mubr.msk.bf16.mxu1 %vm3115_vm0, %v3114_v0 }
 0x569   :  { %2789 = vmatmul.mubr.msk.bf16.vlgmr.msra.gmra.mxu0 %vm159_vm2, %v655_v53 }
 0x56a   :  { %2800 = vmatprep.mubr.msk.bf16.mxu0 %vm3115_vm0, %v3114_v0 }
 0x61d   :  { %v3383_v54 = vpop.f32.mrf.mxu1 }
 0x61f   :  { %v2772_v55 = vpop.f32.mrf.mxu1 }
 0x621   :  { %v553_v56 = vpop.f32.mrf.mxu1  ;;  %v3385_v57 = vpop.f32.mrf.mxu0 }
 0x622   :  { %v2992_v58 = vpack.i.bf16 %v3385_v57, %v3383_v54 }
 0x623   :  { %v2773_v59 = vpop.f32.mrf.mxu1  ;;  %v2778_v60 = vpop.f32.mrf.mxu0 }
 0x625   :  { %v601_v61 = vpop.f32.mrf.mxu0  ;;  %v648_v63 = vpop.f32.mrf.mxu1 }
 0x626   :  { %v704_v1 = vmul.f32 0.35355338, %v648_v63 }
 0x627   :  { %v2779_v5 = vpop.f32.mrf.mxu0  ;;  %v2784_v6 = vpop.f32.mrf.mxu1 }
 0x628   :  { %v706_v7 = vadd.f32 %v704_v1, %v3305_v20 }
 0x629   :  { %v651_v8 = vpop.f32.mrf.mxu1  ;;  %v698_v9 = vpop.f32.mrf.mxu0 }
 0x62a   :  { %v705_v11 = vmul.f32 0.35355338, %v698_v9  ;;  %v708_v12 = vsel %vm159_vm2, %v706_v7, -inf }
 0x62b   :  { %v2790_v13 = vpop.f32.mrf.mxu0  ;;  %709 = vmax.xlane.f32.xlu0 %v708_v12  ;;  %v2785_v15 = vpop.f32.mrf.mxu1 }
 0x62c   :  { %v707_v16 = vadd.f32 %v705_v11, %v3305_v20 }
 0x62d   :  { %v701_v17 = vpop.f32.mrf.mxu0 }
 0x62e   :  { %v711_v18 = vsel %vm159_vm2, %v707_v16, -inf }
 0x62f   :  { %712 = vmax.xlane.f32.xlu1 %v711_v18  ;;  %v2791_v19 = vpop.f32.mrf.mxu0 }
 0x640   :  { %732 = vrot.lane.b32.xlu1 %v3282_v10, %s3123_s11 }
 0x644   :  { %830 = vrot.lane.b32.xlu1 %v3282_v10, %s3800_s27 }
 0x648   :  { %880 = vrot.lane.b32.xlu1 %v3286_v14, %s3800_s27 }
 0x64c   :  { %878 = vrot.lane.b32.xlu1 %v3286_v14, %s3802_s1 }
 0x6b4   :  { %v710_v21 = vpop.xlane.xlu0 %709 }
 0x6b5   :  { %v714_v22 = vsub.f32 %v706_v7, %v710_v21 }
 0x6b7   :  { %v716_v23 = vmul.f32 1.442695, %v714_v22 }
 0x6b8   :  { %v713_v24 = vpop.xlane.xlu1 %712 }
 0x6b9   :  { %3054 = vpow2.f32 %v716_v23  ;;  %v715_v25 = vsub.f32 %v707_v16, %v713_v24 }
 0x6bb   :  { %v718_v26 = vmul.f32 1.442695, %v715_v25 }
 0x6bc   :  { %v733_v27 = vpop.permute.xlu1 %732 }
 0x6bd   :  { %3056 = vpow2.f32 %v718_v26  ;;  %v738_v28 = vsel %vm288_vm3, %v733_v27, 0 }
 0x6be   :  { %2793 = vmatpush3.bf16.msra.mxu1 %v738_v28 }
 0x6bf   :  { %2804 = vmatprep.subr.bf16.mxu1 %v3114_v0 }
 0x6c0   :  { %v831_v38 = vpop.permute.xlu1 %830 }
 0x6c1   :  { %v836_v42 = vsel %vm159_vm2, %v831_v38, 0 }
 0x6c4   :  { %v881_v44 = vpop.permute.xlu1 %880 }
 0x6c5   :  { %v886_v46 = vsel %vm159_vm2, %v881_v44, 0 }
 0x6c6   :  { %v3055_v29 = vpop.eup %3054 }
 0x6c7   :  { %v720_v30 = vsel %vm159_vm2, %v3055_v29, 0.0 }
 0x6c8   :  { %721 = vadd.xlane.f32.xlu0 %v720_v30  ;;  %v879_v48 = vpop.permute.xlu1 %878 }
 0x6ca   :  { %v3057_v31 = vpop.eup %3056 }
 0x6cb   :  { %v723_v32 = vsel %vm159_vm2, %v3057_v31, 0.0 }
 0x6cc   :  { %724 = vadd.xlane.f32.xlu0 %v723_v32 }
 0x6e2   :  { %780 = vrot.lane.b32.xlu0 %v3286_v14, %s3123_s11 }
 0x6e6   :  { %828 = vrot.lane.b32.xlu0 %v3282_v10, %s3802_s1 }
 0x751   :  { %v722_v33 = vpop.xlane.xlu0 %721 }
 0x752   :  { %3058 = vrcp.f32 %v722_v33 }
 0x755   :  { %v725_v34 = vpop.xlane.xlu0 %724 }
 0x756   :  { %3060 = vrcp.f32 %v725_v34 }
 0x759   :  { %v781_v35 = vpop.permute.xlu0 %780 }
 0x75a   :  { %v786_v36 = vsel %vm288_vm3, %v781_v35, 0  ;;  %v3024_v35 = vld [vmem:[%s3816_s24 + $0x8] sm:$0xff]  }
 0x75b   :  { %2799 = vmatpush3.bf16.msra.mxu0 %v786_v36  ;;  %v3025_v36 = vld [vmem:[%s3816_s24] sm:$0xff]   ;;  %s3817_s24 = sld [smem:[#allocation7_spill]] }
 0x75c   :  { %2810 = vmatprep.subr.bf16.mxu0 %v3114_v0 }
 0x75d   :  { %v829_v47 = vpop.permute.xlu0 %828 }
 0x75f   :  { %v3059_v37 = vpop.eup %3058 }
 0x760   :  { %v728_v39 = vmul.f32 %v3059_v37, %v3055_v29 }
 0x762   :  { %v730_v40 = vpack.c.bf16 %v728_v39, %v728_v39 }
 0x763   :  { %v3061_v41 = vpop.eup %3060 }
 0x764   :  { %2795 = vmatmul.mubr.msk.bf16.vlgmr.msra.gmra.mxu1 %vm159_vm2, %v730_v40  ;;  %v729_v43 = vmul.f32 %v3061_v41, %v3057_v31 }
 0x765   :  { %2805 = vmatpush3.bf16.xpose.msra.mxu1 %v836_v42  ;;  %2806 = vmatprep.mubr.msk.bf16.mxu1 %vm3115_vm0, %v3114_v0 }
 0x766   :  { %v731_v45 = vpack.c.bf16 %v729_v43, %v729_v43  ;;  %2816 = vmatprep.subr.bf16.mxu1 %v3114_v0 }
 0x768   :  { %2801 = vmatmul.mubr.msk.bf16.vlgmr.msra.gmra.mxu0 %vm159_vm2, %v731_v45 }
 0x769   :  { %2811 = vmatpush3.bf16.xpose.msra.mxu0 %v886_v46  ;;  %2812 = vmatprep.mubr.msk.bf16.mxu0 %vm3115_vm0, %v3114_v0 }
 0x76a   :  { %2822 = vmatprep.subr.bf16.mxu0 %v3114_v0 }
 0x76c   :  { %2807 = vmatmul.mubr.msk.bf16.vlgmr.msra.gmra.mxu1 %vm159_vm2, %v829_v47 }
 0x76d   :  { %2818 = vmatprep.mubr.msk.bf16.mxu1 %vm3115_vm0, %v3114_v0 }
 0x770   :  { %2813 = vmatmul.mubr.msk.bf16.vlgmr.msra.gmra.mxu0 %vm159_vm2, %v879_v48 }
 0x771   :  { %2824 = vmatprep.mubr.msk.bf16.mxu0 %vm3115_vm0, %v3114_v0 }
 0x824   :  { %v774_v49 = vpop.f32.mrf.mxu1 }
 0x826   :  { %v2796_v50 = vpop.f32.mrf.mxu1 }
 0x828   :  { %v777_v51 = vpop.f32.mrf.mxu1  ;;  %v822_v52 = vpop.f32.mrf.mxu0 }
 0x829   :  { %v2997_v17 = vpack.i.bf16 %v822_v52, %v774_v49 }
 0x82a   :  { %v2797_v53 = vpop.f32.mrf.mxu1  ;;  %v2802_v55 = vpop.f32.mrf.mxu0 }
 0x82c   :  { %v825_v56 = vpop.f32.mrf.mxu0  ;;  %v872_v59 = vpop.f32.mrf.mxu1 }
 0x82d   :  { %v928_v60 = vmul.f32 0.35355338, %v872_v59 }
 0x82e   :  { %v2803_v61 = vpop.f32.mrf.mxu0  ;;  %v2808_v63 = vpop.f32.mrf.mxu1 }
 0x82f   :  { %v930_v1 = vadd.f32 %v928_v60, %v3305_v20 }
 0x830   :  { %v875_v5 = vpop.f32.mrf.mxu1  ;;  %v922_v6 = vpop.f32.mrf.mxu0 }
 0x831   :  { %v929_v7 = vmul.f32 0.35355338, %v922_v6  ;;  %v932_v8 = vsel %vm159_vm2, %v930_v1, -inf }
 0x832   :  { %v2814_v9 = vpop.f32.mrf.mxu0  ;;  %933 = vmax.xlane.f32.xlu0 %v932_v8  ;;  %v2809_v11 = vpop.f32.mrf.mxu1 }
 0x833   :  { %v931_v12 = vadd.f32 %v929_v7, %v3305_v20 }
 0x834   :  { %v925_v13 = vpop.f32.mrf.mxu0 }
 0x835   :  { %v935_v15 = vsel %vm159_vm2, %v931_v12, -inf }
 0x836   :  { %936 = vmax.xlane.f32.xlu1 %v935_v15  ;;  %v2815_v16 = vpop.f32.mrf.mxu0 }
 0x847   :  { %956 = vrot.lane.b32.xlu1 %v3282_v10, %s3126_s28 }
 0x84b   :  { %2993 = vrot.lane.b32.xlu1 %v2992_v58, %s3799_s29  ;;  %s3819_s29 = sld [smem:[#allocation9_spill]] }
 0x84f   :  { %2998 = vrot.lane.b32.xlu1 %v2997_v17, %s3798_s3 }
 0x8bb   :  { %v934_v18 = vpop.xlane.xlu0 %933 }
 0x8bc   :  { %v938_v20 = vsub.f32 %v930_v1, %v934_v18 }
 0x8be   :  { %v940_v19 = vmul.f32 1.442695, %v938_v20 }
 0x8bf   :  { %v937_v21 = vpop.xlane.xlu1 %936 }
 0x8c0   :  { %3062 = vpow2.f32 %v940_v19  ;;  %v939_v22 = vsub.f32 %v931_v12, %v937_v21 }
 0x8c2   :  { %v942_v23 = vmul.f32 1.442695, %v939_v22 }
 0x8c3   :  { %v957_v24 = vpop.permute.xlu1 %956 }
 0x8c4   :  { %3064 = vpow2.f32 %v942_v23  ;;  %v962_v10 = vsel %vm288_vm3, %v957_v24, 0 }
 0x8c5   :  { %2817 = vmatpush3.bf16.msra.mxu1 %v962_v10 }
 0x8c6   :  { %2828 = vmatprep.subr.bf16.mxu1 %v3114_v0 }
 0x8c7   :  { %v2994_v46 = vpop.permute.xlu1 %2993 }
 0x8c8   :  { %v2996_v48 = vunpack.i.h.bf16 %v2994_v46  ;;  %v2995_v49 = vunpack.i.l.bf16 %v2994_v46 }
 0x8ca   :  { %v1077_v53 = vsel %vm159_vm2, %v3345_v2, %v2996_v48  ;;  %v1076_v55 = vsel %vm159_vm2, %v3343_v62, %v2995_v49  ;;  %v2589_v62 = vld [vmem:[%s3817_s24] ss:$0 sm:$0xff] }
 0x8cb   :  { %v2999_v47 = vpop.permute.xlu1 %2998 }
 0x8cc   :  { %v3001_v50 = vunpack.i.h.bf16 %v2999_v47  ;;  %v3000_v51 = vunpack.i.l.bf16 %v2999_v47 }
 0x8cd   :  { %v3063_v54 = vpop.eup %3062 }
 0x8ce   :  { %v944_v57 = vsel %vm159_vm2, %v3063_v54, 0.0  ;;  %v1080_v60 = vsel %vm1078_vm4, %v1077_v53, %v3001_v50  ;;  %v1079_v61 = vsel %vm1078_vm4, %v1076_v55, %v3000_v51 }
 0x8cf   :  { %945 = vadd.xlane.f32.xlu0 %v944_v57  ;;  %v77_v57 = vld [vmem:[%s3819_s29] sm:$0xff] }
 0x8d1   :  { %v3065_v58 = vpop.eup %3064 }
 0x8d2   :  { %v947_v25 = vsel %vm159_vm2, %v3065_v58, 0.0 }
 0x8d3   :  { %948 = vadd.xlane.f32.xlu0 %v947_v25 }
 0x8e9   :  { %1004 = vrot.lane.b32.xlu0 %v3286_v14, %s3126_s28  ;;  %s3797_s28 = smov 24  }
 0x958   :  { %v946_v26 = vpop.xlane.xlu0 %945 }
 0x959   :  { %3066 = vrcp.f32 %v946_v26  ;;  %v3028_v26 = vld [vmem:[%s3776_s9 + $0x8] sm:$0xff]  }
 0x95c   :  { %v949_v27 = vpop.xlane.xlu0 %948 }
 0x95d   :  { %3068 = vrcp.f32 %v949_v27  ;;  %v3029_v27 = vld [vmem:[%s3776_s9] sm:$0xff]  }
 0x960   :  { %v1005_v28 = vpop.permute.xlu0 %1004 }
 0x961   :  { %v1010_v29 = vsel %vm288_vm3, %v1005_v28, 0 }
 0x962   :  { %2823 = vmatpush3.bf16.msra.mxu0 %v1010_v29 }
 0x963   :  { %2836 = vmatprep.subr.bf16.mxu0 %v3114_v0 }
 0x966   :  { %v3067_v30 = vpop.eup %3066 }
 0x967   :  { %v952_v31 = vmul.f32 %v3067_v30, %v3063_v54  ;;  %v3027_v54 = vld [vmem:[%s3818_s5] sm:$0xff]  }
 0x969   :  { %v954_v32 = vpack.c.bf16 %v952_v31, %v952_v31 }
 0x96a   :  { %v3069_v33 = vpop.eup %3068 }
 0x96b   :  { %2819 = vmatmul.mubr.msk.bf16.vlgmr.msra.gmra.mxu1 %vm159_vm2, %v954_v32  ;;  %v953_v34 = vmul.f32 %v3069_v33, %v3065_v58  ;;  %v78_v58 = vld [vmem:[%s3819_s29 + $0x8] sm:$0xff] }
 0x96c   :  { %2832 = vmatprep.mubr.msk.bf16.mxu1 %vm3115_vm0, %v3114_v0  ;;  %2829 = vmatpush3.bf16.msra.mxu1 %v3024_v35  ;;  %v1262_v25 = vpack.c.bf16 %v78_v58, %v77_v57  ;;  %v2593_v35 = vld [vmem:[%s3777_s7] ss:$0 sm:$0xff] }
 0x96d   :  { %v955_v14 = vpack.c.bf16 %v953_v34, %v953_v34  ;;  %2830 = vmatprep.subr.bf16.mxu1 %v3114_v0 }
 0x96f   :  { %2825 = vmatmul.mubr.msk.bf16.vlgmr.msra.gmra.mxu0 %vm159_vm2, %v955_v14 }
 0x970   :  { %2840 = vmatprep.mubr.msk.bf16.mxu0 %vm3115_vm0, %v3114_v0  ;;  %2831 = vmatpush3.bf16.msra.mxu1 %v3025_v36 }
 0x971   :  { %2844 = vmatprep.subr.bf16.mxu1 %v3114_v0  ;;  %2837 = vmatpush3.bf16.msra.mxu0 %v3028_v26 }
 0x972   :  { %2838 = vmatprep.subr.bf16.mxu0 %v3114_v0 }
 0x975   :  { %2839 = vmatpush3.bf16.msra.mxu0 %v3029_v27 }
 0x976   :  { %2852 = vmatprep.subr.bf16.mxu0 %v3114_v0 }
 0xa2b   :  { %v998_v37 = vpop.f32.mrf.mxu1 }
 0xa2d   :  { %v2820_v38 = vpop.f32.mrf.mxu1 }
 0xa2f   :  { %v1001_v39 = vpop.f32.mrf.mxu1  ;;  %v1046_v40 = vpop.f32.mrf.mxu0 }
 0xa30   :  { %v3002_v41 = vpack.i.bf16 %v1046_v40, %v998_v37  ;;  %v2594_v39 = vld [vmem:[%s3778_s8] ss:$0 sm:$0xff] }
 0xa31   :  { %v2821_v42 = vpop.f32.mrf.mxu1  ;;  %v2826_v43 = vpop.f32.mrf.mxu0 }
 0xa32   :  { %3003 = vrot.lane.b32.xlu0 %v3002_v41, %s3797_s28 }
 0xa33   :  { %v1049_v44 = vpop.f32.mrf.mxu0 }
 0xa34   :  { %v2599_v44 = vld [vmem:[%s3779_s12] ss:$0 sm:$0xff] }
 0xa35   :  { %v2827_v45 = vpop.f32.mrf.mxu0 }
 0xaa4   :  { %v3004_v52 = vpop.permute.xlu0 %3003 }
 0xaa5   :  { %v3006_v56 = vunpack.i.h.bf16 %v3004_v52  ;;  %v3005_v59 = vunpack.i.l.bf16 %v3004_v52 }
 0xaa7   :  { %v1083_v63 = vsel %vm1081_vm5, %v1080_v60, %v3006_v56  ;;  %v1082_v1 = vsel %vm1081_vm5, %v1079_v61, %v3005_v59  ;;  %v2595_v56 = vld [vmem:[%s3780_s10] ss:$0 sm:$0xff]  ;;  %s3820_s10 = smov 104  }
 0xaa8   :  { %v1084_v5 = vpack.c.bf16 %v1083_v63, %v1082_v1 }
 0xaaa   :  { %2833 = vmatmul.mubr.msk.bf16.vlgmr.msra.gmra.mxu1 %vm103_vm1, %v1084_v5 }
 0xaab   :  { %2848 = vmatprep.mubr.msk.bf16.mxu1 %vm3115_vm0, %v3114_v0 }
 0xb6a   :  { %v1140_v2 = vpop.f32.mrf.mxu1 }
 0xb6b   :  { %v1141_v6 = vadd.f32 %v2589_v62, %v1140_v2 }
 0xb6c   :  { %v2834_v7 = vpop.f32.mrf.mxu1 }
 0xb6d   :  { %v1147_v8 = vadd.f32 %v1141_v6, %v3265_v3 }
 0xb6e   :  { %v1143_v9 = vpop.f32.mrf.mxu1 }
 0xb6f   :  { %v1144_v11 = vadd.f32 %v2589_v62, %v1143_v9  ;;  %v1151_v12 = vsel %vm103_vm1, %v1147_v8, 0.0 }
 0xb70   :  { %1152 = vadd.xlane.f32.xlu1 %v1151_v12  ;;  %v2835_v13 = vpop.f32.mrf.mxu1 }
 0xb71   :  { %v1148_v15 = vadd.f32 %v1144_v11, %v3270_v4  ;;  %v3026_v4 = vld [vmem:[%s3818_s5 + $0x8] sm:$0xff]  }
 0xb72   :  { %2845 = vmatpush3.bf16.msra.mxu1 %v3026_v4 }
 0xb73   :  { %v1154_v16 = vsel %vm103_vm1, %v1148_v15, 0.0  ;;  %2846 = vmatprep.subr.bf16.mxu1 %v3114_v0 }
 0xb74   :  { %1155 = vadd.xlane.f32.xlu0 %v1154_v16 }
 0xb76   :  { %2847 = vmatpush3.bf16.msra.mxu1 %v3027_v54 }
 0xb77   :  { %2858 = vmatprep.subr.bf16.mxu1 %v3114_v0 }
 0xb79   :  { %2849 = vmatmul.mubr.msk.bf16.vlgmr.msra.gmra.mxu1 %vm103_vm1, %v1262_v25 }
 0xb7a   :  { %2860 = vmatprep.mubr.msk.bf16.mxu1 %vm3115_vm0, %v3114_v0 }
 0xbf9   :  { %v1153_v17 = vpop.xlane.xlu1 %1152 }
 0xbfa   :  { %v1158_v18 = vmul.f32 0.03125, %v1153_v17 }
 0xbfc   :  { %v1160_v20 = vsub.f32 %v1147_v8, %v1158_v18 }
 0xbfd   :  { %v1156_v19 = vpop.xlane.xlu0 %1155 }
 0xbfe   :  { %v1159_v21 = vmul.f32 0.03125, %v1156_v19  ;;  %v1162_v22 = vmul.f32 %v1160_v20, %v1160_v20 }
 0xc00   :  { %v1161_v23 = vsub.f32 %v1148_v15, %v1159_v21  ;;  %v1164_v3 = vsel %vm103_vm1, %v1162_v22, 0.0 }
 0xc01   :  { %1165 = vadd.xlane.f32.xlu0 %v1164_v3 }
 0xc02   :  { %v1163_v24 = vmul.f32 %v1161_v23, %v1161_v23 }
 0xc04   :  { %v1167_v10 = vsel %vm103_vm1, %v1163_v24, 0.0 }
 0xc05   :  { %1168 = vadd.xlane.f32.xlu1 %v1167_v10 }
 0xc39   :  { %v1323_v45 = vpop.f32.mrf.mxu1 }
 0xc3a   :  { %v1324_v46 = vadd.f32 %v2599_v44, %v1323_v45 }
 0xc3b   :  { %v2850_v47 = vpop.f32.mrf.mxu1 }
 0xc3c   :  { %v3520_v48 = vpack.c.bf16 %v1324_v46, %v1324_v46 }
 0xc3d   :  { %v1326_v49 = vpop.f32.mrf.mxu1 }
 0xc3e   :  { %v1327_v50 = vadd.f32 %v2599_v44, %v1326_v49  ;;  %v1343_v51 = vsel %vm159_vm2, %v3520_v48, 0 }
 0xc3f   :  { %v2851_v52 = vpop.f32.mrf.mxu1 }
 0xc40   :  { %v3524_v53 = vpack.c.bf16 %v1327_v50, %v1327_v50 }
 0xc42   :  { %v1389_v55 = vsel %vm159_vm2, %v3524_v53, 0 }
 0xc43   :  { %2859 = vmatpush3.bf16.xpose.msra.mxu1 %v1389_v55 }
 0xc44   :  { %2870 = vmatprep.subr.bf16.mxu1 %v3114_v0 }
 0xc8a   :  { %v1166_v28 = vpop.xlane.xlu0 %1165 }
 0xc8b   :  { %v1170_v29 = vmul.f32 0.03125, %v1166_v28 }
 0xc8d   :  { %v1172_v30 = vadd.f32 1e-05, %v1170_v29 }
 0xc8e   :  { %v1169_v31 = vpop.xlane.xlu1 %1168 }
 0xc8f   :  { %3070 = vrsqrt.f32 %v1172_v30  ;;  %v1171_v32 = vmul.f32 0.03125, %v1169_v31 }
 0xc91   :  { %v1173_v33 = vadd.f32 1e-05, %v1171_v32 }
 0xc93   :  { %3072 = vrsqrt.f32 %v1173_v33 }
 0xc9c   :  { %v3071_v34 = vpop.eup %3070 }
 0xc9d   :  { %v1176_v14 = vmul.f32 %v3071_v34, %v1160_v20 }
 0xc9f   :  { %v1184_v38 = vmul.f32 %v2593_v35, %v1176_v14 }
 0xca0   :  { %v3073_v36 = vpop.eup %3072 }
 0xca1   :  { %v1177_v37 = vmul.f32 %v3073_v36, %v1161_v23  ;;  %v3508_v41 = vadd.f32 %v2594_v39, %v1184_v38 }
 0xca3   :  { %v1185_v40 = vmul.f32 %v2593_v35, %v1177_v37 }
 0xca5   :  { %v3510_v42 = vadd.f32 %v2594_v39, %v1185_v40 }
 0xca7   :  { %v1194_v43 = vpack.c.bf16 %v3510_v42, %v3508_v41 }
 0xca9   :  { %2841 = vmatmul.mubr.msk.bf16.vlgmr.msra.gmra.mxu0 %vm103_vm1, %v1194_v43 }
 0xcaa   :  { %2854 = vmatprep.mubr.msk.bf16.mxu0 %vm3115_vm0, %v3114_v0  ;;  %2853 = vmatpush3.bf16.xpose.msra.mxu0 %v1343_v51 }
 0xcab   :  { %2864 = vmatprep.subr.bf16.mxu0 %v3114_v0 }
 0xd69   :  { %v1255_v59 = vpop.f32.mrf.mxu0 }
 0xd6a   :  { %v1256_v60 = vadd.f32 %v2595_v56, %v1255_v59 }
 0xd6b   :  { %v2842_v61 = vpop.f32.mrf.mxu0 }
 0xd6c   :  { %v3533_v63 = vpack.c.bf16 %v1256_v60, %v1256_v60 }
 0xd6d   :  { %v1258_v1 = vpop.f32.mrf.mxu0 }
 0xd6e   :  { %v1259_v5 = vadd.f32 %v2595_v56, %v1258_v1  ;;  %2855 = vmatmul.mubr.msk.bf16.vlgmr.msra.gmra.mxu0 %vm159_vm2, %v3533_v63 }
 0xd6f   :  { %v2843_v62 = vpop.f32.mrf.mxu0  ;;  %2866 = vmatprep.mubr.msk.bf16.mxu0 %vm3115_vm0, %v3114_v0 }
 0xd70   :  { %v3539_v2 = vpack.c.bf16 %v1259_v5, %v1259_v5 }
 0xd72   :  { %2861 = vmatmul.mubr.msk.bf16.vlgmr.msra.gmra.mxu1 %vm159_vm2, %v3539_v2 }
 0xd73   :  { %2872 = vmatprep.mubr.msk.bf16.mxu1 %vm3115_vm0, %v3114_v0 }
 0xe2e   :  { %v1379_v6 = vpop.f32.mrf.mxu0 }
 0xe2f   :  { %v1431_v7 = vmul.f32 0.35355338, %v1379_v6 }
 0xe30   :  { %v2856_v8 = vpop.f32.mrf.mxu0 }
 0xe31   :  { %v1433_v9 = vsel %vm159_vm2, %v1431_v7, -inf }
 0xe32   :  { %1434 = vmax.xlane.f32.xlu0 %v1433_v9  ;;  %v1382_v11 = vpop.f32.mrf.mxu0  ;;  %v1425_v12 = vpop.f32.mrf.mxu1 }
 0xe33   :  { %v1432_v13 = vmul.f32 0.35355338, %v1425_v12 }
 0xe34   :  { %v2857_v15 = vpop.f32.mrf.mxu0  ;;  %v2862_v16 = vpop.f32.mrf.mxu1 }
 0xe35   :  { %v1436_v17 = vsel %vm159_vm2, %v1432_v13, -inf }
 0xe36   :  { %1437 = vmax.xlane.f32.xlu1 %v1436_v17  ;;  %v1428_v18 = vpop.f32.mrf.mxu1 }
 0xe38   :  { %v2863_v20 = vpop.f32.mrf.mxu1 }
 0xe47   :  { %1507 = vrot.lane.b32.xlu1 %v3524_v53, %s3116_s2 }
 0xe48   :  { %1458 = vrot.lane.b32.xlu0 %v3520_v48, %s3116_s2  ;;  %s3821_s2 = smov 72  }
 0xebb   :  { %v1435_v19 = vpop.xlane.xlu0 %1434 }
 0xebc   :  { %v1439_v21 = vsub.f32 %v1431_v7, %v1435_v19 }
 0xebe   :  { %v1441_v22 = vmul.f32 1.442695, %v1439_v21 }
 0xebf   :  { %v1459_v23 = vpop.permute.xlu0 %1458  ;;  %v1438_v3 = vpop.xlane.xlu1 %1437 }
 0xec0   :  { %3074 = vpow2.f32 %v1441_v22  ;;  %v1464_v24 = vsel %vm288_vm3, %v1459_v23, 0  ;;  %v1440_v10 = vsub.f32 %v1432_v13, %v1438_v3 }
 0xec1   :  { %2865 = vmatpush3.bf16.msra.mxu0 %v1464_v24 }
 0xec2   :  { %v1443_v4 = vmul.f32 1.442695, %v1440_v10  ;;  %2876 = vmatprep.subr.bf16.mxu0 %v3114_v0 }
 0xec3   :  { %v1508_v54 = vpop.permute.xlu1 %1507 }
 0xec4   :  { %3076 = vpow2.f32 %v1443_v4  ;;  %v1513_v57 = vsel %vm288_vm3, %v1508_v54, 0 }
 0xec5   :  { %2871 = vmatpush3.bf16.msra.mxu1 %v1513_v57 }
 0xec6   :  { %2882 = vmatprep.subr.bf16.mxu1 %v3114_v0 }
 0xecd   :  { %v3075_v58 = vpop.eup %3074 }
 0xece   :  { %v1445_v25 = vsel %vm159_vm2, %v3075_v58, 0.0 }
 0xecf   :  { %1446 = vadd.xlane.f32.xlu0 %v1445_v25 }
 0xed1   :  { %v3077_v26 = vpop.eup %3076 }
 0xed2   :  { %v1448_v27 = vsel %vm159_vm2, %v3077_v26, 0.0 }
 0xed3   :  { %1449 = vadd.xlane.f32.xlu1 %v1448_v27 }
 0xee4   :  { %1558 = vrot.lane.b32.xlu1 %v3520_v48, %s3119_s6 }
 0xee5   :  { %1609 = vrot.lane.b32.xlu0 %v3524_v53, %s3119_s6 }
 0xee8   :  { %1556 = vrot.lane.b32.xlu1 %v3533_v63, %s3119_s6 }
 0xee9   :  { %1607 = vrot.lane.b32.xlu0 %v3539_v2, %s3119_s6  ;;  %s3823_s6 = smov 16  }
 0xf58   :  { %v1447_v28 = vpop.xlane.xlu0 %1446 }
 0xf59   :  { %3078 = vrcp.f32 %v1447_v28 }
 0xf5c   :  { %v1450_v29 = vpop.xlane.xlu1 %1449  ;;  %v1610_v36 = vpop.permute.xlu0 %1609 }
 0xf5d   :  { %3080 = vrcp.f32 %v1450_v29  ;;  %v1615_v38 = vsel %vm159_vm2, %v1610_v36, 0 }
 0xf60   :  { %v1559_v32 = vpop.permute.xlu1 %1558  ;;  %v1608_v40 = vpop.permute.xlu0 %1607 }
 0xf61   :  { %v1564_v14 = vsel %vm159_vm2, %v1559_v32, 0 }
 0xf64   :  { %v1557_v39 = vpop.permute.xlu1 %1556 }
 0xf66   :  { %v3079_v30 = vpop.eup %3078 }
 0xf67   :  { %v1453_v31 = vmul.f32 %v3079_v30, %v3075_v58 }
 0xf69   :  { %v1455_v33 = vpack.c.bf16 %v1453_v31, %v1453_v31 }
 0xf6a   :  { %v3081_v34 = vpop.eup %3080 }
 0xf6b   :  { %2867 = vmatmul.mubr.msk.bf16.vlgmr.msra.gmra.mxu0 %vm159_vm2, %v1455_v33  ;;  %v1454_v35 = vmul.f32 %v3081_v34, %v3077_v26 }
 0xf6c   :  { %2877 = vmatpush3.bf16.xpose.msra.mxu0 %v1564_v14  ;;  %2878 = vmatprep.mubr.msk.bf16.mxu0 %vm3115_vm0, %v3114_v0 }
 0xf6d   :  { %v1456_v37 = vpack.c.bf16 %v1454_v35, %v1454_v35  ;;  %2888 = vmatprep.subr.bf16.mxu0 %v3114_v0 }
 0xf6f   :  { %2873 = vmatmul.mubr.msk.bf16.vlgmr.msra.gmra.mxu1 %vm159_vm2, %v1456_v37 }
 0xf70   :  { %2883 = vmatpush3.bf16.xpose.msra.mxu1 %v1615_v38  ;;  %2884 = vmatprep.mubr.msk.bf16.mxu1 %vm3115_vm0, %v3114_v0 }
 0xf71   :  { %2894 = vmatprep.subr.bf16.mxu1 %v3114_v0 }
 0xf73   :  { %2879 = vmatmul.mubr.msk.bf16.vlgmr.msra.gmra.mxu0 %vm159_vm2, %v1557_v39 }
 0xf74   :  { %2890 = vmatprep.mubr.msk.bf16.mxu0 %vm3115_vm0, %v3114_v0 }
 0xf77   :  { %2885 = vmatmul.mubr.msk.bf16.vlgmr.msra.gmra.mxu1 %vm159_vm2, %v1608_v40 }
 0xf78   :  { %2896 = vmatprep.mubr.msk.bf16.mxu1 %vm3115_vm0, %v3114_v0 }
0x102b   :  { %v3581_v43 = vpop.f32.mrf.mxu0 }
0x102d   :  { %v2868_v44 = vpop.f32.mrf.mxu0 }
0x102f   :  { %v1503_v45 = vpop.f32.mrf.mxu0  ;;  %v3583_v46 = vpop.f32.mrf.mxu1 }
0x1031   :  { %v2869_v47 = vpop.f32.mrf.mxu0  ;;  %v2874_v49 = vpop.f32.mrf.mxu1 }
0x1033   :  { %v1552_v50 = vpop.f32.mrf.mxu1  ;;  %v1600_v51 = vpop.f32.mrf.mxu0 }
0x1034   :  { %v1657_v52 = vmul.f32 0.35355338, %v1600_v51 }
0x1035   :  { %v2875_v55 = vpop.f32.mrf.mxu1  ;;  %v2880_v56 = vpop.f32.mrf.mxu0 }
0x1036   :  { %v1659_v59 = vsel %vm159_vm2, %v1657_v52, -inf }
0x1037   :  { %1660 = vmax.xlane.f32.xlu1 %v1659_v59  ;;  %v1603_v60 = vpop.f32.mrf.mxu0  ;;  %v1651_v61 = vpop.f32.mrf.mxu1 }
0x1038   :  { %v1658_v1 = vmul.f32 0.35355338, %v1651_v61 }
0x1039   :  { %v2881_v5 = vpop.f32.mrf.mxu0  ;;  %v2886_v62 = vpop.f32.mrf.mxu1 }
0x103a   :  { %v1662_v6 = vsel %vm159_vm2, %v1658_v1, -inf }
0x103b   :  { %1663 = vmax.xlane.f32.xlu0 %v1662_v6  ;;  %v1654_v7 = vpop.f32.mrf.mxu1 }
0x103d   :  { %v2887_v8 = vpop.f32.mrf.mxu1 }
0x1048   :  { %1731 = vrot.lane.b32.xlu1 %v3524_v53, %s3118_s25 }
0x1051   :  { %1683 = vrot.lane.b32.xlu0 %v3520_v48, %s3118_s25  ;;  %s3822_s25 = smov 8  }
0x10c0   :  { %v1661_v9 = vpop.xlane.xlu1 %1660 }
0x10c1   :  { %v1665_v11 = vsub.f32 %v1657_v52, %v1661_v9 }
0x10c3   :  { %v1667_v12 = vmul.f32 1.442695, %v1665_v11 }
0x10c4   :  { %v1732_v13 = vpop.permute.xlu1 %1731  ;;  %v1664_v15 = vpop.xlane.xlu0 %1663 }
0x10c5   :  { %3082 = vpow2.f32 %v1667_v12  ;;  %v1737_v16 = vsel %vm288_vm3, %v1732_v13, 0  ;;  %v1666_v17 = vsub.f32 %v1658_v1, %v1664_v15 }
0x10c6   :  { %2895 = vmatpush3.bf16.msra.mxu1 %v1737_v16 }
0x10c7   :  { %v1669_v18 = vmul.f32 1.442695, %v1666_v17  ;;  %2906 = vmatprep.subr.bf16.mxu1 %v3114_v0 }
0x10c8   :  { %v1684_v20 = vpop.permute.xlu0 %1683 }
0x10c9   :  { %3084 = vpow2.f32 %v1669_v18  ;;  %v1689_v19 = vsel %vm288_vm3, %v1684_v20, 0 }
0x10ca   :  { %2889 = vmatpush3.bf16.msra.mxu0 %v1689_v19 }
0x10cb   :  { %2900 = vmatprep.subr.bf16.mxu0 %v3114_v0 }
0x10d2   :  { %v3083_v21 = vpop.eup %3082 }
0x10d3   :  { %v1671_v22 = vsel %vm159_vm2, %v3083_v21, 0.0 }
0x10d4   :  { %1672 = vadd.xlane.f32.xlu0 %v1671_v22 }
0x10d6   :  { %v3085_v23 = vpop.eup %3084 }
0x10d7   :  { %v1674_v3 = vsel %vm159_vm2, %v3085_v23, 0.0 }
0x10d8   :  { %1675 = vadd.xlane.f32.xlu1 %v1674_v3 }
0x10e9   :  { %1781 = vrot.lane.b32.xlu1 %v3520_v48, %s3122_s4 }
0x10ea   :  { %1831 = vrot.lane.b32.xlu0 %v3524_v53, %s3122_s4 }
0x10ed   :  { %1779 = vrot.lane.b32.xlu1 %v3533_v63, %s3122_s4 }
0x10ee   :  { %1829 = vrot.lane.b32.xlu0 %v3539_v2, %s3122_s4 }
0x115d   :  { %v1673_v24 = vpop.xlane.xlu0 %1672 }
0x115e   :  { %3086 = vrcp.f32 %v1673_v24 }
0x1161   :  { %v1676_v10 = vpop.xlane.xlu1 %1675  ;;  %v1832_v28 = vpop.permute.xlu0 %1831 }
0x1162   :  { %3088 = vrcp.f32 %v1676_v10  ;;  %v1837_v30 = vsel %vm159_vm2, %v1832_v28, 0 }
0x1165   :  { %v1782_v57 = vpop.permute.xlu1 %1781  ;;  %v1830_v32 = vpop.permute.xlu0 %1829 }
0x1166   :  { %v1787_v26 = vsel %vm159_vm2, %v1782_v57, 0 }
0x1169   :  { %v1780_v31 = vpop.permute.xlu1 %1779 }
0x116b   :  { %v3087_v4 = vpop.eup %3086 }
0x116c   :  { %v1679_v54 = vmul.f32 %v3087_v4, %v3083_v21 }
0x116e   :  { %v1681_v58 = vpack.c.bf16 %v1679_v54, %v1679_v54 }
0x116f   :  { %v3089_v25 = vpop.eup %3088 }
0x1170   :  { %2891 = vmatmul.mubr.msk.bf16.vlgmr.msra.gmra.mxu0 %vm159_vm2, %v1681_v58  ;;  %v1680_v27 = vmul.f32 %v3089_v25, %v3085_v23 }
0x1171   :  { %2901 = vmatpush3.bf16.xpose.msra.mxu0 %v1787_v26  ;;  %2902 = vmatprep.mubr.msk.bf16.mxu0 %vm3115_vm0, %v3114_v0 }
0x1172   :  { %v1682_v29 = vpack.c.bf16 %v1680_v27, %v1680_v27  ;;  %2912 = vmatprep.subr.bf16.mxu0 %v3114_v0 }
0x1174   :  { %2897 = vmatmul.mubr.msk.bf16.vlgmr.msra.gmra.mxu1 %vm159_vm2, %v1682_v29 }
0x1175   :  { %2907 = vmatpush3.bf16.xpose.msra.mxu1 %v1837_v30  ;;  %2908 = vmatprep.mubr.msk.bf16.mxu1 %vm3115_vm0, %v3114_v0 }
0x1176   :  { %2918 = vmatprep.subr.bf16.mxu1 %v3114_v0 }
0x1178   :  { %2903 = vmatmul.mubr.msk.bf16.vlgmr.msra.gmra.mxu0 %vm159_vm2, %v1780_v31 }
0x1179   :  { %2914 = vmatprep.mubr.msk.bf16.mxu0 %vm3115_vm0, %v3114_v0 }
0x117c   :  { %2909 = vmatmul.mubr.msk.bf16.vlgmr.msra.gmra.mxu1 %vm159_vm2, %v1830_v32 }
0x117d   :  { %2920 = vmatprep.mubr.msk.bf16.mxu1 %vm3115_vm0, %v3114_v0 }
0x1230   :  { %v3621_v33 = vpop.f32.mrf.mxu0 }
0x1232   :  { %v2892_v34 = vpop.f32.mrf.mxu0 }
0x1234   :  { %v1728_v14 = vpop.f32.mrf.mxu0  ;;  %v3623_v35 = vpop.f32.mrf.mxu1 }
0x1235   :  { %v3007_v36 = vpack.i.bf16 %v3623_v35, %v3621_v33 }
0x1236   :  { %v2893_v37 = vpop.f32.mrf.mxu0  ;;  %v2898_v38 = vpop.f32.mrf.mxu1 }
0x1238   :  { %v1776_v39 = vpop.f32.mrf.mxu1  ;;  %v1823_v40 = vpop.f32.mrf.mxu0 }
0x1239   :  { %v1879_v44 = vmul.f32 0.35355338, %v1823_v40 }
0x123a   :  { %v2899_v45 = vpop.f32.mrf.mxu1  ;;  %v2904_v47 = vpop.f32.mrf.mxu0 }
0x123b   :  { %v1881_v49 = vsel %vm159_vm2, %v1879_v44, -inf }
0x123c   :  { %1882 = vmax.xlane.f32.xlu1 %v1881_v49  ;;  %v1826_v50 = vpop.f32.mrf.mxu0  ;;  %v1873_v51 = vpop.f32.mrf.mxu1 }
0x123d   :  { %v1880_v52 = vmul.f32 0.35355338, %v1873_v51 }
0x123e   :  { %v2905_v55 = vpop.f32.mrf.mxu0  ;;  %v2910_v56 = vpop.f32.mrf.mxu1 }
0x123f   :  { %v1884_v59 = vsel %vm159_vm2, %v1880_v52, -inf }
0x1240   :  { %1885 = vmax.xlane.f32.xlu0 %v1884_v59  ;;  %v1876_v60 = vpop.f32.mrf.mxu1 }
0x1242   :  { %v2911_v61 = vpop.f32.mrf.mxu1 }
0x124d   :  { %1953 = vrot.lane.b32.xlu1 %v3524_v53, %s3121_s26 }
0x1256   :  { %1905 = vrot.lane.b32.xlu0 %v3520_v48, %s3121_s26 }
0x12c5   :  { %v1883_v1 = vpop.xlane.xlu1 %1882 }
0x12c6   :  { %v1887_v5 = vsub.f32 %v1879_v44, %v1883_v1 }
0x12c8   :  { %v1889_v62 = vmul.f32 1.442695, %v1887_v5 }
0x12c9   :  { %v1954_v6 = vpop.permute.xlu1 %1953  ;;  %v1886_v7 = vpop.xlane.xlu0 %1885 }
0x12ca   :  { %3090 = vpow2.f32 %v1889_v62  ;;  %v1959_v8 = vsel %vm288_vm3, %v1954_v6, 0  ;;  %v1888_v9 = vsub.f32 %v1880_v52, %v1886_v7 }
0x12cb   :  { %2919 = vmatpush3.bf16.msra.mxu1 %v1959_v8 }
0x12cc   :  { %v1891_v11 = vmul.f32 1.442695, %v1888_v9  ;;  %2930 = vmatprep.subr.bf16.mxu1 %v3114_v0 }
0x12cd   :  { %v1906_v12 = vpop.permute.xlu0 %1905 }
0x12ce   :  { %3092 = vpow2.f32 %v1891_v11  ;;  %v1911_v13 = vsel %vm288_vm3, %v1906_v12, 0 }
0x12cf   :  { %2913 = vmatpush3.bf16.msra.mxu0 %v1911_v13 }
0x12d0   :  { %2924 = vmatprep.subr.bf16.mxu0 %v3114_v0 }
0x12d7   :  { %v3091_v15 = vpop.eup %3090 }
0x12d8   :  { %v1893_v16 = vsel %vm159_vm2, %v3091_v15, 0.0 }
0x12d9   :  { %1894 = vadd.xlane.f32.xlu0 %v1893_v16 }
0x12db   :  { %v3093_v17 = vpop.eup %3092 }
0x12dc   :  { %v1896_v18 = vsel %vm159_vm2, %v3093_v17, 0.0 }
0x12dd   :  { %1897 = vadd.xlane.f32.xlu1 %v1896_v18  ;;  %v3031_v18 = vld [vmem:[%s3781_s13] sm:$0xff]  }
0x12ee   :  { %2003 = vrot.lane.b32.xlu1 %v3520_v48, %s3820_s10 }
0x12ef   :  { %2053 = vrot.lane.b32.xlu0 %v3524_v53, %s3820_s10 }
0x12f2   :  { %2001 = vrot.lane.b32.xlu1 %v3533_v63, %s3820_s10 }
0x12f3   :  { %2051 = vrot.lane.b32.xlu0 %v3539_v2, %s3820_s10 }
0x1362   :  { %v1895_v20 = vpop.xlane.xlu0 %1894 }
0x1363   :  { %3094 = vrcp.f32 %v1895_v20 }
0x1366   :  { %v1898_v19 = vpop.xlane.xlu1 %1897  ;;  %v2054_v54 = vpop.permute.xlu0 %2053 }
0x1367   :  { %3096 = vrcp.f32 %v1898_v19  ;;  %v2059_v2 = vsel %vm159_vm2, %v2054_v54, 0 }
0x136a   :  { %v2004_v23 = vpop.permute.xlu1 %2003  ;;  %v2052_v58 = vpop.permute.xlu0 %2051 }
0x136b   :  { %v2009_v10 = vsel %vm159_vm2, %v2004_v23, 0 }
0x136e   :  { %v2002_v57 = vpop.permute.xlu1 %2001 }
0x1370   :  { %v3095_v21 = vpop.eup %3094 }
0x1371   :  { %v1901_v22 = vmul.f32 %v3095_v21, %v3091_v15 }
0x1373   :  { %v1903_v3 = vpack.c.bf16 %v1901_v22, %v1901_v22 }
0x1374   :  { %v3097_v24 = vpop.eup %3096 }
0x1375   :  { %2915 = vmatmul.mubr.msk.bf16.vlgmr.msra.gmra.mxu0 %vm159_vm2, %v1903_v3  ;;  %v1902_v4 = vmul.f32 %v3097_v24, %v3093_v17  ;;  %v3030_v17 = vld [vmem:[%s3781_s13 + $0x8] sm:$0xff]  }
0x1376   :  { %2925 = vmatpush3.bf16.xpose.msra.mxu0 %v2009_v10  ;;  %2926 = vmatprep.mubr.msk.bf16.mxu0 %vm3115_vm0, %v3114_v0 }
0x1377   :  { %v1904_v63 = vpack.c.bf16 %v1902_v4, %v1902_v4  ;;  %2936 = vmatprep.subr.bf16.mxu0 %v3114_v0 }
0x1379   :  { %2921 = vmatmul.mubr.msk.bf16.vlgmr.msra.gmra.mxu1 %vm159_vm2, %v1904_v63 }
0x137a   :  { %2931 = vmatpush3.bf16.xpose.msra.mxu1 %v2059_v2  ;;  %2932 = vmatprep.mubr.msk.bf16.mxu1 %vm3115_vm0, %v3114_v0 }
0x137b   :  { %2942 = vmatprep.subr.bf16.mxu1 %v3114_v0 }
0x137d   :  { %2927 = vmatmul.mubr.msk.bf16.vlgmr.msra.gmra.mxu0 %vm159_vm2, %v2002_v57 }
0x137e   :  { %2938 = vmatprep.mubr.msk.bf16.mxu0 %vm3115_vm0, %v3114_v0 }
0x1381   :  { %2933 = vmatmul.mubr.msk.bf16.vlgmr.msra.gmra.mxu1 %vm159_vm2, %v2052_v58 }
0x1382   :  { %2944 = vmatprep.mubr.msk.bf16.mxu1 %vm3115_vm0, %v3114_v0 }
0x1435   :  { %v1947_v25 = vpop.f32.mrf.mxu0 }
0x1437   :  { %v2916_v26 = vpop.f32.mrf.mxu0 }
0x1439   :  { %v1950_v27 = vpop.f32.mrf.mxu0  ;;  %v1995_v28 = vpop.f32.mrf.mxu1 }
0x143a   :  { %v3012_v29 = vpack.i.bf16 %v1995_v28, %v1947_v25 }
0x143b   :  { %v2917_v30 = vpop.f32.mrf.mxu0  ;;  %v2922_v31 = vpop.f32.mrf.mxu1 }
0x143d   :  { %v1998_v32 = vpop.f32.mrf.mxu1  ;;  %v2045_v34 = vpop.f32.mrf.mxu0 }
0x143e   :  { %v2101_v14 = vmul.f32 0.35355338, %v2045_v34 }
0x143f   :  { %v2923_v37 = vpop.f32.mrf.mxu1  ;;  %v2928_v38 = vpop.f32.mrf.mxu0 }
0x1440   :  { %v2103_v39 = vsel %vm159_vm2, %v2101_v14, -inf }
0x1441   :  { %2104 = vmax.xlane.f32.xlu1 %v2103_v39  ;;  %v2048_v40 = vpop.f32.mrf.mxu0  ;;  %v2095_v44 = vpop.f32.mrf.mxu1 }
0x1442   :  { %v2102_v45 = vmul.f32 0.35355338, %v2095_v44 }
0x1443   :  { %v2929_v47 = vpop.f32.mrf.mxu0  ;;  %v2934_v49 = vpop.f32.mrf.mxu1 }
0x1444   :  { %v2106_v50 = vsel %vm159_vm2, %v2102_v45, -inf }
0x1445   :  { %2107 = vmax.xlane.f32.xlu0 %v2106_v50  ;;  %v2098_v51 = vpop.f32.mrf.mxu1 }
0x1447   :  { %v2935_v52 = vpop.f32.mrf.mxu1 }
0x14ca   :  { %v2105_v55 = vpop.xlane.xlu1 %2104 }
0x14cb   :  { %v2109_v56 = vsub.f32 %v2101_v14, %v2105_v55 }
0x14cd   :  { %v2111_v59 = vmul.f32 1.442695, %v2109_v56 }
0x14ce   :  { %v2108_v60 = vpop.xlane.xlu0 %2107 }
0x14cf   :  { %3098 = vpow2.f32 %v2111_v59  ;;  %v2110_v61 = vsub.f32 %v2102_v45, %v2108_v60 }
0x14d1   :  { %v2113_v1 = vmul.f32 1.442695, %v2110_v61 }
0x14d3   :  { %3100 = vpow2.f32 %v2113_v1 }
0x14dc   :  { %v3099_v5 = vpop.eup %3098 }
0x14dd   :  { %v2115_v62 = vsel %vm159_vm2, %v3099_v5, 0.0 }
0x14de   :  { %2116 = vadd.xlane.f32.xlu0 %v2115_v62 }
0x14e0   :  { %v3101_v6 = vpop.eup %3100 }
0x14e1   :  { %v2118_v7 = vsel %vm159_vm2, %v3101_v6, 0.0 }
0x14e2   :  { %2119 = vadd.xlane.f32.xlu1 %v2118_v7  ;;  %v3034_v7 = vld [vmem:[%s3784_s19 + $0x18] sm:$0xff]  }
0x14f3   :  { %2175 = vrot.lane.b32.xlu1 %v3524_v53, %s3821_s2 }
0x14f4   :  { %2127 = vrot.lane.b32.xlu0 %v3520_v48, %s3821_s2 }
0x14f7   :  { %3008 = vrot.lane.b32.xlu1 %v3007_v36, %s3822_s25 }
0x14f8   :  { %3013 = vrot.lane.b32.xlu0 %v3012_v29, %s3823_s6 }
0x1567   :  { %v2117_v8 = vpop.xlane.xlu0 %2116 }
0x1568   :  { %3102 = vrcp.f32 %v2117_v8 }
0x156b   :  { %v2120_v9 = vpop.xlane.xlu1 %2119  ;;  %v2128_v11 = vpop.permute.xlu0 %2127 }
0x156c   :  { %3104 = vrcp.f32 %v2120_v9  ;;  %v2133_v12 = vsel %vm288_vm3, %v2128_v11, 0 }
0x156d   :  { %2937 = vmatpush3.bf16.msra.mxu0 %v2133_v12 }
0x156e   :  { %2948 = vmatprep.subr.bf16.mxu0 %v3114_v0 }
0x156f   :  { %v2176_v53 = vpop.permute.xlu1 %2175  ;;  %v3014_v57 = vpop.permute.xlu0 %3013 }
0x1570   :  { %v2181_v48 = vsel %vm288_vm3, %v2176_v53, 0  ;;  %v3016_v26 = vunpack.i.h.bf16 %v3014_v57  ;;  %v3015_v27 = vunpack.i.l.bf16 %v3014_v57 }
0x1571   :  { %2943 = vmatpush3.bf16.msra.mxu1 %v2181_v48 }
0x1572   :  { %2956 = vmatprep.subr.bf16.mxu1 %v3114_v0 }
0x1573   :  { %v3009_v54 = vpop.permute.xlu1 %3008 }
0x1574   :  { %v3011_v63 = vunpack.i.h.bf16 %v3009_v54  ;;  %v3010_v2 = vunpack.i.l.bf16 %v3009_v54 }
0x1575   :  { %v3103_v33 = vpop.eup %3102 }
0x1576   :  { %v2123_v35 = vmul.f32 %v3103_v33, %v3099_v5  ;;  %v2248_v58 = vsel %vm159_vm2, %v3583_v46, %v3011_v63  ;;  %v2247_v25 = vsel %vm159_vm2, %v3581_v43, %v3010_v2  ;;  %v2619_v43 = vld [vmem:[%s3782_s14] ss:$0 sm:$0xff] }
0x1577   :  { %v2249_v31 = vsel %vm1078_vm4, %v2247_v25, %v3015_v27  ;;  %v2250_v32 = vsel %vm1078_vm4, %v2248_v58, %v3016_v26 }
0x1578   :  { %v2125_v36 = vpack.c.bf16 %v2123_v35, %v2123_v35 }
0x1579   :  { %v3105_v13 = vpop.eup %3104 }
0x157a   :  { %2939 = vmatmul.mubr.msk.bf16.vlgmr.msra.gmra.mxu0 %vm159_vm2, %v2125_v36  ;;  %v2124_v15 = vmul.f32 %v3105_v13, %v3101_v6  ;;  %v3033_v6 = vld [vmem:[%s3783_s17] sm:$0xff]  }
0x157b   :  { %2952 = vmatprep.mubr.msk.bf16.mxu0 %vm3115_vm0, %v3114_v0  ;;  %2949 = vmatpush3.bf16.msra.mxu0 %v3030_v17  ;;  %v2623_v36 = vld [vmem:[%s3785_s15] ss:$0 sm:$0xff] }
0x157c   :  { %v2126_v16 = vpack.c.bf16 %v2124_v15, %v2124_v15  ;;  %2950 = vmatprep.subr.bf16.mxu0 %v3114_v0  ;;  %v2624_v17 = vld [vmem:[%s3786_s16] ss:$0 sm:$0xff] }
0x157e   :  { %2945 = vmatmul.mubr.msk.bf16.vlgmr.msra.gmra.mxu1 %vm159_vm2, %v2126_v16 }
0x157f   :  { %2960 = vmatprep.mubr.msk.bf16.mxu1 %vm3115_vm0, %v3114_v0  ;;  %2951 = vmatpush3.bf16.msra.mxu0 %v3031_v18 }
0x1580   :  { %2964 = vmatprep.subr.bf16.mxu0 %v3114_v0 }
0x163a   :  { %v2169_v20 = vpop.f32.mrf.mxu0 }
0x163c   :  { %v2940_v19 = vpop.f32.mrf.mxu0 }
0x163e   :  { %v2172_v21 = vpop.f32.mrf.mxu0  ;;  %v2217_v22 = vpop.f32.mrf.mxu1 }
0x163f   :  { %v3017_v23 = vpack.i.bf16 %v2217_v22, %v2169_v20  ;;  %v3035_v22 = vld [vmem:[%s3784_s19 + $0x10] sm:$0xff]  }
0x1640   :  { %v2941_v3 = vpop.f32.mrf.mxu0  ;;  %v2946_v24 = vpop.f32.mrf.mxu1 }
0x1641   :  { %3018 = vrot.lane.b32.xlu1 %v3017_v23, %s3824_s0  ;;  %v3036_v23 = vld [vmem:[%s3784_s19 + $0x8] sm:$0xff]   ;;  %v3037_v3 = vld [vmem:[%s3784_s19] sm:$0xff]  }
0x1642   :  { %v2220_v10 = vpop.f32.mrf.mxu1  ;;  %v2625_v24 = vld [vmem:[%s3787_s18] ss:$0 sm:$0xff] }
0x1644   :  { %v2947_v4 = vpop.f32.mrf.mxu1 }
0x16b3   :  { %v3019_v28 = vpop.permute.xlu1 %3018 }
0x16b4   :  { %v3021_v29 = vunpack.i.h.bf16 %v3019_v28  ;;  %v3020_v30 = vunpack.i.l.bf16 %v3019_v28 }
0x16b6   :  { %v2252_v34 = vsel %vm1081_vm5, %v2250_v32, %v3021_v29  ;;  %v2251_v14 = vsel %vm1081_vm5, %v2249_v31, %v3020_v30 }
0x16b7   :  { %v2253_v37 = vpack.c.bf16 %v2252_v34, %v2251_v14 }
0x16b9   :  { %2953 = vmatmul.mubr.msk.bf16.vlgmr.msra.gmra.mxu0 %vm103_vm1, %v2253_v37 }
0x16ba   :  { %2972 = vmatprep.mubr.msk.bf16.mxu0 %vm3115_vm0, %v3114_v0  ;;  %2965 = vmatpush3.bf16.msra.mxu0 %v3034_v7 }
0x16bb   :  { %2966 = vmatprep.subr.bf16.mxu0 %v3114_v0 }
0x16be   :  { %2967 = vmatpush3.bf16.msra.mxu0 %v3035_v22 }
0x16bf   :  { %2968 = vmatprep.subr.bf16.mxu0 %v3114_v0 }
0x16c2   :  { %2969 = vmatpush3.bf16.msra.mxu0 %v3036_v23 }
0x16c3   :  { %2970 = vmatprep.subr.bf16.mxu0 %v3114_v0 }
0x16c6   :  { %2971 = vmatpush3.bf16.msra.mxu0 %v3037_v3 }
0x1779   :  { %v2309_v46 = vpop.f32.mrf.mxu0 }
0x177a   :  { %v2310_v38 = vadd.f32 %v2619_v43, %v2309_v46 }
0x177b   :  { %v2954_v39 = vpop.f32.mrf.mxu0 }
0x177c   :  { %v2316_v40 = vadd.f32 %v2310_v38, %v3508_v41 }
0x177d   :  { %v2312_v44 = vpop.f32.mrf.mxu0 }
0x177e   :  { %v2313_v45 = vadd.f32 %v2619_v43, %v2312_v44  ;;  %v2320_v47 = vsel %vm103_vm1, %v2316_v40, 0.0 }
0x177f   :  { %2321 = vadd.xlane.f32.xlu0 %v2320_v47  ;;  %v2955_v49 = vpop.f32.mrf.mxu0 }
0x1780   :  { %v2317_v50 = vadd.f32 %v2313_v45, %v3510_v42  ;;  %v3032_v42 = vld [vmem:[%s3783_s17 + $0x8] sm:$0xff]  }
0x1781   :  { %2957 = vmatpush3.bf16.msra.mxu1 %v3032_v42 }
0x1782   :  { %v2323_v51 = vsel %vm103_vm1, %v2317_v50, 0.0  ;;  %2958 = vmatprep.subr.bf16.mxu1 %v3114_v0  ;;  %v2629_v0 = vld [vmem:[%s3788_s20] ss:$0 sm:$0xff] }
0x1783   :  { %2324 = vadd.xlane.f32.xlu1 %v2323_v51 }
0x1785   :  { %2959 = vmatpush3.bf16.msra.mxu1 %v3033_v6 }
0x1808   :  { %v2322_v52 = vpop.xlane.xlu0 %2321 }
0x1809   :  { %v2326_v55 = vmul.f32 0.03125, %v2322_v52 }
0x180b   :  { %v2328_v56 = vsub.f32 %v2316_v40, %v2326_v55 }
0x180c   :  { %v2325_v59 = vpop.xlane.xlu1 %2324 }
0x180d   :  { %v2327_v60 = vmul.f32 0.03125, %v2325_v59  ;;  %v2330_v61 = vmul.f32 %v2328_v56, %v2328_v56 }
0x180f   :  { %v2329_v1 = vsub.f32 %v2317_v50, %v2327_v60  ;;  %v2332_v41 = vsel %vm103_vm1, %v2330_v61, 0.0 }
0x1810   :  { %2333 = vadd.xlane.f32.xlu0 %v2332_v41  ;;  %v2635_v41 = vld [vmem:[%s3789_s21] ss:$0 sm:$0xff] }
0x1811   :  { %v2331_v5 = vmul.f32 %v2329_v1, %v2329_v1 }
0x1813   :  { %v2335_v62 = vsel %vm103_vm1, %v2331_v5, 0.0 }
0x1814   :  { %2336 = vadd.xlane.f32.xlu0 %v2335_v62  ;;  %v2636_v62 = vld [vmem:[%s3790_s22] ss:$0 sm:$0xff] }
0x1899   :  { %v2334_v8 = vpop.xlane.xlu0 %2333 }
0x189a   :  { %v2338_v9 = vmul.f32 0.03125, %v2334_v8 }
0x189c   :  { %v2340_v11 = vadd.f32 1e-05, %v2338_v9 }
0x189d   :  { %v2337_v12 = vpop.xlane.xlu0 %2336 }
0x189e   :  { %3106 = vrsqrt.f32 %v2340_v11  ;;  %v2339_v53 = vmul.f32 0.03125, %v2337_v12 }
0x18a0   :  { %v2341_v48 = vadd.f32 1e-05, %v2339_v53 }
0x18a2   :  { %3108 = vrsqrt.f32 %v2341_v48 }
0x18ab   :  { %v3107_v33 = vpop.eup %3106 }
0x18ac   :  { %v2344_v35 = vmul.f32 %v3107_v33, %v2328_v56 }
0x18ae   :  { %v2352_v16 = vmul.f32 %v2623_v36, %v2344_v35 }
0x18af   :  { %v3109_v13 = vpop.eup %3108 }
0x18b0   :  { %v2345_v15 = vmul.f32 %v3109_v13, %v2329_v1  ;;  %v2360_v20 = vadd.f32 %v2624_v17, %v2352_v16 }
0x18b2   :  { %v2353_v18 = vmul.f32 %v2623_v36, %v2345_v15 }
0x18b4   :  { %v2361_v19 = vadd.f32 %v2624_v17, %v2353_v18 }
0x18b6   :  { %v2362_v21 = vpack.c.bf16 %v2361_v19, %v2360_v20 }
0x18b8   :  { %2961 = vmatmul.mubr.msk.bf16.vlgmr.msra.gmra.mxu1 %vm103_vm1, %v2362_v21 }
0x1978   :  { %v2423_v10 = vpop.f32.mrf.mxu1 }
0x1979   :  { %v2424_v54 = vadd.f32 %v2625_v24, %v2423_v10 }
0x197a   :  { %v2962_v4 = vpop.f32.mrf.mxu1 }
0x197b   :  { %v2430_v58 = vmax.f32 %v2424_v54, 0.0 }
0x197c   :  { %v2426_v63 = vpop.f32.mrf.mxu1 }
0x197d   :  { %v2427_v2 = vadd.f32 %v2625_v24, %v2426_v63 }
0x197e   :  { %v2963_v57 = vpop.f32.mrf.mxu1 }
0x197f   :  { %v2431_v25 = vmax.f32 %v2427_v2, 0.0 }
0x1981   :  { %v2432_v26 = vpack.c.bf16 %v2431_v25, %v2430_v58 }
0x1983   :  { %2973 = vmatmul.mubr.msk.bf16.vlgmr.msra.gmra.mxu0 %vm2472_vm6, %v2432_v26 }
0x1a43   :  { %v2510_v27 = vpop.f32.mrf.mxu0 }
0x1a44   :  { %v2511_v28 = vadd.f32 %v2629_v0, %v2510_v27 }
0x1a45   :  { %v2974_v29 = vpop.f32.mrf.mxu0 }
0x1a46   :  { %v2517_v30 = vadd.f32 %v2511_v28, %v2360_v20 }
0x1a47   :  { %v2513_v31 = vpop.f32.mrf.mxu0 }
0x1a48   :  { %v2514_v32 = vadd.f32 %v2629_v0, %v2513_v31  ;;  %v2521_v34 = vsel %vm103_vm1, %v2517_v30, 0.0 }
0x1a49   :  { %2522 = vadd.xlane.f32.xlu1 %v2521_v34  ;;  %v2975_v14 = vpop.f32.mrf.mxu0 }
0x1a4a   :  { %v2518_v37 = vadd.f32 %v2514_v32, %v2361_v19 }
0x1a4c   :  { %v2524_v43 = vsel %vm103_vm1, %v2518_v37, 0.0 }
0x1a4d   :  { %2525 = vadd.xlane.f32.xlu0 %v2524_v43 }
0x1ad2   :  { %v2523_v46 = vpop.xlane.xlu1 %2522 }
0x1ad3   :  { %v2527_v38 = vmul.f32 0.03125, %v2523_v46 }
0x1ad5   :  { %v2529_v39 = vsub.f32 %v2517_v30, %v2527_v38 }
0x1ad6   :  { %v2526_v40 = vpop.xlane.xlu0 %2525 }
0x1ad7   :  { %v2528_v44 = vmul.f32 0.03125, %v2526_v40  ;;  %v2531_v45 = vmul.f32 %v2529_v39, %v2529_v39 }
0x1ad9   :  { %v2530_v47 = vsub.f32 %v2518_v37, %v2528_v44  ;;  %v2533_v49 = vsel %vm103_vm1, %v2531_v45, 0.0 }
0x1ada   :  { %2534 = vadd.xlane.f32.xlu1 %v2533_v49 }
0x1adb   :  { %v2532_v50 = vmul.f32 %v2530_v47, %v2530_v47 }
0x1add   :  { %v2536_v51 = vsel %vm103_vm1, %v2532_v50, 0.0 }
0x1ade   :  { %2537 = vadd.xlane.f32.xlu0 %v2536_v51 }
0x1b63   :  { %v2535_v52 = vpop.xlane.xlu1 %2534 }
0x1b64   :  { %v2539_v55 = vmul.f32 0.03125, %v2535_v52 }
0x1b66   :  { %v2541_v56 = vadd.f32 1e-05, %v2539_v55 }
0x1b67   :  { %v2538_v59 = vpop.xlane.xlu0 %2537 }
0x1b68   :  { %3110 = vrsqrt.f32 %v2541_v56  ;;  %v2540_v60 = vmul.f32 0.03125, %v2538_v59 }
0x1b6a   :  { %v2542_v61 = vadd.f32 1e-05, %v2540_v60 }
0x1b6c   :  { %3112 = vrsqrt.f32 %v2542_v61 }
0x1b75   :  { %v3111_v1 = vpop.eup %3110 }
0x1b76   :  { %v2545_v5 = vmul.f32 %v3111_v1, %v2529_v39 }
0x1b78   :  { %v2553_v42 = vmul.f32 %v2635_v41, %v2545_v5 }
0x1b79   :  { %v3113_v6 = vpop.eup %3112 }
0x1b7a   :  { %v2561_v7 = vadd.f32 %v2636_v62, %v2553_v42  ;;  %v2546_v8 = vmul.f32 %v3113_v6, %v2530_v47 }
0x1b7c   :  { %2563 = vst.msk [vmem:[%s3791_s23] sm:$0xff] %vm103_vm1, %v2561_v7  ;;  %v2554_v9 = vmul.f32 %v2635_v41, %v2546_v8 }
0x1b7e   :  { %v2562_v11 = vadd.f32 %v2636_v62, %v2554_v9 }
0x1b80   :  { %2564 = vst.msk [vmem:[%s3791_s23 + $0x8] sm:$0xff] %vm103_vm1, %v2562_v11 }

</bundles_post_ra>
